<compile_context>
chip_gen: v7x
topology: tpu7x:2x2x1
jax: 0.10.0
libtpu: 0.0.40
codegen_flags: <defaults>
</compile_context>

<pallas_src>
import functools
import math

import jax
import jax.numpy as jnp
from jax.experimental import pallas as pl
from jax.experimental.pallas import tpu as pltpu

DTYPE = jnp.bfloat16                 # activation / weight dtype (fp32 accumulation)
VMEM_LIMIT = 48 * 1024 * 1024        # explicit scoped-VMEM budget


def _pick_tile(n, candidates):
    """Largest candidate that evenly divides n, else n (whole dim)."""
    for c in candidates:
        if n % c == 0:
            return c
    return n


# ----------------------------- Pallas kernels ------------------------------

def _linear_kernel(*refs, activation, has_add):
    # y = (x [+ add]) @ W + b     (W pre-transposed to (in, out))
    if has_add:
        x_ref, a_ref, w_ref, b_ref, o_ref = refs
        x = x_ref[...] + a_ref[...]
    else:
        x_ref, w_ref, b_ref, o_ref = refs
        x = x_ref[...]
    y = jnp.dot(x, w_ref[...], preferred_element_type=jnp.float32) + b_ref[...]
    if activation == "relu":
        y = jnp.maximum(y, 0.0)
    o_ref[...] = y.astype(o_ref.dtype)


def linear(x2d, w, b, add=None, activation=None, out_dtype=None):
    M, K = x2d.shape
    _, N = w.shape
    out_dtype = out_dtype or x2d.dtype
    tm = _pick_tile(M, (512, 256, 128))
    tn = _pick_tile(N, (512, 256, 128))
    args = [x2d]
    in_specs = [pl.BlockSpec((tm, K), lambda i, j: (i, 0))]
    if add is not None:
        args.append(add)
        in_specs.append(pl.BlockSpec((tm, K), lambda i, j: (i, 0)))
    args += [w, b]
    in_specs += [pl.BlockSpec((K, tn), lambda i, j: (0, j)),
                 pl.BlockSpec((1, tn), lambda i, j: (0, j))]
    flops = 2 * M * K * N
    bytes_acc = (x2d.size * x2d.dtype.itemsize + w.size * w.dtype.itemsize
                 + b.size * b.dtype.itemsize + M * N * jnp.dtype(out_dtype).itemsize)
    return pl.pallas_call(
        functools.partial(_linear_kernel, activation=activation,
                          has_add=add is not None),
        out_shape=jax.ShapeDtypeStruct((M, N), out_dtype),
        grid=(M // tm, N // tn),
        in_specs=in_specs,
        out_specs=pl.BlockSpec((tm, tn), lambda i, j: (i, j)),
        compiler_params=pltpu.CompilerParams(
            dimension_semantics=("parallel", "parallel"),
            vmem_limit_bytes=VMEM_LIMIT),
        cost_estimate=pl.CostEstimate(flops=flops, transcendentals=0,
                                      bytes_accessed=bytes_acc),
    )(*args)


def _proj_add_ln_kernel(x_ref, w_ref, b_ref, r_ref, g_ref, bt_ref, o_ref, *, eps):
    # LayerNorm(residual + x @ W + b), fp32 math throughout
    y = jnp.dot(x_ref[...], w_ref[...], preferred_element_type=jnp.float32)
    y = y + b_ref[...] + r_ref[...].astype(jnp.float32)
    mu = jnp.mean(y, axis=-1, keepdims=True)
    var = jnp.mean(jnp.square(y - mu), axis=-1, keepdims=True)
    yn = (y - mu) * jax.lax.rsqrt(var + eps)
    o_ref[...] = (yn * g_ref[...] + bt_ref[...]).astype(o_ref.dtype)


def proj_add_ln(x2d, w, b, residual2d, gamma, beta, eps=1e-5):
    """Fused attention-output projection + residual add + LayerNorm (post-norm)."""
    M, K = x2d.shape
    _, N = w.shape
    tm = _pick_tile(M, (512, 256, 128))
    flops = 2 * M * K * N
    bytes_acc = ((x2d.size + residual2d.size + w.size + M * N)
                 * x2d.dtype.itemsize)
    return pl.pallas_call(
        functools.partial(_proj_add_ln_kernel, eps=eps),
        out_shape=jax.ShapeDtypeStruct((M, N), x2d.dtype),
        grid=(M // tm,),
        in_specs=[
            pl.BlockSpec((tm, K), lambda i: (i, 0)),
            pl.BlockSpec((K, N), lambda i: (0, 0)),
            pl.BlockSpec((1, N), lambda i: (0, 0)),
            pl.BlockSpec((tm, N), lambda i: (i, 0)),
            pl.BlockSpec((1, N), lambda i: (0, 0)),
            pl.BlockSpec((1, N), lambda i: (0, 0)),
        ],
        out_specs=pl.BlockSpec((tm, N), lambda i: (i, 0)),
        compiler_params=pltpu.CompilerParams(
            dimension_semantics=("parallel",),
            vmem_limit_bytes=VMEM_LIMIT),
        cost_estimate=pl.CostEstimate(flops=flops, transcendentals=0,
                                      bytes_accessed=bytes_acc),
    )(x2d, w, b, residual2d, gamma, beta)


def _ffn_ln_kernel(x_ref, w1_ref, b1_ref, w2_ref, b2_ref, g_ref, bt_ref, o_ref, *, eps):
    # LayerNorm(x + relu(x @ W1 + b1) @ W2 + b2) — (M, dff) never leaves VMEM
    x = x_ref[...]
    h = jnp.dot(x, w1_ref[...], preferred_element_type=jnp.float32) + b1_ref[...]
    h = jnp.maximum(h, 0.0).astype(x.dtype)
    y = jnp.dot(h, w2_ref[...], preferred_element_type=jnp.float32) + b2_ref[...]
    y = y + x.astype(jnp.float32)
    mu = jnp.mean(y, axis=-1, keepdims=True)
    var = jnp.mean(jnp.square(y - mu), axis=-1, keepdims=True)
    yn = (y - mu) * jax.lax.rsqrt(var + eps)
    o_ref[...] = (yn * g_ref[...] + bt_ref[...]).astype(o_ref.dtype)


def ffn_ln(x2d, w1, b1, w2, b2, gamma, beta, eps=1e-5):
    M, D = x2d.shape
    dff = w1.shape[1]
    tm = _pick_tile(M, (512, 256, 128))
    flops = 4 * M * D * dff
    bytes_acc = (2 * x2d.size + w1.size + w2.size) * x2d.dtype.itemsize
    return pl.pallas_call(
        functools.partial(_ffn_ln_kernel, eps=eps),
        out_shape=jax.ShapeDtypeStruct((M, D), x2d.dtype),
        grid=(M // tm,),
        in_specs=[
            pl.BlockSpec((tm, D), lambda i: (i, 0)),
            pl.BlockSpec((D, dff), lambda i: (0, 0)),
            pl.BlockSpec((1, dff), lambda i: (0, 0)),
            pl.BlockSpec((dff, D), lambda i: (0, 0)),
            pl.BlockSpec((1, D), lambda i: (0, 0)),
            pl.BlockSpec((1, D), lambda i: (0, 0)),
            pl.BlockSpec((1, D), lambda i: (0, 0)),
        ],
        out_specs=pl.BlockSpec((tm, D), lambda i: (i, 0)),
        compiler_params=pltpu.CompilerParams(
            dimension_semantics=("parallel",),
            vmem_limit_bytes=VMEM_LIMIT),
        cost_estimate=pl.CostEstimate(flops=flops, transcendentals=0,
                                      bytes_accessed=bytes_acc),
    )(x2d, w1, b1, w2, b2, gamma, beta)


def _ln_kernel(x_ref, g_ref, b_ref, o_ref, *, eps):
    x = x_ref[...].astype(jnp.float32)
    mu = jnp.mean(x, axis=-1, keepdims=True)
    var = jnp.mean(jnp.square(x - mu), axis=-1, keepdims=True)
    y = (x - mu) * jax.lax.rsqrt(var + eps)
    o_ref[...] = (y * g_ref[...] + b_ref[...]).astype(o_ref.dtype)


def layernorm(x, gamma, beta, eps=1e-5):
    """Standalone LayerNorm over the last dim (used for the decoder's shared norm)."""
    shape = x.shape
    D = shape[-1]
    x2 = x.reshape(-1, D)
    M = x2.shape[0]
    tm = _pick_tile(M, (512, 256, 128))
    y = pl.pallas_call(
        functools.partial(_ln_kernel, eps=eps),
        out_shape=jax.ShapeDtypeStruct((M, D), x.dtype),
        grid=(M // tm,),
        in_specs=[pl.BlockSpec((tm, D), lambda i: (i, 0)),
                  pl.BlockSpec((1, D), lambda i: (0, 0)),
                  pl.BlockSpec((1, D), lambda i: (0, 0))],
        out_specs=pl.BlockSpec((tm, D), lambda i: (i, 0)),
        compiler_params=pltpu.CompilerParams(
            dimension_semantics=("parallel",),
            vmem_limit_bytes=VMEM_LIMIT),
    )(x2, gamma, beta)
    return y.reshape(shape)


def _flash_mha_kernel(*refs, nheads, scale, has_attn_bias, has_kpm_bias):
    # refs: q, k, v, [attn_bias], [kpm_bias], out, m_sc, l_sc, acc_sc
    idx = 0
    q_ref = refs[idx]; idx += 1
    k_ref = refs[idx]; idx += 1
    v_ref = refs[idx]; idx += 1
    ab_ref = None
    kb_ref = None
    if has_attn_bias:
        ab_ref = refs[idx]; idx += 1
    if has_kpm_bias:
        kb_ref = refs[idx]; idx += 1
    o_ref = refs[idx]; idx += 1
    m_sc, l_sc, acc_sc = refs[idx], refs[idx + 1], refs[idx + 2]

    kv_step = pl.program_id(1)

    @pl.when(kv_step == 0)
    def _():
        m_sc[...] = jnp.full(m_sc.shape, -1e30, m_sc.dtype)
        l_sc[...] = jnp.zeros(l_sc.shape, l_sc.dtype)
        acc_sc[...] = jnp.zeros(acc_sc.shape, acc_sc.dtype)

    q = q_ref[0]                                  # (Lq, D)   lane-dense
    k = k_ref[0]                                  # (tk, D)
    v = v_ref[0]                                  # (tk, D)

    bias = None
    if has_attn_bias:
        bias = ab_ref[...]                        # (Lq, tk) fp32 additive bias
    if has_kpm_bias:
        kb = kb_ref[0]                            # (1, tk)  fp32 additive bias
        bias = kb if bias is None else bias + kb

    D = q.shape[-1]
    hd = D // nheads
    dims_qk = (((1,), (1,)), ((), ()))            # contract head_dim vs head_dim (no .T)
    dims_pv = (((1,), (0,)), ((), ()))

    for h in range(nheads):                       # static unroll over heads
        sl = slice(h * hd, (h + 1) * hd)
        qh = q[:, sl]
        kh = k[:, sl]
        vh = v[:, sl]
        s = jax.lax.dot_general(qh, kh, dims_qk,
                                preferred_element_type=jnp.float32) * scale   # (Lq, tk)
        if bias is not None:
            s = s + bias
        m_prev = m_sc[h]                                                        # (Lq, 1)
        m_new = jnp.maximum(m_prev, jnp.max(s, axis=-1, keepdims=True))
        alpha = jnp.exp(m_prev - m_new)
        p = jnp.exp(s - m_new)                                                  # (Lq, tk)
        l_sc[h] = alpha * l_sc[h] + jnp.sum(p, axis=-1, keepdims=True)
        acc_sc[h] = alpha * acc_sc[h] + jax.lax.dot_general(
            p.astype(vh.dtype), vh, dims_pv, preferred_element_type=jnp.float32)
        m_sc[h] = m_new

    @pl.when(kv_step == pl.num_programs(1) - 1)
    def _():
        outs = []
        for h in range(nheads):
            inv = pl.reciprocal(l_sc[h], approx=True)      # EUP reciprocal
            outs.append(acc_sc[h] * inv)
        o = jnp.concatenate(outs, axis=-1)                 # (Lq, D) lane-dense store
        o_ref[0] = o.astype(o_ref.dtype)


def flash_mha(q, k, v, nheads, attn_bias=None, kpm_bias=None):
    """Multi-head attention, flash-tiled over the key length.

    q: (Lq, B, D); k, v: (Lk, B, D)
    attn_bias: optional (Lq, Lk)    fp32 additive bias (from attn_mask)
    kpm_bias : optional (B, 1, Lk)  fp32 additive bias (from key_padding_mask)
    """
    Lq, B, D = q.shape
    Lk = k.shape[0]
    hd = D // nheads
    scale = 1.0 / math.sqrt(hd)

    qb = jnp.transpose(q, (1, 0, 2))              # (B, Lq, D)
    kb = jnp.transpose(k, (1, 0, 2))              # (B, Lk, D)
    vb = jnp.transpose(v, (1, 0, 2))

    tk = _pick_tile(Lk, (1024, 512, 256, 128))
    n_kv = Lk // tk

    has_ab = attn_bias is not None
    has_kb = kpm_bias is not None

    in_specs = [
        pl.BlockSpec((1, Lq, D), lambda b, j: (b, 0, 0)),
        pl.BlockSpec((1, tk, D), lambda b, j: (b, j, 0)),
        pl.BlockSpec((1, tk, D), lambda b, j: (b, j, 0)),
    ]
    args = [qb, kb, vb]
    if has_ab:
        in_specs.append(pl.BlockSpec((Lq, tk), lambda b, j: (0, j)))
        args.append(attn_bias)
    if has_kb:
        in_specs.append(pl.BlockSpec((1, 1, tk), lambda b, j: (b, 0, j)))
        args.append(kpm_bias)

    itemsize = jnp.dtype(q.dtype).itemsize
    cost = pl.CostEstimate(
        flops=4 * B * Lq * Lk * D,
        transcendentals=B * nheads * Lq * Lk,
        bytes_accessed=(qb.size + kb.size + vb.size + B * Lq * D) * itemsize)

    out = pl.pallas_call(
        functools.partial(_flash_mha_kernel, nheads=nheads, scale=scale,
                          has_attn_bias=has_ab, has_kpm_bias=has_kb),
        out_shape=jax.ShapeDtypeStruct((B, Lq, D), q.dtype),
        grid=(B, n_kv),
        in_specs=in_specs,
        out_specs=pl.BlockSpec((1, Lq, D), lambda b, j: (b, 0, 0)),
        scratch_shapes=[
            pltpu.VMEM((nheads, Lq, 1), jnp.float32),    # running max
            pltpu.VMEM((nheads, Lq, 1), jnp.float32),    # running sum
            pltpu.VMEM((nheads, Lq, hd), jnp.float32),   # running accumulator
        ],
        compiler_params=pltpu.CompilerParams(
            dimension_semantics=("parallel", "arbitrary"),
            vmem_limit_bytes=VMEM_LIMIT),
        cost_estimate=cost,
    )(*args)
    return jnp.transpose(out, (1, 0, 2))          # back to (Lq, B, D)


# ------------------------------ model pieces -------------------------------

def build_mask_biases(attn_mask, key_padding_mask):
    # Small additive biases only (no dense (B*H, Lq, Lk) materialization).
    ab = None
    kb = None
    if attn_mask is not None:                     # (Lq, Lq) bool, True = masked
        ab = jnp.where(attn_mask, -1e9, 0.0).astype(jnp.float32)
    if key_padding_mask is not None:              # (B, Lk) bool, True = masked
        kb = jnp.where(key_padding_mask, -1e9, 0.0).astype(jnp.float32)[:, None, :]
    return ab, kb


def decoder_layer_apply(p, tgt, memory, query_pos, attn_bias, kpm_bias, nheads):
    Lq, B, D = tgt.shape
    Lk = memory.shape[0]
    tgt2d = tgt.reshape(Lq * B, D)
    pos2d = query_pos.reshape(Lq * B, D)

    # --- self attention (post-norm, dropout = identity at eval) ---
    qk = linear(tgt2d, p["sa_w_qk"], p["sa_b_qk"], add=pos2d)    # fused (x+pos) @ Wqk
    q = qk[:, :D].reshape(Lq, B, D)
    k = qk[:, D:].reshape(Lq, B, D)
    v = linear(tgt2d, p["sa_w_v"], p["sa_b_v"]).reshape(Lq, B, D)
    attn = flash_mha(q, k, v, nheads, attn_bias=attn_bias)
    tgt2d = proj_add_ln(attn.reshape(Lq * B, D), p["sa_w_o"], p["sa_b_o"],
                        tgt2d, p["norm2_g"], p["norm2_b"])

    # --- cross attention ---
    # TODO(synk): DINO's multi-scale deformable attention (grid-sample based
    # sampling over spatial_shapes/level_start_index) replaced with standard
    # flash multi-head cross-attention over the flattened memory.
    q = linear(tgt2d, p["ca_w_q"], p["ca_b_q"], add=pos2d).reshape(Lq, B, D)
    kv = linear(memory.reshape(Lk * B, D), p["ca_w_kv"], p["ca_b_kv"])   # fused K,V
    k = kv[:, :D].reshape(Lk, B, D)
    v = kv[:, D:].reshape(Lk, B, D)
    attn = flash_mha(q, k, v, nheads, kpm_bias=kpm_bias)
    tgt2d = proj_add_ln(attn.reshape(Lq * B, D), p["ca_w_o"], p["ca_b_o"],
                        tgt2d, p["norm1_g"], p["norm1_b"])

    # --- FFN (fully fused: linear1 + ReLU + linear2 + residual + LN) ---
    tgt2d = ffn_ln(tgt2d, p["ffn_w1"], p["ffn_b1"], p["ffn_w2"], p["ffn_b2"],
                   p["norm3_g"], p["norm3_b"])
    return tgt2d.reshape(Lq, B, D)


def mlp_apply(layers, x):
    # layers: list of (w(in,out), b); ReLU between all but the last (DINO MLP)
    shape = x.shape
    h = x.reshape(-1, shape[-1])
    n = len(layers)
    for i, (w, b) in enumerate(layers):
        h = linear(h, w, b, activation="relu" if i < n - 1 else None)
    return h.reshape(*shape[:-1], h.shape[-1])


def gen_sineembed_for_position(pos_tensor, d_model):
    # pos_tensor: (nq, bs, 2 or 4) fp32 -> (nq, bs, (2 or 4) * d_model//2)
    half = d_model // 2
    scale = 2.0 * math.pi
    dim_i = jnp.arange(half, dtype=jnp.float32)
    dim_t = 10000.0 ** (2.0 * jnp.floor(dim_i / 2.0) / half)

    def one(coord):  # (nq, bs)
        pos = coord[:, :, None] * scale / dim_t
        s = jnp.sin(pos[:, :, 0::2])
        c = jnp.cos(pos[:, :, 1::2])
        return jnp.stack([s, c], axis=3).reshape(coord.shape[0], coord.shape[1], half)

    pos_x = one(pos_tensor[:, :, 0])
    pos_y = one(pos_tensor[:, :, 1])
    if pos_tensor.shape[-1] == 2:
        return jnp.concatenate([pos_y, pos_x], axis=2)
    pos_w = one(pos_tensor[:, :, 2])
    pos_h = one(pos_tensor[:, :, 3])
    return jnp.concatenate([pos_y, pos_x, pos_w, pos_h], axis=2)


def inverse_sigmoid(x, eps=1e-3):
    x = jnp.clip(x, 0.0, 1.0)
    x1 = jnp.clip(x, eps, None)
    x2 = jnp.clip(1.0 - x, eps, None)
    return jnp.log(x1 / x2)


# ------------------------- TransformerDecoder.forward ----------------------

def transformer_decoder_forward(params, query, key, value, refpoints_unsigmoid,
                                valid_ratios, attn_mask=None, key_padding_mask=None,
                                *, nheads, d_model):
    num_layers = len(params["layers"])
    attn_bias, kpm_bias = build_mask_biases(attn_mask, key_padding_mask)

    output = query.astype(DTYPE)
    # In DINO's decoder usage key == value == flattened memory; the stand-in
    # cross-attention projects both K and V from `value`.
    memory = value.astype(DTYPE)

    reference_points = jax.nn.sigmoid(refpoints_unsigmoid.astype(jnp.float32))  # (nq, bs, 4)
    ref_points = [reference_points]
    intermediate = []

    # Only level 0 of reference_points_input feeds the sine embedding (the
    # deformable sampling itself is replaced above), so skip the per-level
    # broadcast against cat(valid_ratios, valid_ratios).
    vr0 = jnp.concatenate([valid_ratios[:, 0, :], valid_ratios[:, 0, :]],
                          axis=-1).astype(jnp.float32)                           # (bs, 4)

    for layer_id in range(num_layers):
        lp = params["layers"][layer_id]
        ref_input_l0 = reference_points * vr0[None]                              # (nq, bs, 4)
        query_sine_embed = gen_sineembed_for_position(ref_input_l0, d_model)     # fp32
        raw_query_pos = mlp_apply(params["ref_point_head"],
                                  query_sine_embed.astype(DTYPE))                # (nq, bs, d)
        query_pos = raw_query_pos                               # query_scale is None -> scale 1

        output = decoder_layer_apply(lp, output, memory, query_pos,
                                     attn_bias, kpm_bias, nheads)

        reference_before_sigmoid = inverse_sigmoid(reference_points)
        delta_unsig = mlp_apply(params["bbox_embed"][layer_id],
                                output).astype(jnp.float32)                      # (nq, bs, 4)
        new_reference_points = jax.nn.sigmoid(delta_unsig + reference_before_sigmoid)
        reference_points = jax.lax.stop_gradient(new_reference_points)           # .detach()
        ref_points.append(new_reference_points)
        intermediate.append(layernorm(output, params["norm_g"], params["norm_b"]))

    return ([jnp.transpose(x, (1, 0, 2)) for x in intermediate],
            [jnp.transpose(r, (1, 0, 2)) for r in ref_points])


# ------------------------------ parameter init -----------------------------

def init_params(key, d_model, nheads, dff, num_layers, query_dim):
    scale = 0.02
    keys = iter(jax.random.split(key, 512))

    def lin(in_d, out_d):
        # weights pre-transposed to (in, out) and stored in bf16; bias fp32
        w = (scale * jax.random.normal(next(keys), (in_d, out_d), jnp.float32)).astype(DTYPE)
        b = scale * jax.random.normal(next(keys), (1, out_d), jnp.float32)
        return w, b

    def ln():
        return (jnp.ones((1, d_model), jnp.float32),
                jnp.zeros((1, d_model), jnp.float32))

    layers, bbox_embed = [], []
    for _ in range(num_layers):
        sa_w_qk, sa_b_qk = lin(d_model, 2 * d_model)
        sa_w_v, sa_b_v = lin(d_model, d_model)
        sa_w_o, sa_b_o = lin(d_model, d_model)
        ca_w_q, ca_b_q = lin(d_model, d_model)
        ca_w_kv, ca_b_kv = lin(d_model, 2 * d_model)
        ca_w_o, ca_b_o = lin(d_model, d_model)
        n1g, n1b = ln(); n2g, n2b = ln(); n3g, n3b = ln()
        ffn_w1, ffn_b1 = lin(d_model, dff)
        ffn_w2, ffn_b2 = lin(dff, d_model)
        layers.append({
            "sa_w_qk": sa_w_qk, "sa_b_qk": sa_b_qk,
            "sa_w_v": sa_w_v, "sa_b_v": sa_b_v,
            "sa_w_o": sa_w_o, "sa_b_o": sa_b_o,
            "ca_w_q": ca_w_q, "ca_b_q": ca_b_q,
            "ca_w_kv": ca_w_kv, "ca_b_kv": ca_b_kv,
            "ca_w_o": ca_w_o, "ca_b_o": ca_b_o,
            "norm1_g": n1g, "norm1_b": n1b,
            "norm2_g": n2g, "norm2_b": n2b,
            "norm3_g": n3g, "norm3_b": n3b,
            "ffn_w1": ffn_w1, "ffn_b1": ffn_b1,
            "ffn_w2": ffn_w2, "ffn_b2": ffn_b2,
        })
        # bbox_embed[i] = MLP(d_model, d_model, 4, num_layers=3)
        bbox_embed.append([lin(d_model, d_model), lin(d_model, d_model),
                           lin(d_model, query_dim)])

    # ref_point_head = MLP(query_dim//2 * d_model, d_model, d_model, num_layers=2)
    r1 = lin(query_dim // 2 * d_model, d_model)
    r2 = lin(d_model, d_model)
    ng, nb = ln()
    return {"layers": layers, "bbox_embed": bbox_embed,
            "ref_point_head": [r1, r2], "norm_g": ng, "norm_b": nb}


# ---------------------------------- main ------------------------------------

if __name__ == "__main__":
    nq, bs, d_model = 8, 2, 32
    hw, n_levels, query_dim = 16, 1, 4
    num_layers, nheads, dff = 2, 4, 64

    root = jax.random.PRNGKey(0)
    k_param, k_q, k_m, k_ref = jax.random.split(root, 4)

    params = init_params(k_param, d_model, nheads, dff, num_layers, query_dim)

    query = jax.random.normal(k_q, (nq, bs, d_model), jnp.float32)       # tgt
    memory = jax.random.normal(k_m, (hw, bs, d_model), jnp.float32)      # flattened features
    refpoints_unsigmoid = jax.random.normal(k_ref, (nq, bs, query_dim), jnp.float32)
    valid_ratios = jnp.ones((bs, n_levels, 2), jnp.float32)

    fwd = jax.jit(functools.partial(transformer_decoder_forward,
                                    nheads=nheads, d_model=d_model))
    hs_list, ref_list = fwd(params, query, memory, memory,
                            refpoints_unsigmoid, valid_ratios)

    jax.block_until_ready(hs_list)
    jax.block_until_ready(ref_list)

    assert len(hs_list) == num_layers and len(ref_list) == num_layers + 1
    assert hs_list[0].shape == (bs, nq, d_model)
    assert ref_list[0].shape == (bs, nq, query_dim)
    print("KERNEL_OK")
</pallas_src>

<mosaic_0001>
module attributes {stable_mosaic.version = 11 : i64} {
  func.func @_linear_kernel(%arg0: i32, %arg1: i32, %arg2: memref<16x64xbf16, #tpu.memory_space<vmem>>, %arg3: memref<64x32xbf16, #tpu.memory_space<vmem>>, %arg4: memref<1x32xf32, #tpu.memory_space<vmem>>, %arg5: memref<16x32xbf16, #tpu.memory_space<vmem>>) attributes {dimension_semantics = [#tpu.dimension_semantics<parallel>, #tpu.dimension_semantics<parallel>], iteration_bounds = array<i64: 1, 1>, scalar_prefetch = 0 : i64, scratch_operands = 0 : i64, tpu.core_type = #tpu.core_type<tc>, window_params = [{transform_indices = @transform_0, window_bounds = array<i64: 16, 64>}, {transform_indices = @transform_1, window_bounds = array<i64: 64, 32>}, {transform_indices = @transform_2, window_bounds = array<i64: 1, 32>}, {transform_indices = @transform_3, window_bounds = array<i64: 16, 32>}]} {
    %c0 = arith.constant 0 : index
    %c0_0 = arith.constant 0 : index
    %0 = vector.load %arg2[%c0, %c0_0] : memref<16x64xbf16, #tpu.memory_space<vmem>>, vector<16x64xbf16>
    %c0_1 = arith.constant 0 : index
    %c0_2 = arith.constant 0 : index
    %1 = vector.load %arg3[%c0_1, %c0_2] : memref<64x32xbf16, #tpu.memory_space<vmem>>, vector<64x32xbf16>
    %cst = arith.constant dense<0.000000e+00> : vector<16x32xf32>
    %2 = tpu.matmul %0, %1, %cst {dimension_numbers = #tpu.dot_dimension_numbers<[1], [0], [0], [1], [0, 0, 1, 1], [], []>} : vector<16x64xbf16>, vector<64x32xbf16>, vector<16x32xf32> -> vector<16x32xf32>
    %c0_3 = arith.constant 0 : index
    %c0_4 = arith.constant 0 : index
    %3 = vector.load %arg4[%c0_3, %c0_4] : memref<1x32xf32, #tpu.memory_space<vmem>>, vector<1x32xf32>
    %4 = vector.broadcast %3 : vector<1x32xf32> to vector<16x32xf32>
    %5 = arith.addf %2, %4 : vector<16x32xf32>
    %cst_5 = arith.constant 0.000000e+00 : f32
    %6 = vector.broadcast %cst_5 : f32 to vector<16x32xf32>
    %7 = arith.maximumf %5, %6 : vector<16x32xf32>
    %8 = arith.truncf %7 : vector<16x32xf32> to vector<16x32xbf16>
    %c0_6 = arith.constant 0 : index
    %c0_7 = arith.constant 0 : index
    %9 = vector.load %arg5[%c0_6, %c0_7] : memref<16x32xbf16, #tpu.memory_space<vmem>>, vector<16x32xbf16>
    tpu.vector_store %arg5[%c0_6, %c0_7], %8 {strides = array<i32>} : memref<16x32xbf16, #tpu.memory_space<vmem>>, vector<16x32xbf16>,
    return
  }
  func.func @transform_0(%arg0: i32, %arg1: i32) -> (i32, i32) {
    %c0_i32 = arith.constant 0 : i32
    %c0_i32_0 = arith.constant 0 : i32
    return %arg0, %c0_i32 : i32, i32
  }
  func.func @transform_1(%arg0: i32, %arg1: i32) -> (i32, i32) {
    %c0_i32 = arith.constant 0 : i32
    %c0_i32_0 = arith.constant 0 : i32
    return %c0_i32, %arg1 : i32, i32
  }
  func.func @transform_2(%arg0: i32, %arg1: i32) -> (i32, i32) {
    %c0_i32 = arith.constant 0 : i32
    %c0_i32_0 = arith.constant 0 : i32
    return %c0_i32, %arg1 : i32, i32
  }
  func.func @transform_3(%arg0: i32, %arg1: i32) -> (i32, i32) {
    %c0_i32 = arith.constant 0 : i32
    return %arg0, %arg1 : i32, i32
  }
}

module attributes {stable_mosaic.version = 11 : i64} {
  func.func @_linear_kernel(%arg0: i32, %arg1: i32, %arg2: memref<16x32xbf16, #tpu.memory_space<vmem>>, %arg3: memref<32x32xbf16, #tpu.memory_space<vmem>>, %arg4: memref<1x32xf32, #tpu.memory_space<vmem>>, %arg5: memref<16x32xbf16, #tpu.memory_space<vmem>>) attributes {dimension_semantics = [#tpu.dimension_semantics<parallel>, #tpu.dimension_semantics<parallel>], iteration_bounds = array<i64: 1, 1>, scalar_prefetch = 0 : i64, scratch_operands = 0 : i64, tpu.core_type = #tpu.core_type<tc>, window_params = [{transform_indices = @transform_0, window_bounds = array<i64: 16, 32>}, {transform_indices = @transform_1, window_bounds = array<i64: 32, 32>}, {transform_indices = @transform_2, window_bounds = array<i64: 1, 32>}, {transform_indices = @transform_3, window_bounds = array<i64: 16, 32>}]} {
    %c0 = arith.constant 0 : index
    %c0_0 = arith.constant 0 : index
    %0 = vector.load %arg2[%c0, %c0_0] : memref<16x32xbf16, #tpu.memory_space<vmem>>, vector<16x32xbf16>
    %c0_1 = arith.constant 0 : index
    %c0_2 = arith.constant 0 : index
    %1 = vector.load %arg3[%c0_1, %c0_2] : memref<32x32xbf16, #tpu.memory_space<vmem>>, vector<32x32xbf16>
    %cst = arith.constant dense<0.000000e+00> : vector<16x32xf32>
    %2 = tpu.matmul %0, %1, %cst {dimension_numbers = #tpu.dot_dimension_numbers<[1], [0], [0], [1], [0, 0, 1, 1], [], []>} : vector<16x32xbf16>, vector<32x32xbf16>, vector<16x32xf32> -> vector<16x32xf32>
    %c0_3 = arith.constant 0 : index
    %c0_4 = arith.constant 0 : index
    %3 = vector.load %arg4[%c0_3, %c0_4] : memref<1x32xf32, #tpu.memory_space<vmem>>, vector<1x32xf32>
    %4 = vector.broadcast %3 : vector<1x32xf32> to vector<16x32xf32>
    %5 = arith.addf %2, %4 : vector<16x32xf32>
    %6 = arith.truncf %5 : vector<16x32xf32> to vector<16x32xbf16>
    %c0_5 = arith.constant 0 : index
    %c0_6 = arith.constant 0 : index
    %7 = vector.load %arg5[%c0_5, %c0_6] : memref<16x32xbf16, #tpu.memory_space<vmem>>, vector<16x32xbf16>
    tpu.vector_store %arg5[%c0_5, %c0_6], %6 {strides = array<i32>} : memref<16x32xbf16, #tpu.memory_space<vmem>>, vector<16x32xbf16>,
    return
  }
  func.func @transform_0(%arg0: i32, %arg1: i32) -> (i32, i32) {
    %c0_i32 = arith.constant 0 : i32
    %c0_i32_0 = arith.constant 0 : i32
    return %arg0, %c0_i32 : i32, i32
  }
  func.func @transform_1(%arg0: i32, %arg1: i32) -> (i32, i32) {
    %c0_i32 = arith.constant 0 : i32
    %c0_i32_0 = arith.constant 0 : i32
    return %c0_i32, %arg1 : i32, i32
  }
  func.func @transform_2(%arg0: i32, %arg1: i32) -> (i32, i32) {
    %c0_i32 = arith.constant 0 : i32
    %c0_i32_0 = arith.constant 0 : i32
    return %c0_i32, %arg1 : i32, i32
  }
  func.func @transform_3(%arg0: i32, %arg1: i32) -> (i32, i32) {
    %c0_i32 = arith.constant 0 : i32
    return %arg0, %arg1 : i32, i32
  }
}

module attributes {stable_mosaic.version = 11 : i64} {
  func.func @_linear_kernel(%arg0: i32, %arg1: i32, %arg2: memref<16x32xbf16, #tpu.memory_space<vmem>>, %arg3: memref<16x32xbf16, #tpu.memory_space<vmem>>, %arg4: memref<32x64xbf16, #tpu.memory_space<vmem>>, %arg5: memref<1x64xf32, #tpu.memory_space<vmem>>, %arg6: memref<16x64xbf16, #tpu.memory_space<vmem>>) attributes {dimension_semantics = [#tpu.dimension_semantics<parallel>, #tpu.dimension_semantics<parallel>], iteration_bounds = array<i64: 1, 1>, scalar_prefetch = 0 : i64, scratch_operands = 0 : i64, tpu.core_type = #tpu.core_type<tc>, window_params = [{transform_indices = @transform_0, window_bounds = array<i64: 16, 32>}, {transform_indices = @transform_1, window_bounds = array<i64: 16, 32>}, {transform_indices = @transform_2, window_bounds = array<i64: 32, 64>}, {transform_indices = @transform_3, window_bounds = array<i64: 1, 64>}, {transform_indices = @transform_4, window_bounds = array<i64: 16, 64>}]} {
    %c0 = arith.constant 0 : index
    %c0_0 = arith.constant 0 : index
    %0 = vector.load %arg2[%c0, %c0_0] : memref<16x32xbf16, #tpu.memory_space<vmem>>, vector<16x32xbf16>
    %c0_1 = arith.constant 0 : index
    %c0_2 = arith.constant 0 : index
    %1 = vector.load %arg3[%c0_1, %c0_2] : memref<16x32xbf16, #tpu.memory_space<vmem>>, vector<16x32xbf16>
    %2 = arith.addf %0, %1 : vector<16x32xbf16>
    %c0_3 = arith.constant 0 : index
    %c0_4 = arith.constant 0 : index
    %3 = vector.load %arg4[%c0_3, %c0_4] : memref<32x64xbf16, #tpu.memory_space<vmem>>, vector<32x64xbf16>
    %cst = arith.constant dense<0.000000e+00> : vector<16x64xf32>
    %4 = tpu.matmul %2, %3, %cst {dimension_numbers = #tpu.dot_dimension_numbers<[1], [0], [0], [1], [0, 0, 1, 1], [], []>} : vector<16x32xbf16>, vector<32x64xbf16>, vector<16x64xf32> -> vector<16x64xf32>
    %c0_5 = arith.constant 0 : index
    %c0_6 = arith.constant 0 : index
    %5 = vector.load %arg5[%c0_5, %c0_6] : memref<1x64xf32, #tpu.memory_space<vmem>>, vector<1x64xf32>
    %6 = vector.broadcast %5 : vector<1x64xf32> to vector<16x64xf32>
    %7 = arith.addf %4, %6 : vector<16x64xf32>
    %8 = arith.truncf %7 : vector<16x64xf32> to vector<16x64xbf16>
    %c0_7 = arith.constant 0 : index
    %c0_8 = arith.constant 0 : index
    %9 = vector.load %arg6[%c0_7, %c0_8] : memref<16x64xbf16, #tpu.memory_space<vmem>>, vector<16x64xbf16>
    tpu.vector_store %arg6[%c0_7, %c0_8], %8 {strides = array<i32>} : memref<16x64xbf16, #tpu.memory_space<vmem>>, vector<16x64xbf16>,
    return
  }
  func.func @transform_0(%arg0: i32, %arg1: i32) -> (i32, i32) {
    %c0_i32 = arith.constant 0 : i32
    %c0_i32_0 = arith.constant 0 : i32
    return %arg0, %c0_i32 : i32, i32
  }
  func.func @transform_1(%arg0: i32, %arg1: i32) -> (i32, i32) {
    %c0_i32 = arith.constant 0 : i32
    %c0_i32_0 = arith.constant 0 : i32
    return %arg0, %c0_i32 : i32, i32
  }
  func.func @transform_2(%arg0: i32, %arg1: i32) -> (i32, i32) {
    %c0_i32 = arith.constant 0 : i32
    %c0_i32_0 = arith.constant 0 : i32
    return %c0_i32, %arg1 : i32, i32
  }
  func.func @transform_3(%arg0: i32, %arg1: i32) -> (i32, i32) {
    %c0_i32 = arith.constant 0 : i32
    %c0_i32_0 = arith.constant 0 : i32
    return %c0_i32, %arg1 : i32, i32
  }
  func.func @transform_4(%arg0: i32, %arg1: i32) -> (i32, i32) {
    %c0_i32 = arith.constant 0 : i32
    return %arg0, %arg1 : i32, i32
  }
}

module attributes {stable_mosaic.version = 11 : i64} {
  func.func @_flash_mha_kernel(%arg0: i32, %arg1: i32, %arg2: memref<1x8x32xbf16, #tpu.memory_space<vmem>>, %arg3: memref<1x8x32xbf16, #tpu.memory_space<vmem>>, %arg4: memref<1x8x32xbf16, #tpu.memory_space<vmem>>, %arg5: memref<1x8x32xbf16, #tpu.memory_space<vmem>>, %arg6: memref<4x8x1xf32, #tpu.memory_space<vmem>>, %arg7: memref<4x8x1xf32, #tpu.memory_space<vmem>>, %arg8: memref<4x8x8xf32, #tpu.memory_space<vmem>>) attributes {dimension_semantics = [#tpu.dimension_semantics<parallel>, #tpu.dimension_semantics<arbitrary>], iteration_bounds = array<i64: 2, 1>, scalar_prefetch = 0 : i64, scratch_operands = 3 : i64, tpu.core_type = #tpu.core_type<tc>, window_params = [{transform_indices = @transform_0, window_bounds = array<i64: 1, 8, 32>}, {transform_indices = @transform_1, window_bounds = array<i64: 1, 8, 32>}, {transform_indices = @transform_2, window_bounds = array<i64: 1, 8, 32>}, {transform_indices = @transform_3, window_bounds = array<i64: 1, 8, 32>}]} {
    %c0_i32 = arith.constant 0 : i32
    %0 = arith.cmpi eq, %arg1, %c0_i32 : i32
    %1 = arith.extui %0 : i1 to i32
    %c0_i32_0 = arith.constant 0 : i32
    %2 = arith.cmpi ne, %1, %c0_i32_0 : i32
    scf.if %2 {
      %cst_99 = arith.constant -1.000000e+30 : f32
      %164 = vector.broadcast %cst_99 : f32 to vector<4x8x1xf32>
      %c0_100 = arith.constant 0 : index
      %c0_101 = arith.constant 0 : index
      %c0_102 = arith.constant 0 : index
      %165 = vector.load %arg6[%c0_100, %c0_101, %c0_102] : memref<4x8x1xf32, #tpu.memory_space<vmem>>, vector<4x8x1xf32>
      tpu.vector_store %arg6[%c0_100, %c0_101, %c0_102], %164 {strides = array<i32>} : memref<4x8x1xf32, #tpu.memory_space<vmem>>, vector<4x8x1xf32>,
      %cst_103 = arith.constant 0.000000e+00 : f32
      %166 = vector.broadcast %cst_103 : f32 to vector<4x8x1xf32>
      %c0_104 = arith.constant 0 : index
      %c0_105 = arith.constant 0 : index
      %c0_106 = arith.constant 0 : index
      %167 = vector.load %arg7[%c0_104, %c0_105, %c0_106] : memref<4x8x1xf32, #tpu.memory_space<vmem>>, vector<4x8x1xf32>
      tpu.vector_store %arg7[%c0_104, %c0_105, %c0_106], %166 {strides = array<i32>} : memref<4x8x1xf32, #tpu.memory_space<vmem>>, vector<4x8x1xf32>,
      %cst_107 = arith.constant 0.000000e+00 : f32
      %168 = vector.broadcast %cst_107 : f32 to vector<4x8x8xf32>
      %c0_108 = arith.constant 0 : index
      %c0_109 = arith.constant 0 : index
      %c0_110 = arith.constant 0 : index
      %169 = vector.load %arg8[%c0_108, %c0_109, %c0_110] : memref<4x8x8xf32, #tpu.memory_space<vmem>>, vector<4x8x8xf32>
      tpu.vector_store %arg8[%c0_108, %c0_109, %c0_110], %168 {strides = array<i32>} : memref<4x8x8xf32, #tpu.memory_space<vmem>>, vector<4x8x8xf32>,
    } else {
    }
    %c0 = arith.constant 0 : index
    %c0_1 = arith.constant 0 : index
    %c0_2 = arith.constant 0 : index
    %3 = vector.load %arg2[%c0, %c0_1, %c0_2] : memref<1x8x32xbf16, #tpu.memory_space<vmem>>, vector<1x8x32xbf16>
    %4 = vector.shape_cast %3 : vector<1x8x32xbf16> to vector<8x32xbf16>
    %c0_3 = arith.constant 0 : index
    %c0_4 = arith.constant 0 : index
    %c0_5 = arith.constant 0 : index
    %5 = vector.load %arg3[%c0_3, %c0_4, %c0_5] : memref<1x8x32xbf16, #tpu.memory_space<vmem>>, vector<1x8x32xbf16>
    %6 = vector.shape_cast %5 : vector<1x8x32xbf16> to vector<8x32xbf16>
    %c0_6 = arith.constant 0 : index
    %c0_7 = arith.constant 0 : index
    %c0_8 = arith.constant 0 : index
    %7 = vector.load %arg4[%c0_6, %c0_7, %c0_8] : memref<1x8x32xbf16, #tpu.memory_space<vmem>>, vector<1x8x32xbf16>
    %8 = vector.shape_cast %7 : vector<1x8x32xbf16> to vector<8x32xbf16>
    %9 = vector.extract_strided_slice %4 {offsets = [0, 0], sizes = [8, 8], strides = [1, 1]} : vector<8x32xbf16> to vector<8x8xbf16>
    %10 = vector.extract_strided_slice %6 {offsets = [0, 0], sizes = [8, 8], strides = [1, 1]} : vector<8x32xbf16> to vector<8x8xbf16>
    %11 = vector.extract_strided_slice %8 {offsets = [0, 0], sizes = [8, 8], strides = [1, 1]} : vector<8x32xbf16> to vector<8x8xbf16>
    %cst = arith.constant dense<0.000000e+00> : vector<8x8xf32>
    %12 = tpu.matmul %9, %10, %cst {dimension_numbers = #tpu.dot_dimension_numbers<[1], [1], [0], [0], [0, 0, 1, 0], [], []>} : vector<8x8xbf16>, vector<8x8xbf16>, vector<8x8xf32> -> vector<8x8xf32>
    %cst_9 = arith.constant 0.353553385 : f32
    %13 = vector.broadcast %cst_9 : f32 to vector<8x8xf32>
    %14 = arith.mulf %12, %13 : vector<8x8xf32>
    %c0_10 = arith.constant 0 : index
    %c0_11 = arith.constant 0 : index
    %c0_12 = arith.constant 0 : index
    %15 = vector.load %arg6[%c0_10, %c0_11, %c0_12] : memref<4x8x1xf32, #tpu.memory_space<vmem>>, vector<1x8x1xf32>
    %16 = vector.shape_cast %15 : vector<1x8x1xf32> to vector<8x1xf32>
    %cst_13 = arith.constant dense<0xFF800000> : vector<8xf32>
    %17 = vector.multi_reduction <maximumf>, %14, %cst_13 [1] : vector<8x8xf32> to vector<8xf32>
    %18 = vector.shape_cast %17 : vector<8xf32> to vector<8x1xf32>
    %19 = arith.maximumf %16, %18 : vector<8x1xf32>
    %20 = arith.subf %16, %19 : vector<8x1xf32>
    %21 = math.exp %20 : vector<8x1xf32>
    %22 = vector.broadcast %19 : vector<8x1xf32> to vector<8x8xf32>
    %23 = arith.subf %14, %22 : vector<8x8xf32>
    %24 = math.exp %23 : vector<8x8xf32>
    %c0_14 = arith.constant 0 : index
    %c0_15 = arith.constant 0 : index
    %c0_16 = arith.constant 0 : index
    %25 = vector.load %arg7[%c0_14, %c0_15, %c0_16] : memref<4x8x1xf32, #tpu.memory_space<vmem>>, vector<1x8x1xf32>
    %26 = vector.shape_cast %25 : vector<1x8x1xf32> to vector<8x1xf32>
    %27 = arith.mulf %21, %26 : vector<8x1xf32>
    %cst_17 = arith.constant dense<0.000000e+00> : vector<8xf32>
    %28 = vector.multi_reduction <add>, %24, %cst_17 [1] : vector<8x8xf32> to vector<8xf32>
    %29 = vector.shape_cast %28 : vector<8xf32> to vector<8x1xf32>
    %30 = arith.addf %27, %29 : vector<8x1xf32>
    %c0_18 = arith.constant 0 : index
    %c0_19 = arith.constant 0 : index
    %c0_20 = arith.constant 0 : index
    %31 = vector.load %arg7[%c0_18, %c0_19, %c0_20] : memref<4x8x1xf32, #tpu.memory_space<vmem>>, vector<1x8x1xf32>
    %32 = vector.shape_cast %31 : vector<1x8x1xf32> to vector<8x1xf32>
    %33 = vector.shape_cast %30 : vector<8x1xf32> to vector<1x8x1xf32>
    tpu.vector_store %arg7[%c0_18, %c0_19, %c0_20], %33 {strides = array<i32>} : memref<4x8x1xf32, #tpu.memory_space<vmem>>, vector<1x8x1xf32>,
    %c0_21 = arith.constant 0 : index
    %c0_22 = arith.constant 0 : index
    %c0_23 = arith.constant 0 : index
    %34 = vector.load %arg8[%c0_21, %c0_22, %c0_23] : memref<4x8x8xf32, #tpu.memory_space<vmem>>, vector<1x8x8xf32>
    %35 = vector.shape_cast %34 : vector<1x8x8xf32> to vector<8x8xf32>
    %36 = vector.broadcast %21 : vector<8x1xf32> to vector<8x8xf32>
    %37 = arith.mulf %36, %35 : vector<8x8xf32>
    %38 = arith.truncf %24 : vector<8x8xf32> to vector<8x8xbf16>
    %cst_24 = arith.constant dense<0.000000e+00> : vector<8x8xf32>
    %39 = tpu.matmul %38, %11, %cst_24 {dimension_numbers = #tpu.dot_dimension_numbers<[1], [0], [0], [1], [0, 0, 1, 1], [], []>} : vector<8x8xbf16>, vector<8x8xbf16>, vector<8x8xf32> -> vector<8x8xf32>
    %40 = arith.addf %37, %39 : vector<8x8xf32>
    %c0_25 = arith.constant 0 : index
    %c0_26 = arith.constant 0 : index
    %c0_27 = arith.constant 0 : index
    %41 = vector.load %arg8[%c0_25, %c0_26, %c0_27] : memref<4x8x8xf32, #tpu.memory_space<vmem>>, vector<1x8x8xf32>
    %42 = vector.shape_cast %41 : vector<1x8x8xf32> to vector<8x8xf32>
    %43 = vector.shape_cast %40 : vector<8x8xf32> to vector<1x8x8xf32>
    tpu.vector_store %arg8[%c0_25, %c0_26, %c0_27], %43 {strides = array<i32>} : memref<4x8x8xf32, #tpu.memory_space<vmem>>, vector<1x8x8xf32>,
    %c0_28 = arith.constant 0 : index
    %c0_29 = arith.constant 0 : index
    %c0_30 = arith.constant 0 : index
    %44 = vector.load %arg6[%c0_28, %c0_29, %c0_30] : memref<4x8x1xf32, #tpu.memory_space<vmem>>, vector<1x8x1xf32>
    %45 = vector.shape_cast %44 : vector<1x8x1xf32> to vector<8x1xf32>
    %46 = vector.shape_cast %19 : vector<8x1xf32> to vector<1x8x1xf32>
    tpu.vector_store %arg6[%c0_28, %c0_29, %c0_30], %46 {strides = array<i32>} : memref<4x8x1xf32, #tpu.memory_space<vmem>>, vector<1x8x1xf32>,
    %47 = vector.extract_strided_slice %4 {offsets = [0, 8], sizes = [8, 8], strides = [1, 1]} : vector<8x32xbf16> to vector<8x8xbf16>
    %48 = vector.extract_strided_slice %6 {offsets = [0, 8], sizes = [8, 8], strides = [1, 1]} : vector<8x32xbf16> to vector<8x8xbf16>
    %49 = vector.extract_strided_slice %8 {offsets = [0, 8], sizes = [8, 8], strides = [1, 1]} : vector<8x32xbf16> to vector<8x8xbf16>
    %cst_31 = arith.constant dense<0.000000e+00> : vector<8x8xf32>
    %50 = tpu.matmul %47, %48, %cst_31 {dimension_numbers = #tpu.dot_dimension_numbers<[1], [1], [0], [0], [0, 0, 1, 0], [], []>} : vector<8x8xbf16>, vector<8x8xbf16>, vector<8x8xf32> -> vector<8x8xf32>
    %cst_32 = arith.constant 0.353553385 : f32
    %51 = vector.broadcast %cst_32 : f32 to vector<8x8xf32>
    %52 = arith.mulf %50, %51 : vector<8x8xf32>
    %c1 = arith.constant 1 : index
    %c0_33 = arith.constant 0 : index
    %c0_34 = arith.constant 0 : index
    %53 = vector.load %arg6[%c1, %c0_33, %c0_34] : memref<4x8x1xf32, #tpu.memory_space<vmem>>, vector<1x8x1xf32>
    %54 = vector.shape_cast %53 : vector<1x8x1xf32> to vector<8x1xf32>
    %cst_35 = arith.constant dense<0xFF800000> : vector<8xf32>
    %55 = vector.multi_reduction <maximumf>, %52, %cst_35 [1] : vector<8x8xf32> to vector<8xf32>
    %56 = vector.shape_cast %55 : vector<8xf32> to vector<8x1xf32>
    %57 = arith.maximumf %54, %56 : vector<8x1xf32>
    %58 = arith.subf %54, %57 : vector<8x1xf32>
    %59 = math.exp %58 : vector<8x1xf32>
    %60 = vector.broadcast %57 : vector<8x1xf32> to vector<8x8xf32>
    %61 = arith.subf %52, %60 : vector<8x8xf32>
    %62 = math.exp %61 : vector<8x8xf32>
    %c1_36 = arith.constant 1 : index
    %c0_37 = arith.constant 0 : index
    %c0_38 = arith.constant 0 : index
    %63 = vector.load %arg7[%c1_36, %c0_37, %c0_38] : memref<4x8x1xf32, #tpu.memory_space<vmem>>, vector<1x8x1xf32>
    %64 = vector.shape_cast %63 : vector<1x8x1xf32> to vector<8x1xf32>
    %65 = arith.mulf %59, %64 : vector<8x1xf32>
    %cst_39 = arith.constant dense<0.000000e+00> : vector<8xf32>
    %66 = vector.multi_reduction <add>, %62, %cst_39 [1] : vector<8x8xf32> to vector<8xf32>
    %67 = vector.shape_cast %66 : vector<8xf32> to vector<8x1xf32>
    %68 = arith.addf %65, %67 : vector<8x1xf32>
    %c1_40 = arith.constant 1 : index
    %c0_41 = arith.constant 0 : index
    %c0_42 = arith.constant 0 : index
    %69 = vector.load %arg7[%c1_40, %c0_41, %c0_42] : memref<4x8x1xf32, #tpu.memory_space<vmem>>, vector<1x8x1xf32>
    %70 = vector.shape_cast %69 : vector<1x8x1xf32> to vector<8x1xf32>
    %71 = vector.shape_cast %68 : vector<8x1xf32> to vector<1x8x1xf32>
    tpu.vector_store %arg7[%c1_40, %c0_41, %c0_42], %71 {strides = array<i32>} : memref<4x8x1xf32, #tpu.memory_space<vmem>>, vector<1x8x1xf32>,
    %c1_43 = arith.constant 1 : index
    %c0_44 = arith.constant 0 : index
    %c0_45 = arith.constant 0 : index
    %72 = vector.load %arg8[%c1_43, %c0_44, %c0_45] : memref<4x8x8xf32, #tpu.memory_space<vmem>>, vector<1x8x8xf32>
    %73 = vector.shape_cast %72 : vector<1x8x8xf32> to vector<8x8xf32>
    %74 = vector.broadcast %59 : vector<8x1xf32> to vector<8x8xf32>
    %75 = arith.mulf %74, %73 : vector<8x8xf32>
    %76 = arith.truncf %62 : vector<8x8xf32> to vector<8x8xbf16>
    %cst_46 = arith.constant dense<0.000000e+00> : vector<8x8xf32>
    %77 = tpu.matmul %76, %49, %cst_46 {dimension_numbers = #tpu.dot_dimension_numbers<[1], [0], [0], [1], [0, 0, 1, 1], [], []>} : vector<8x8xbf16>, vector<8x8xbf16>, vector<8x8xf32> -> vector<8x8xf32>
    %78 = arith.addf %75, %77 : vector<8x8xf32>
    %c1_47 = arith.constant 1 : index
    %c0_48 = arith.constant 0 : index
    %c0_49 = arith.constant 0 : index
    %79 = vector.load %arg8[%c1_47, %c0_48, %c0_49] : memref<4x8x8xf32, #tpu.memory_space<vmem>>, vector<1x8x8xf32>
    %80 = vector.shape_cast %79 : vector<1x8x8xf32> to vector<8x8xf32>
    %81 = vector.shape_cast %78 : vector<8x8xf32> to vector<1x8x8xf32>
    tpu.vector_store %arg8[%c1_47, %c0_48, %c0_49], %81 {strides = array<i32>} : memref<4x8x8xf32, #tpu.memory_space<vmem>>, vector<1x8x8xf32>,
    %c1_50 = arith.constant 1 : index
    %c0_51 = arith.constant 0 : index
    %c0_52 = arith.constant 0 : index
    %82 = vector.load %arg6[%c1_50, %c0_51, %c0_52] : memref<4x8x1xf32, #tpu.memory_space<vmem>>, vector<1x8x1xf32>
    %83 = vector.shape_cast %82 : vector<1x8x1xf32> to vector<8x1xf32>
    %84 = vector.shape_cast %57 : vector<8x1xf32> to vector<1x8x1xf32>
    tpu.vector_store %arg6[%c1_50, %c0_51, %c0_52], %84 {strides = array<i32>} : memref<4x8x1xf32, #tpu.memory_space<vmem>>, vector<1x8x1xf32>,
    %85 = vector.extract_strided_slice %4 {offsets = [0, 16], sizes = [8, 8], strides = [1, 1]} : vector<8x32xbf16> to vector<8x8xbf16>
    %86 = vector.extract_strided_slice %6 {offsets = [0, 16], sizes = [8, 8], strides = [1, 1]} : vector<8x32xbf16> to vector<8x8xbf16>
    %87 = vector.extract_strided_slice %8 {offsets = [0, 16], sizes = [8, 8], strides = [1, 1]} : vector<8x32xbf16> to vector<8x8xbf16>
    %cst_53 = arith.constant dense<0.000000e+00> : vector<8x8xf32>
    %88 = tpu.matmul %85, %86, %cst_53 {dimension_numbers = #tpu.dot_dimension_numbers<[1], [1], [0], [0], [0, 0, 1, 0], [], []>} : vector<8x8xbf16>, vector<8x8xbf16>, vector<8x8xf32> -> vector<8x8xf32>
    %cst_54 = arith.constant 0.353553385 : f32
    %89 = vector.broadcast %cst_54 : f32 to vector<8x8xf32>
    %90 = arith.mulf %88, %89 : vector<8x8xf32>
    %c2 = arith.constant 2 : index
    %c0_55 = arith.constant 0 : index
    %c0_56 = arith.constant 0 : index
    %91 = vector.load %arg6[%c2, %c0_55, %c0_56] : memref<4x8x1xf32, #tpu.memory_space<vmem>>, vector<1x8x1xf32>
    %92 = vector.shape_cast %91 : vector<1x8x1xf32> to vector<8x1xf32>
    %cst_57 = arith.constant dense<0xFF800000> : vector<8xf32>
    %93 = vector.multi_reduction <maximumf>, %90, %cst_57 [1] : vector<8x8xf32> to vector<8xf32>
    %94 = vector.shape_cast %93 : vector<8xf32> to vector<8x1xf32>
    %95 = arith.maximumf %92, %94 : vector<8x1xf32>
    %96 = arith.subf %92, %95 : vector<8x1xf32>
    %97 = math.exp %96 : vector<8x1xf32>
    %98 = vector.broadcast %95 : vector<8x1xf32> to vector<8x8xf32>
    %99 = arith.subf %90, %98 : vector<8x8xf32>
    %100 = math.exp %99 : vector<8x8xf32>
    %c2_58 = arith.constant 2 : index
    %c0_59 = arith.constant 0 : index
    %c0_60 = arith.constant 0 : index
    %101 = vector.load %arg7[%c2_58, %c0_59, %c0_60] : memref<4x8x1xf32, #tpu.memory_space<vmem>>, vector<1x8x1xf32>
    %102 = vector.shape_cast %101 : vector<1x8x1xf32> to vector<8x1xf32>
    %103 = arith.mulf %97, %102 : vector<8x1xf32>
    %cst_61 = arith.constant dense<0.000000e+00> : vector<8xf32>
    %104 = vector.multi_reduction <add>, %100, %cst_61 [1] : vector<8x8xf32> to vector<8xf32>
    %105 = vector.shape_cast %104 : vector<8xf32> to vector<8x1xf32>
    %106 = arith.addf %103, %105 : vector<8x1xf32>
    %c2_62 = arith.constant 2 : index
    %c0_63 = arith.constant 0 : index
    %c0_64 = arith.constant 0 : index
    %107 = vector.load %arg7[%c2_62, %c0_63, %c0_64] : memref<4x8x1xf32, #tpu.memory_space<vmem>>, vector<1x8x1xf32>
    %108 = vector.shape_cast %107 : vector<1x8x1xf32> to vector<8x1xf32>
    %109 = vector.shape_cast %106 : vector<8x1xf32> to vector<1x8x1xf32>
    tpu.vector_store %arg7[%c2_62, %c0_63, %c0_64], %109 {strides = array<i32>} : memref<4x8x1xf32, #tpu.memory_space<vmem>>, vector<1x8x1xf32>,
    %c2_65 = arith.constant 2 : index
    %c0_66 = arith.constant 0 : index
    %c0_67 = arith.constant 0 : index
    %110 = vector.load %arg8[%c2_65, %c0_66, %c0_67] : memref<4x8x8xf32, #tpu.memory_space<vmem>>, vector<1x8x8xf32>
    %111 = vector.shape_cast %110 : vector<1x8x8xf32> to vector<8x8xf32>
    %112 = vector.broadcast %97 : vector<8x1xf32> to vector<8x8xf32>
    %113 = arith.mulf %112, %111 : vector<8x8xf32>
    %114 = arith.truncf %100 : vector<8x8xf32> to vector<8x8xbf16>
    %cst_68 = arith.constant dense<0.000000e+00> : vector<8x8xf32>
    %115 = tpu.matmul %114, %87, %cst_68 {dimension_numbers = #tpu.dot_dimension_numbers<[1], [0], [0], [1], [0, 0, 1, 1], [], []>} : vector<8x8xbf16>, vector<8x8xbf16>, vector<8x8xf32> -> vector<8x8xf32>
    %116 = arith.addf %113, %115 : vector<8x8xf32>
    %c2_69 = arith.constant 2 : index
    %c0_70 = arith.constant 0 : index
    %c0_71 = arith.constant 0 : index
    %117 = vector.load %arg8[%c2_69, %c0_70, %c0_71] : memref<4x8x8xf32, #tpu.memory_space<vmem>>, vector<1x8x8xf32>
    %118 = vector.shape_cast %117 : vector<1x8x8xf32> to vector<8x8xf32>
    %119 = vector.shape_cast %116 : vector<8x8xf32> to vector<1x8x8xf32>
    tpu.vector_store %arg8[%c2_69, %c0_70, %c0_71], %119 {strides = array<i32>} : memref<4x8x8xf32, #tpu.memory_space<vmem>>, vector<1x8x8xf32>,
    %c2_72 = arith.constant 2 : index
    %c0_73 = arith.constant 0 : index
    %c0_74 = arith.constant 0 : index
    %120 = vector.load %arg6[%c2_72, %c0_73, %c0_74] : memref<4x8x1xf32, #tpu.memory_space<vmem>>, vector<1x8x1xf32>
    %121 = vector.shape_cast %120 : vector<1x8x1xf32> to vector<8x1xf32>
    %122 = vector.shape_cast %95 : vector<8x1xf32> to vector<1x8x1xf32>
    tpu.vector_store %arg6[%c2_72, %c0_73, %c0_74], %122 {strides = array<i32>} : memref<4x8x1xf32, #tpu.memory_space<vmem>>, vector<1x8x1xf32>,
    %123 = vector.extract_strided_slice %4 {offsets = [0, 24], sizes = [8, 8], strides = [1, 1]} : vector<8x32xbf16> to vector<8x8xbf16>
    %124 = vector.extract_strided_slice %6 {offsets = [0, 24], sizes = [8, 8], strides = [1, 1]} : vector<8x32xbf16> to vector<8x8xbf16>
    %125 = vector.extract_strided_slice %8 {offsets = [0, 24], sizes = [8, 8], strides = [1, 1]} : vector<8x32xbf16> to vector<8x8xbf16>
    %cst_75 = arith.constant dense<0.000000e+00> : vector<8x8xf32>
    %126 = tpu.matmul %123, %124, %cst_75 {dimension_numbers = #tpu.dot_dimension_numbers<[1], [1], [0], [0], [0, 0, 1, 0], [], []>} : vector<8x8xbf16>, vector<8x8xbf16>, vector<8x8xf32> -> vector<8x8xf32>
    %cst_76 = arith.constant 0.353553385 : f32
    %127 = vector.broadcast %cst_76 : f32 to vector<8x8xf32>
    %128 = arith.mulf %126, %127 : vector<8x8xf32>
    %c3 = arith.constant 3 : index
    %c0_77 = arith.constant 0 : index
    %c0_78 = arith.constant 0 : index
    %129 = vector.load %arg6[%c3, %c0_77, %c0_78] : memref<4x8x1xf32, #tpu.memory_space<vmem>>, vector<1x8x1xf32>
    %130 = vector.shape_cast %129 : vector<1x8x1xf32> to vector<8x1xf32>
    %cst_79 = arith.constant dense<0xFF800000> : vector<8xf32>
    %131 = vector.multi_reduction <maximumf>, %128, %cst_79 [1] : vector<8x8xf32> to vector<8xf32>
    %132 = vector.shape_cast %131 : vector<8xf32> to vector<8x1xf32>
    %133 = arith.maximumf %130, %132 : vector<8x1xf32>
    %134 = arith.subf %130, %133 : vector<8x1xf32>
    %135 = math.exp %134 : vector<8x1xf32>
    %136 = vector.broadcast %133 : vector<8x1xf32> to vector<8x8xf32>
    %137 = arith.subf %128, %136 : vector<8x8xf32>
    %138 = math.exp %137 : vector<8x8xf32>
    %c3_80 = arith.constant 3 : index
    %c0_81 = arith.constant 0 : index
    %c0_82 = arith.constant 0 : index
    %139 = vector.load %arg7[%c3_80, %c0_81, %c0_82] : memref<4x8x1xf32, #tpu.memory_space<vmem>>, vector<1x8x1xf32>
    %140 = vector.shape_cast %139 : vector<1x8x1xf32> to vector<8x1xf32>
    %141 = arith.mulf %135, %140 : vector<8x1xf32>
    %cst_83 = arith.constant dense<0.000000e+00> : vector<8xf32>
    %142 = vector.multi_reduction <add>, %138, %cst_83 [1] : vector<8x8xf32> to vector<8xf32>
    %143 = vector.shape_cast %142 : vector<8xf32> to vector<8x1xf32>
    %144 = arith.addf %141, %143 : vector<8x1xf32>
    %c3_84 = arith.constant 3 : index
    %c0_85 = arith.constant 0 : index
    %c0_86 = arith.constant 0 : index
    %145 = vector.load %arg7[%c3_84, %c0_85, %c0_86] : memref<4x8x1xf32, #tpu.memory_space<vmem>>, vector<1x8x1xf32>
    %146 = vector.shape_cast %145 : vector<1x8x1xf32> to vector<8x1xf32>
    %147 = vector.shape_cast %144 : vector<8x1xf32> to vector<1x8x1xf32>
    tpu.vector_store %arg7[%c3_84, %c0_85, %c0_86], %147 {strides = array<i32>} : memref<4x8x1xf32, #tpu.memory_space<vmem>>, vector<1x8x1xf32>,
    %c3_87 = arith.constant 3 : index
    %c0_88 = arith.constant 0 : index
    %c0_89 = arith.constant 0 : index
    %148 = vector.load %arg8[%c3_87, %c0_88, %c0_89] : memref<4x8x8xf32, #tpu.memory_space<vmem>>, vector<1x8x8xf32>
    %149 = vector.shape_cast %148 : vector<1x8x8xf32> to vector<8x8xf32>
    %150 = vector.broadcast %135 : vector<8x1xf32> to vector<8x8xf32>
    %151 = arith.mulf %150, %149 : vector<8x8xf32>
    %152 = arith.truncf %138 : vector<8x8xf32> to vector<8x8xbf16>
    %cst_90 = arith.constant dense<0.000000e+00> : vector<8x8xf32>
    %153 = tpu.matmul %152, %125, %cst_90 {dimension_numbers = #tpu.dot_dimension_numbers<[1], [0], [0], [1], [0, 0, 1, 1], [], []>} : vector<8x8xbf16>, vector<8x8xbf16>, vector<8x8xf32> -> vector<8x8xf32>
    %154 = arith.addf %151, %153 : vector<8x8xf32>
    %c3_91 = arith.constant 3 : index
    %c0_92 = arith.constant 0 : index
    %c0_93 = arith.constant 0 : index
    %155 = vector.load %arg8[%c3_91, %c0_92, %c0_93] : memref<4x8x8xf32, #tpu.memory_space<vmem>>, vector<1x8x8xf32>
    %156 = vector.shape_cast %155 : vector<1x8x8xf32> to vector<8x8xf32>
    %157 = vector.shape_cast %154 : vector<8x8xf32> to vector<1x8x8xf32>
    tpu.vector_store %arg8[%c3_91, %c0_92, %c0_93], %157 {strides = array<i32>} : memref<4x8x8xf32, #tpu.memory_space<vmem>>, vector<1x8x8xf32>,
    %c3_94 = arith.constant 3 : index
    %c0_95 = arith.constant 0 : index
    %c0_96 = arith.constant 0 : index
    %158 = vector.load %arg6[%c3_94, %c0_95, %c0_96] : memref<4x8x1xf32, #tpu.memory_space<vmem>>, vector<1x8x1xf32>
    %159 = vector.shape_cast %158 : vector<1x8x1xf32> to vector<8x1xf32>
    %160 = vector.shape_cast %133 : vector<8x1xf32> to vector<1x8x1xf32>
    tpu.vector_store %arg6[%c3_94, %c0_95, %c0_96], %160 {strides = array<i32>} : memref<4x8x1xf32, #tpu.memory_space<vmem>>, vector<1x8x1xf32>,
    %c0_i32_97 = arith.constant 0 : i32
    %161 = arith.cmpi eq, %arg1, %c0_i32_97 : i32
    %162 = arith.extui %161 : i1 to i32
    %c0_i32_98 = arith.constant 0 : i32
    %163 = arith.cmpi ne, %162, %c0_i32_98 : i32
    scf.if %163 {
      %c0_99 = arith.constant 0 : index
      %c0_100 = arith.constant 0 : index
      %c0_101 = arith.constant 0 : index
      %164 = vector.load %arg7[%c0_99, %c0_100, %c0_101] : memref<4x8x1xf32, #tpu.memory_space<vmem>>, vector<1x8x1xf32>
      %165 = vector.shape_cast %164 : vector<1x8x1xf32> to vector<8x1xf32>
      %166 = tpu.reciprocal %165 {approx = true} : vector<8x1xf32> -> vector<8x1xf32>
      %c0_102 = arith.constant 0 : index
      %c0_103 = arith.constant 0 : index
      %c0_104 = arith.constant 0 : index
      %167 = vector.load %arg8[%c0_102, %c0_103, %c0_104] : memref<4x8x8xf32, #tpu.memory_space<vmem>>, vector<1x8x8xf32>
      %168 = vector.shape_cast %167 : vector<1x8x8xf32> to vector<8x8xf32>
      %169 = vector.broadcast %166 : vector<8x1xf32> to vector<8x8xf32>
      %170 = arith.mulf %168, %169 : vector<8x8xf32>
      %c1_105 = arith.constant 1 : index
      %c0_106 = arith.constant 0 : index
      %c0_107 = arith.constant 0 : index
      %171 = vector.load %arg7[%c1_105, %c0_106, %c0_107] : memref<4x8x1xf32, #tpu.memory_space<vmem>>, vector<1x8x1xf32>
      %172 = vector.shape_cast %171 : vector<1x8x1xf32> to vector<8x1xf32>
      %173 = tpu.reciprocal %172 {approx = true} : vector<8x1xf32> -> vector<8x1xf32>
      %c1_108 = arith.constant 1 : index
      %c0_109 = arith.constant 0 : index
      %c0_110 = arith.constant 0 : index
      %174 = vector.load %arg8[%c1_108, %c0_109, %c0_110] : memref<4x8x8xf32, #tpu.memory_space<vmem>>, vector<1x8x8xf32>
      %175 = vector.shape_cast %174 : vector<1x8x8xf32> to vector<8x8xf32>
      %176 = vector.broadcast %173 : vector<8x1xf32> to vector<8x8xf32>
      %177 = arith.mulf %175, %176 : vector<8x8xf32>
      %c2_111 = arith.constant 2 : index
      %c0_112 = arith.constant 0 : index
      %c0_113 = arith.constant 0 : index
      %178 = vector.load %arg7[%c2_111, %c0_112, %c0_113] : memref<4x8x1xf32, #tpu.memory_space<vmem>>, vector<1x8x1xf32>
      %179 = vector.shape_cast %178 : vector<1x8x1xf32> to vector<8x1xf32>
      %180 = tpu.reciprocal %179 {approx = true} : vector<8x1xf32> -> vector<8x1xf32>
      %c2_114 = arith.constant 2 : index
      %c0_115 = arith.constant 0 : index
      %c0_116 = arith.constant 0 : index
      %181 = vector.load %arg8[%c2_114, %c0_115, %c0_116] : memref<4x8x8xf32, #tpu.memory_space<vmem>>, vector<1x8x8xf32>
      %182 = vector.shape_cast %181 : vector<1x8x8xf32> to vector<8x8xf32>
      %183 = vector.broadcast %180 : vector<8x1xf32> to vector<8x8xf32>
      %184 = arith.mulf %182, %183 : vector<8x8xf32>
      %c3_117 = arith.constant 3 : index
      %c0_118 = arith.constant 0 : index
      %c0_119 = arith.constant 0 : index
      %185 = vector.load %arg7[%c3_117, %c0_118, %c0_119] : memref<4x8x1xf32, #tpu.memory_space<vmem>>, vector<1x8x1xf32>
      %186 = vector.shape_cast %185 : vector<1x8x1xf32> to vector<8x1xf32>
      %187 = tpu.reciprocal %186 {approx = true} : vector<8x1xf32> -> vector<8x1xf32>
      %c3_120 = arith.constant 3 : index
      %c0_121 = arith.constant 0 : index
      %c0_122 = arith.constant 0 : index
      %188 = vector.load %arg8[%c3_120, %c0_121, %c0_122] : memref<4x8x8xf32, #tpu.memory_space<vmem>>, vector<1x8x8xf32>
      %189 = vector.shape_cast %188 : vector<1x8x8xf32> to vector<8x8xf32>
      %190 = vector.broadcast %187 : vector<8x1xf32> to vector<8x8xf32>
      %191 = arith.mulf %189, %190 : vector<8x8xf32>
      %192 = tpu.concatenate %170, %177, %184, %191 in 1 : vector<8x8xf32>, vector<8x8xf32>, vector<8x8xf32>, vector<8x8xf32> -> vector<8x32xf32>
      %193 = arith.truncf %192 : vector<8x32xf32> to vector<8x32xbf16>
      %c0_123 = arith.constant 0 : index
      %c0_124 = arith.constant 0 : index
      %c0_125 = arith.constant 0 : index
      %194 = vector.load %arg5[%c0_123, %c0_124, %c0_125] : memref<1x8x32xbf16, #tpu.memory_space<vmem>>, vector<1x8x32xbf16>
      %195 = vector.shape_cast %194 : vector<1x8x32xbf16> to vector<8x32xbf16>
      %196 = vector.shape_cast %193 : vector<8x32xbf16> to vector<1x8x32xbf16>
      tpu.vector_store %arg5[%c0_123, %c0_124, %c0_125], %196 {strides = array<i32>} : memref<1x8x32xbf16, #tpu.memory_space<vmem>>, vector<1x8x32xbf16>,
    } else {
    }
    return
  }
  func.func @transform_0(%arg0: i32, %arg1: i32) -> (i32, i32, i32) {
    %c0_i32 = arith.constant 0 : i32
    %c0_i32_0 = arith.constant 0 : i32
    %c0_i32_1 = arith.constant 0 : i32
    return %arg0, %c0_i32, %c0_i32_0 : i32, i32, i32
  }
  func.func @transform_1(%arg0: i32, %arg1: i32) -> (i32, i32, i32) {
    %c0_i32 = arith.constant 0 : i32
    %c0_i32_0 = arith.constant 0 : i32
    return %arg0, %arg1, %c0_i32 : i32, i32, i32
  }
  func.func @transform_2(%arg0: i32, %arg1: i32) -> (i32, i32, i32) {
    %c0_i32 = arith.constant 0 : i32
    %c0_i32_0 = arith.constant 0 : i32
    return %arg0, %arg1, %c0_i32 : i32, i32, i32
  }
  func.func @transform_3(%arg0: i32, %arg1: i32) -> (i32, i32, i32) {
    %c0_i32 = arith.constant 0 : i32
    %c0_i32_0 = arith.constant 0 : i32
    %c0_i32_1 = arith.constant 0 : i32
    return %arg0, %c0_i32, %c0_i32_0 : i32, i32, i32
  }
}

module attributes {stable_mosaic.version = 11 : i64} {
  func.func @_proj_add_ln_kernel(%arg0: i32, %arg1: memref<16x32xbf16, #tpu.memory_space<vmem>>, %arg2: memref<32x32xbf16, #tpu.memory_space<vmem>>, %arg3: memref<1x32xf32, #tpu.memory_space<vmem>>, %arg4: memref<16x32xbf16, #tpu.memory_space<vmem>>, %arg5: memref<1x32xf32, #tpu.memory_space<vmem>>, %arg6: memref<1x32xf32, #tpu.memory_space<vmem>>, %arg7: memref<16x32xbf16, #tpu.memory_space<vmem>>) attributes {dimension_semantics = [#tpu.dimension_semantics<parallel>], iteration_bounds = array<i64: 1>, scalar_prefetch = 0 : i64, scratch_operands = 0 : i64, tpu.core_type = #tpu.core_type<tc>, window_params = [{transform_indices = @transform_0, window_bounds = array<i64: 16, 32>}, {pipeline_mode = #tpu.pipeline_mode<synchronous>, transform_indices = @transform_1, window_bounds = array<i64: 32, 32>}, {pipeline_mode = #tpu.pipeline_mode<synchronous>, transform_indices = @transform_2, window_bounds = array<i64: 1, 32>}, {transform_indices = @transform_3, window_bounds = array<i64: 16, 32>}, {pipeline_mode = #tpu.pipeline_mode<synchronous>, transform_indices = @transform_4, window_bounds = array<i64: 1, 32>}, {pipeline_mode = #tpu.pipeline_mode<synchronous>, transform_indices = @transform_5, window_bounds = array<i64: 1, 32>}, {transform_indices = @transform_6, window_bounds = array<i64: 16, 32>}]} {
    %c0 = arith.constant 0 : index
    %c0_0 = arith.constant 0 : index
    %0 = vector.load %arg1[%c0, %c0_0] : memref<16x32xbf16, #tpu.memory_space<vmem>>, vector<16x32xbf16>
    %c0_1 = arith.constant 0 : index
    %c0_2 = arith.constant 0 : index
    %1 = vector.load %arg2[%c0_1, %c0_2] : memref<32x32xbf16, #tpu.memory_space<vmem>>, vector<32x32xbf16>
    %cst = arith.constant dense<0.000000e+00> : vector<16x32xf32>
    %2 = tpu.matmul %0, %1, %cst {dimension_numbers = #tpu.dot_dimension_numbers<[1], [0], [0], [1], [0, 0, 1, 1], [], []>} : vector<16x32xbf16>, vector<32x32xbf16>, vector<16x32xf32> -> vector<16x32xf32>
    %c0_3 = arith.constant 0 : index
    %c0_4 = arith.constant 0 : index
    %3 = vector.load %arg3[%c0_3, %c0_4] : memref<1x32xf32, #tpu.memory_space<vmem>>, vector<1x32xf32>
    %4 = vector.broadcast %3 : vector<1x32xf32> to vector<16x32xf32>
    %5 = arith.addf %2, %4 : vector<16x32xf32>
    %c0_5 = arith.constant 0 : index
    %c0_6 = arith.constant 0 : index
    %6 = vector.load %arg4[%c0_5, %c0_6] : memref<16x32xbf16, #tpu.memory_space<vmem>>, vector<16x32xbf16>
    %7 = arith.extf %6 : vector<16x32xbf16> to vector<16x32xf32>
    %8 = arith.addf %5, %7 : vector<16x32xf32>
    %cst_7 = arith.constant dense<0.000000e+00> : vector<16xf32>
    %9 = vector.multi_reduction <add>, %8, %cst_7 [1] : vector<16x32xf32> to vector<16xf32>
    %10 = vector.shape_cast %9 : vector<16xf32> to vector<16x1xf32>
    %cst_8 = arith.constant 3.200000e+01 : f32
    %11 = vector.broadcast %cst_8 : f32 to vector<16x1xf32>
    %12 = arith.divf %10, %11 : vector<16x1xf32>
    %13 = vector.broadcast %12 : vector<16x1xf32> to vector<16x32xf32>
    %14 = arith.subf %8, %13 : vector<16x32xf32>
    %15 = arith.mulf %14, %14 : vector<16x32xf32>
    %cst_9 = arith.constant dense<0.000000e+00> : vector<16xf32>
    %16 = vector.multi_reduction <add>, %15, %cst_9 [1] : vector<16x32xf32> to vector<16xf32>
    %17 = vector.shape_cast %16 : vector<16xf32> to vector<16x1xf32>
    %cst_10 = arith.constant 3.200000e+01 : f32
    %18 = vector.broadcast %cst_10 : f32 to vector<16x1xf32>
    %19 = arith.divf %17, %18 : vector<16x1xf32>
    %20 = vector.broadcast %12 : vector<16x1xf32> to vector<16x32xf32>
    %21 = arith.subf %8, %20 : vector<16x32xf32>
    %cst_11 = arith.constant 9.99999974E-6 : f32
    %22 = vector.broadcast %cst_11 : f32 to vector<16x1xf32>
    %23 = arith.addf %19, %22 : vector<16x1xf32>
    %24 = math.rsqrt %23 : vector<16x1xf32>
    %25 = vector.broadcast %24 : vector<16x1xf32> to vector<16x32xf32>
    %26 = arith.mulf %21, %25 : vector<16x32xf32>
    %c0_12 = arith.constant 0 : index
    %c0_13 = arith.constant 0 : index
    %27 = vector.load %arg5[%c0_12, %c0_13] : memref<1x32xf32, #tpu.memory_space<vmem>>, vector<1x32xf32>
    %28 = vector.broadcast %27 : vector<1x32xf32> to vector<16x32xf32>
    %29 = arith.mulf %26, %28 : vector<16x32xf32>
    %c0_14 = arith.constant 0 : index
    %c0_15 = arith.constant 0 : index
    %30 = vector.load %arg6[%c0_14, %c0_15] : memref<1x32xf32, #tpu.memory_space<vmem>>, vector<1x32xf32>
    %31 = vector.broadcast %30 : vector<1x32xf32> to vector<16x32xf32>
    %32 = arith.addf %29, %31 : vector<16x32xf32>
    %33 = arith.truncf %32 : vector<16x32xf32> to vector<16x32xbf16>
    %c0_16 = arith.constant 0 : index
    %c0_17 = arith.constant 0 : index
    %34 = vector.load %arg7[%c0_16, %c0_17] : memref<16x32xbf16, #tpu.memory_space<vmem>>, vector<16x32xbf16>
    tpu.vector_store %arg7[%c0_16, %c0_17], %33 {strides = array<i32>} : memref<16x32xbf16, #tpu.memory_space<vmem>>, vector<16x32xbf16>,
    return
  }
  func.func @transform_0(%arg0: i32) -> (i32, i32) {
    %c0_i32 = arith.constant 0 : i32
    %c0_i32_0 = arith.constant 0 : i32
    return %arg0, %c0_i32 : i32, i32
  }
  func.func @transform_1(%arg0: i32) -> (i32, i32) {
    %c0_i32 = arith.constant 0 : i32
    %c0_i32_0 = arith.constant 0 : i32
    %c0_i32_1 = arith.constant 0 : i32
    return %c0_i32, %c0_i32_0 : i32, i32
  }
  func.func @transform_2(%arg0: i32) -> (i32, i32) {
    %c0_i32 = arith.constant 0 : i32
    %c0_i32_0 = arith.constant 0 : i32
    %c0_i32_1 = arith.constant 0 : i32
    return %c0_i32, %c0_i32_0 : i32, i32
  }
  func.func @transform_3(%arg0: i32) -> (i32, i32) {
    %c0_i32 = arith.constant 0 : i32
    %c0_i32_0 = arith.constant 0 : i32
    return %arg0, %c0_i32 : i32, i32
  }
  func.func @transform_4(%arg0: i32) -> (i32, i32) {
    %c0_i32 = arith.constant 0 : i32
    %c0_i32_0 = arith.constant 0 : i32
    %c0_i32_1 = arith.constant 0 : i32
    return %c0_i32, %c0_i32_0 : i32, i32
  }
  func.func @transform_5(%arg0: i32) -> (i32, i32) {
    %c0_i32 = arith.constant 0 : i32
    %c0_i32_0 = arith.constant 0 : i32
    %c0_i32_1 = arith.constant 0 : i32
    return %c0_i32, %c0_i32_0 : i32, i32
  }
  func.func @transform_6(%arg0: i32) -> (i32, i32) {
    %c0_i32 = arith.constant 0 : i32
    %c0_i32_0 = arith.constant 0 : i32
    return %arg0, %c0_i32 : i32, i32
  }
}

module attributes {stable_mosaic.version = 11 : i64} {
  func.func @_linear_kernel(%arg0: i32, %arg1: i32, %arg2: memref<32x32xbf16, #tpu.memory_space<vmem>>, %arg3: memref<32x64xbf16, #tpu.memory_space<vmem>>, %arg4: memref<1x64xf32, #tpu.memory_space<vmem>>, %arg5: memref<32x64xbf16, #tpu.memory_space<vmem>>) attributes {dimension_semantics = [#tpu.dimension_semantics<parallel>, #tpu.dimension_semantics<parallel>], iteration_bounds = array<i64: 1, 1>, scalar_prefetch = 0 : i64, scratch_operands = 0 : i64, tpu.core_type = #tpu.core_type<tc>, window_params = [{transform_indices = @transform_0, window_bounds = array<i64: 32, 32>}, {transform_indices = @transform_1, window_bounds = array<i64: 32, 64>}, {transform_indices = @transform_2, window_bounds = array<i64: 1, 64>}, {transform_indices = @transform_3, window_bounds = array<i64: 32, 64>}]} {
    %c0 = arith.constant 0 : index
    %c0_0 = arith.constant 0 : index
    %0 = vector.load %arg2[%c0, %c0_0] : memref<32x32xbf16, #tpu.memory_space<vmem>>, vector<32x32xbf16>
    %c0_1 = arith.constant 0 : index
    %c0_2 = arith.constant 0 : index
    %1 = vector.load %arg3[%c0_1, %c0_2] : memref<32x64xbf16, #tpu.memory_space<vmem>>, vector<32x64xbf16>
    %cst = arith.constant dense<0.000000e+00> : vector<32x64xf32>
    %2 = tpu.matmul %0, %1, %cst {dimension_numbers = #tpu.dot_dimension_numbers<[1], [0], [0], [1], [0, 0, 1, 1], [], []>} : vector<32x32xbf16>, vector<32x64xbf16>, vector<32x64xf32> -> vector<32x64xf32>
    %c0_3 = arith.constant 0 : index
    %c0_4 = arith.constant 0 : index
    %3 = vector.load %arg4[%c0_3, %c0_4] : memref<1x64xf32, #tpu.memory_space<vmem>>, vector<1x64xf32>
    %4 = vector.broadcast %3 : vector<1x64xf32> to vector<32x64xf32>
    %5 = arith.addf %2, %4 : vector<32x64xf32>
    %6 = arith.truncf %5 : vector<32x64xf32> to vector<32x64xbf16>
    %c0_5 = arith.constant 0 : index
    %c0_6 = arith.constant 0 : index
    %7 = vector.load %arg5[%c0_5, %c0_6] : memref<32x64xbf16, #tpu.memory_space<vmem>>, vector<32x64xbf16>
    tpu.vector_store %arg5[%c0_5, %c0_6], %6 {strides = array<i32>} : memref<32x64xbf16, #tpu.memory_space<vmem>>, vector<32x64xbf16>,
    return
  }
  func.func @transform_0(%arg0: i32, %arg1: i32) -> (i32, i32) {
    %c0_i32 = arith.constant 0 : i32
    %c0_i32_0 = arith.constant 0 : i32
    return %arg0, %c0_i32 : i32, i32
  }
  func.func @transform_1(%arg0: i32, %arg1: i32) -> (i32, i32) {
    %c0_i32 = arith.constant 0 : i32
    %c0_i32_0 = arith.constant 0 : i32
    return %c0_i32, %arg1 : i32, i32
  }
  func.func @transform_2(%arg0: i32, %arg1: i32) -> (i32, i32) {
    %c0_i32 = arith.constant 0 : i32
    %c0_i32_0 = arith.constant 0 : i32
    return %c0_i32, %arg1 : i32, i32
  }
  func.func @transform_3(%arg0: i32, %arg1: i32) -> (i32, i32) {
    %c0_i32 = arith.constant 0 : i32
    return %arg0, %arg1 : i32, i32
  }
}

module attributes {stable_mosaic.version = 11 : i64} {
  func.func @_linear_kernel(%arg0: i32, %arg1: i32, %arg2: memref<16x32xbf16, #tpu.memory_space<vmem>>, %arg3: memref<16x32xbf16, #tpu.memory_space<vmem>>, %arg4: memref<32x32xbf16, #tpu.memory_space<vmem>>, %arg5: memref<1x32xf32, #tpu.memory_space<vmem>>, %arg6: memref<16x32xbf16, #tpu.memory_space<vmem>>) attributes {dimension_semantics = [#tpu.dimension_semantics<parallel>, #tpu.dimension_semantics<parallel>], iteration_bounds = array<i64: 1, 1>, scalar_prefetch = 0 : i64, scratch_operands = 0 : i64, tpu.core_type = #tpu.core_type<tc>, window_params = [{transform_indices = @transform_0, window_bounds = array<i64: 16, 32>}, {transform_indices = @transform_1, window_bounds = array<i64: 16, 32>}, {transform_indices = @transform_2, window_bounds = array<i64: 32, 32>}, {transform_indices = @transform_3, window_bounds = array<i64: 1, 32>}, {transform_indices = @transform_4, window_bounds = array<i64: 16, 32>}]} {
    %c0 = arith.constant 0 : index
    %c0_0 = arith.constant 0 : index
    %0 = vector.load %arg2[%c0, %c0_0] : memref<16x32xbf16, #tpu.memory_space<vmem>>, vector<16x32xbf16>
    %c0_1 = arith.constant 0 : index
    %c0_2 = arith.constant 0 : index
    %1 = vector.load %arg3[%c0_1, %c0_2] : memref<16x32xbf16, #tpu.memory_space<vmem>>, vector<16x32xbf16>
    %2 = arith.addf %0, %1 : vector<16x32xbf16>
    %c0_3 = arith.constant 0 : index
    %c0_4 = arith.constant 0 : index
    %3 = vector.load %arg4[%c0_3, %c0_4] : memref<32x32xbf16, #tpu.memory_space<vmem>>, vector<32x32xbf16>
    %cst = arith.constant dense<0.000000e+00> : vector<16x32xf32>
    %4 = tpu.matmul %2, %3, %cst {dimension_numbers = #tpu.dot_dimension_numbers<[1], [0], [0], [1], [0, 0, 1, 1], [], []>} : vector<16x32xbf16>, vector<32x32xbf16>, vector<16x32xf32> -> vector<16x32xf32>
    %c0_5 = arith.constant 0 : index
    %c0_6 = arith.constant 0 : index
    %5 = vector.load %arg5[%c0_5, %c0_6] : memref<1x32xf32, #tpu.memory_space<vmem>>, vector<1x32xf32>
    %6 = vector.broadcast %5 : vector<1x32xf32> to vector<16x32xf32>
    %7 = arith.addf %4, %6 : vector<16x32xf32>
    %8 = arith.truncf %7 : vector<16x32xf32> to vector<16x32xbf16>
    %c0_7 = arith.constant 0 : index
    %c0_8 = arith.constant 0 : index
    %9 = vector.load %arg6[%c0_7, %c0_8] : memref<16x32xbf16, #tpu.memory_space<vmem>>, vector<16x32xbf16>
    tpu.vector_store %arg6[%c0_7, %c0_8], %8 {strides = array<i32>} : memref<16x32xbf16, #tpu.memory_space<vmem>>, vector<16x32xbf16>,
    return
  }
  func.func @transform_0(%arg0: i32, %arg1: i32) -> (i32, i32) {
    %c0_i32 = arith.constant 0 : i32
    %c0_i32_0 = arith.constant 0 : i32
    return %arg0, %c0_i32 : i32, i32
  }
  func.func @transform_1(%arg0: i32, %arg1: i32) -> (i32, i32) {
    %c0_i32 = arith.constant 0 : i32
    %c0_i32_0 = arith.constant 0 : i32
    return %arg0, %c0_i32 : i32, i32
  }
  func.func @transform_2(%arg0: i32, %arg1: i32) -> (i32, i32) {
    %c0_i32 = arith.constant 0 : i32
    %c0_i32_0 = arith.constant 0 : i32
    return %c0_i32, %arg1 : i32, i32
  }
  func.func @transform_3(%arg0: i32, %arg1: i32) -> (i32, i32) {
    %c0_i32 = arith.constant 0 : i32
    %c0_i32_0 = arith.constant 0 : i32
    return %c0_i32, %arg1 : i32, i32
  }
  func.func @transform_4(%arg0: i32, %arg1: i32) -> (i32, i32) {
    %c0_i32 = arith.constant 0 : i32
    return %arg0, %arg1 : i32, i32
  }
}

module attributes {stable_mosaic.version = 11 : i64} {
  func.func @_linear_kernel(%arg0: i32, %arg1: i32, %arg2: memref<16x32xbf16, #tpu.memory_space<vmem>>, %arg3: memref<32x32xbf16, #tpu.memory_space<vmem>>, %arg4: memref<1x32xf32, #tpu.memory_space<vmem>>, %arg5: memref<16x32xbf16, #tpu.memory_space<vmem>>) attributes {dimension_semantics = [#tpu.dimension_semantics<parallel>, #tpu.dimension_semantics<parallel>], iteration_bounds = array<i64: 1, 1>, scalar_prefetch = 0 : i64, scratch_operands = 0 : i64, tpu.core_type = #tpu.core_type<tc>, window_params = [{transform_indices = @transform_0, window_bounds = array<i64: 16, 32>}, {transform_indices = @transform_1, window_bounds = array<i64: 32, 32>}, {transform_indices = @transform_2, window_bounds = array<i64: 1, 32>}, {transform_indices = @transform_3, window_bounds = array<i64: 16, 32>}]} {
    %c0 = arith.constant 0 : index
    %c0_0 = arith.constant 0 : index
    %0 = vector.load %arg2[%c0, %c0_0] : memref<16x32xbf16, #tpu.memory_space<vmem>>, vector<16x32xbf16>
    %c0_1 = arith.constant 0 : index
    %c0_2 = arith.constant 0 : index
    %1 = vector.load %arg3[%c0_1, %c0_2] : memref<32x32xbf16, #tpu.memory_space<vmem>>, vector<32x32xbf16>
    %cst = arith.constant dense<0.000000e+00> : vector<16x32xf32>
    %2 = tpu.matmul %0, %1, %cst {dimension_numbers = #tpu.dot_dimension_numbers<[1], [0], [0], [1], [0, 0, 1, 1], [], []>} : vector<16x32xbf16>, vector<32x32xbf16>, vector<16x32xf32> -> vector<16x32xf32>
    %c0_3 = arith.constant 0 : index
    %c0_4 = arith.constant 0 : index
    %3 = vector.load %arg4[%c0_3, %c0_4] : memref<1x32xf32, #tpu.memory_space<vmem>>, vector<1x32xf32>
    %4 = vector.broadcast %3 : vector<1x32xf32> to vector<16x32xf32>
    %5 = arith.addf %2, %4 : vector<16x32xf32>
    %cst_5 = arith.constant 0.000000e+00 : f32
    %6 = vector.broadcast %cst_5 : f32 to vector<16x32xf32>
    %7 = arith.maximumf %5, %6 : vector<16x32xf32>
    %8 = arith.truncf %7 : vector<16x32xf32> to vector<16x32xbf16>
    %c0_6 = arith.constant 0 : index
    %c0_7 = arith.constant 0 : index
    %9 = vector.load %arg5[%c0_6, %c0_7] : memref<16x32xbf16, #tpu.memory_space<vmem>>, vector<16x32xbf16>
    tpu.vector_store %arg5[%c0_6, %c0_7], %8 {strides = array<i32>} : memref<16x32xbf16, #tpu.memory_space<vmem>>, vector<16x32xbf16>,
    return
  }
  func.func @transform_0(%arg0: i32, %arg1: i32) -> (i32, i32) {
    %c0_i32 = arith.constant 0 : i32
    %c0_i32_0 = arith.constant 0 : i32
    return %arg0, %c0_i32 : i32, i32
  }
  func.func @transform_1(%arg0: i32, %arg1: i32) -> (i32, i32) {
    %c0_i32 = arith.constant 0 : i32
    %c0_i32_0 = arith.constant 0 : i32
    return %c0_i32, %arg1 : i32, i32
  }
  func.func @transform_2(%arg0: i32, %arg1: i32) -> (i32, i32) {
    %c0_i32 = arith.constant 0 : i32
    %c0_i32_0 = arith.constant 0 : i32
    return %c0_i32, %arg1 : i32, i32
  }
  func.func @transform_3(%arg0: i32, %arg1: i32) -> (i32, i32) {
    %c0_i32 = arith.constant 0 : i32
    return %arg0, %arg1 : i32, i32
  }
}

module attributes {stable_mosaic.version = 11 : i64} {
  func.func @_ffn_ln_kernel(%arg0: i32, %arg1: memref<16x32xbf16, #tpu.memory_space<vmem>>, %arg2: memref<32x64xbf16, #tpu.memory_space<vmem>>, %arg3: memref<1x64xf32, #tpu.memory_space<vmem>>, %arg4: memref<64x32xbf16, #tpu.memory_space<vmem>>, %arg5: memref<1x32xf32, #tpu.memory_space<vmem>>, %arg6: memref<1x32xf32, #tpu.memory_space<vmem>>, %arg7: memref<1x32xf32, #tpu.memory_space<vmem>>, %arg8: memref<16x32xbf16, #tpu.memory_space<vmem>>) attributes {dimension_semantics = [#tpu.dimension_semantics<parallel>], iteration_bounds = array<i64: 1>, scalar_prefetch = 0 : i64, scratch_operands = 0 : i64, tpu.core_type = #tpu.core_type<tc>, window_params = [{transform_indices = @transform_0, window_bounds = array<i64: 16, 32>}, {pipeline_mode = #tpu.pipeline_mode<synchronous>, transform_indices = @transform_1, window_bounds = array<i64: 32, 64>}, {pipeline_mode = #tpu.pipeline_mode<synchronous>, transform_indices = @transform_2, window_bounds = array<i64: 1, 64>}, {pipeline_mode = #tpu.pipeline_mode<synchronous>, transform_indices = @transform_3, window_bounds = array<i64: 64, 32>}, {pipeline_mode = #tpu.pipeline_mode<synchronous>, transform_indices = @transform_4, window_bounds = array<i64: 1, 32>}, {pipeline_mode = #tpu.pipeline_mode<synchronous>, transform_indices = @transform_5, window_bounds = array<i64: 1, 32>}, {pipeline_mode = #tpu.pipeline_mode<synchronous>, transform_indices = @transform_6, window_bounds = array<i64: 1, 32>}, {transform_indices = @transform_7, window_bounds = array<i64: 16, 32>}]} {
    %c0 = arith.constant 0 : index
    %c0_0 = arith.constant 0 : index
    %0 = vector.load %arg1[%c0, %c0_0] : memref<16x32xbf16, #tpu.memory_space<vmem>>, vector<16x32xbf16>
    %c0_1 = arith.constant 0 : index
    %c0_2 = arith.constant 0 : index
    %1 = vector.load %arg2[%c0_1, %c0_2] : memref<32x64xbf16, #tpu.memory_space<vmem>>, vector<32x64xbf16>
    %cst = arith.constant dense<0.000000e+00> : vector<16x64xf32>
    %2 = tpu.matmul %0, %1, %cst {dimension_numbers = #tpu.dot_dimension_numbers<[1], [0], [0], [1], [0, 0, 1, 1], [], []>} : vector<16x32xbf16>, vector<32x64xbf16>, vector<16x64xf32> -> vector<16x64xf32>
    %c0_3 = arith.constant 0 : index
    %c0_4 = arith.constant 0 : index
    %3 = vector.load %arg3[%c0_3, %c0_4] : memref<1x64xf32, #tpu.memory_space<vmem>>, vector<1x64xf32>
    %4 = vector.broadcast %3 : vector<1x64xf32> to vector<16x64xf32>
    %5 = arith.addf %2, %4 : vector<16x64xf32>
    %cst_5 = arith.constant 0.000000e+00 : f32
    %6 = vector.broadcast %cst_5 : f32 to vector<16x64xf32>
    %7 = arith.maximumf %5, %6 : vector<16x64xf32>
    %8 = arith.truncf %7 : vector<16x64xf32> to vector<16x64xbf16>
    %c0_6 = arith.constant 0 : index
    %c0_7 = arith.constant 0 : index
    %9 = vector.load %arg4[%c0_6, %c0_7] : memref<64x32xbf16, #tpu.memory_space<vmem>>, vector<64x32xbf16>
    %cst_8 = arith.constant dense<0.000000e+00> : vector<16x32xf32>
    %10 = tpu.matmul %8, %9, %cst_8 {dimension_numbers = #tpu.dot_dimension_numbers<[1], [0], [0], [1], [0, 0, 1, 1], [], []>} : vector<16x64xbf16>, vector<64x32xbf16>, vector<16x32xf32> -> vector<16x32xf32>
    %c0_9 = arith.constant 0 : index
    %c0_10 = arith.constant 0 : index
    %11 = vector.load %arg5[%c0_9, %c0_10] : memref<1x32xf32, #tpu.memory_space<vmem>>, vector<1x32xf32>
    %12 = vector.broadcast %11 : vector<1x32xf32> to vector<16x32xf32>
    %13 = arith.addf %10, %12 : vector<16x32xf32>
    %14 = arith.extf %0 : vector<16x32xbf16> to vector<16x32xf32>
    %15 = arith.addf %13, %14 : vector<16x32xf32>
    %cst_11 = arith.constant dense<0.000000e+00> : vector<16xf32>
    %16 = vector.multi_reduction <add>, %15, %cst_11 [1] : vector<16x32xf32> to vector<16xf32>
    %17 = vector.shape_cast %16 : vector<16xf32> to vector<16x1xf32>
    %cst_12 = arith.constant 3.200000e+01 : f32
    %18 = vector.broadcast %cst_12 : f32 to vector<16x1xf32>
    %19 = arith.divf %17, %18 : vector<16x1xf32>
    %20 = vector.broadcast %19 : vector<16x1xf32> to vector<16x32xf32>
    %21 = arith.subf %15, %20 : vector<16x32xf32>
    %22 = arith.mulf %21, %21 : vector<16x32xf32>
    %cst_13 = arith.constant dense<0.000000e+00> : vector<16xf32>
    %23 = vector.multi_reduction <add>, %22, %cst_13 [1] : vector<16x32xf32> to vector<16xf32>
    %24 = vector.shape_cast %23 : vector<16xf32> to vector<16x1xf32>
    %cst_14 = arith.constant 3.200000e+01 : f32
    %25 = vector.broadcast %cst_14 : f32 to vector<16x1xf32>
    %26 = arith.divf %24, %25 : vector<16x1xf32>
    %27 = vector.broadcast %19 : vector<16x1xf32> to vector<16x32xf32>
    %28 = arith.subf %15, %27 : vector<16x32xf32>
    %cst_15 = arith.constant 9.99999974E-6 : f32
    %29 = vector.broadcast %cst_15 : f32 to vector<16x1xf32>
    %30 = arith.addf %26, %29 : vector<16x1xf32>
    %31 = math.rsqrt %30 : vector<16x1xf32>
    %32 = vector.broadcast %31 : vector<16x1xf32> to vector<16x32xf32>
    %33 = arith.mulf %28, %32 : vector<16x32xf32>
    %c0_16 = arith.constant 0 : index
    %c0_17 = arith.constant 0 : index
    %34 = vector.load %arg6[%c0_16, %c0_17] : memref<1x32xf32, #tpu.memory_space<vmem>>, vector<1x32xf32>
    %35 = vector.broadcast %34 : vector<1x32xf32> to vector<16x32xf32>
    %36 = arith.mulf %33, %35 : vector<16x32xf32>
    %c0_18 = arith.constant 0 : index
    %c0_19 = arith.constant 0 : index
    %37 = vector.load %arg7[%c0_18, %c0_19] : memref<1x32xf32, #tpu.memory_space<vmem>>, vector<1x32xf32>
    %38 = vector.broadcast %37 : vector<1x32xf32> to vector<16x32xf32>
    %39 = arith.addf %36, %38 : vector<16x32xf32>
    %40 = arith.truncf %39 : vector<16x32xf32> to vector<16x32xbf16>
    %c0_20 = arith.constant 0 : index
    %c0_21 = arith.constant 0 : index
    %41 = vector.load %arg8[%c0_20, %c0_21] : memref<16x32xbf16, #tpu.memory_space<vmem>>, vector<16x32xbf16>
    tpu.vector_store %arg8[%c0_20, %c0_21], %40 {strides = array<i32>} : memref<16x32xbf16, #tpu.memory_space<vmem>>, vector<16x32xbf16>,
    return
  }
  func.func @transform_0(%arg0: i32) -> (i32, i32) {
    %c0_i32 = arith.constant 0 : i32
    %c0_i32_0 = arith.constant 0 : i32
    return %arg0, %c0_i32 : i32, i32
  }
  func.func @transform_1(%arg0: i32) -> (i32, i32) {
    %c0_i32 = arith.constant 0 : i32
    %c0_i32_0 = arith.constant 0 : i32
    %c0_i32_1 = arith.constant 0 : i32
    return %c0_i32, %c0_i32_0 : i32, i32
  }
  func.func @transform_2(%arg0: i32) -> (i32, i32) {
    %c0_i32 = arith.constant 0 : i32
    %c0_i32_0 = arith.constant 0 : i32
    %c0_i32_1 = arith.constant 0 : i32
    return %c0_i32, %c0_i32_0 : i32, i32
  }
  func.func @transform_3(%arg0: i32) -> (i32, i32) {
    %c0_i32 = arith.constant 0 : i32
    %c0_i32_0 = arith.constant 0 : i32
    %c0_i32_1 = arith.constant 0 : i32
    return %c0_i32, %c0_i32_0 : i32, i32
  }
  func.func @transform_4(%arg0: i32) -> (i32, i32) {
    %c0_i32 = arith.constant 0 : i32
    %c0_i32_0 = arith.constant 0 : i32
    %c0_i32_1 = arith.constant 0 : i32
    return %c0_i32, %c0_i32_0 : i32, i32
  }
  func.func @transform_5(%arg0: i32) -> (i32, i32) {
    %c0_i32 = arith.constant 0 : i32
    %c0_i32_0 = arith.constant 0 : i32
    %c0_i32_1 = arith.constant 0 : i32
    return %c0_i32, %c0_i32_0 : i32, i32
  }
  func.func @transform_6(%arg0: i32) -> (i32, i32) {
    %c0_i32 = arith.constant 0 : i32
    %c0_i32_0 = arith.constant 0 : i32
    %c0_i32_1 = arith.constant 0 : i32
    return %c0_i32, %c0_i32_0 : i32, i32
  }
  func.func @transform_7(%arg0: i32) -> (i32, i32) {
    %c0_i32 = arith.constant 0 : i32
    %c0_i32_0 = arith.constant 0 : i32
    return %arg0, %c0_i32 : i32, i32
  }
}

module attributes {stable_mosaic.version = 11 : i64} {
  func.func @_flash_mha_kernel(%arg0: i32, %arg1: i32, %arg2: memref<1x8x32xbf16, #tpu.memory_space<vmem>>, %arg3: memref<1x16x32xbf16, #tpu.memory_space<vmem>>, %arg4: memref<1x16x32xbf16, #tpu.memory_space<vmem>>, %arg5: memref<1x8x32xbf16, #tpu.memory_space<vmem>>, %arg6: memref<4x8x1xf32, #tpu.memory_space<vmem>>, %arg7: memref<4x8x1xf32, #tpu.memory_space<vmem>>, %arg8: memref<4x8x8xf32, #tpu.memory_space<vmem>>) attributes {dimension_semantics = [#tpu.dimension_semantics<parallel>, #tpu.dimension_semantics<arbitrary>], iteration_bounds = array<i64: 2, 1>, scalar_prefetch = 0 : i64, scratch_operands = 3 : i64, tpu.core_type = #tpu.core_type<tc>, window_params = [{transform_indices = @transform_0, window_bounds = array<i64: 1, 8, 32>}, {transform_indices = @transform_1, window_bounds = array<i64: 1, 16, 32>}, {transform_indices = @transform_2, window_bounds = array<i64: 1, 16, 32>}, {transform_indices = @transform_3, window_bounds = array<i64: 1, 8, 32>}]} {
    %c0_i32 = arith.constant 0 : i32
    %0 = arith.cmpi eq, %arg1, %c0_i32 : i32
    %1 = arith.extui %0 : i1 to i32
    %c0_i32_0 = arith.constant 0 : i32
    %2 = arith.cmpi ne, %1, %c0_i32_0 : i32
    scf.if %2 {
      %cst_99 = arith.constant -1.000000e+30 : f32
      %164 = vector.broadcast %cst_99 : f32 to vector<4x8x1xf32>
      %c0_100 = arith.constant 0 : index
      %c0_101 = arith.constant 0 : index
      %c0_102 = arith.constant 0 : index
      %165 = vector.load %arg6[%c0_100, %c0_101, %c0_102] : memref<4x8x1xf32, #tpu.memory_space<vmem>>, vector<4x8x1xf32>
      tpu.vector_store %arg6[%c0_100, %c0_101, %c0_102], %164 {strides = array<i32>} : memref<4x8x1xf32, #tpu.memory_space<vmem>>, vector<4x8x1xf32>,
      %cst_103 = arith.constant 0.000000e+00 : f32
      %166 = vector.broadcast %cst_103 : f32 to vector<4x8x1xf32>
      %c0_104 = arith.constant 0 : index
      %c0_105 = arith.constant 0 : index
      %c0_106 = arith.constant 0 : index
      %167 = vector.load %arg7[%c0_104, %c0_105, %c0_106] : memref<4x8x1xf32, #tpu.memory_space<vmem>>, vector<4x8x1xf32>
      tpu.vector_store %arg7[%c0_104, %c0_105, %c0_106], %166 {strides = array<i32>} : memref<4x8x1xf32, #tpu.memory_space<vmem>>, vector<4x8x1xf32>,
      %cst_107 = arith.constant 0.000000e+00 : f32
      %168 = vector.broadcast %cst_107 : f32 to vector<4x8x8xf32>
      %c0_108 = arith.constant 0 : index
      %c0_109 = arith.constant 0 : index
      %c0_110 = arith.constant 0 : index
      %169 = vector.load %arg8[%c0_108, %c0_109, %c0_110] : memref<4x8x8xf32, #tpu.memory_space<vmem>>, vector<4x8x8xf32>
      tpu.vector_store %arg8[%c0_108, %c0_109, %c0_110], %168 {strides = array<i32>} : memref<4x8x8xf32, #tpu.memory_space<vmem>>, vector<4x8x8xf32>,
    } else {
    }
    %c0 = arith.constant 0 : index
    %c0_1 = arith.constant 0 : index
    %c0_2 = arith.constant 0 : index
    %3 = vector.load %arg2[%c0, %c0_1, %c0_2] : memref<1x8x32xbf16, #tpu.memory_space<vmem>>, vector<1x8x32xbf16>
    %4 = vector.shape_cast %3 : vector<1x8x32xbf16> to vector<8x32xbf16>
    %c0_3 = arith.constant 0 : index
    %c0_4 = arith.constant 0 : index
    %c0_5 = arith.constant 0 : index
    %5 = vector.load %arg3[%c0_3, %c0_4, %c0_5] : memref<1x16x32xbf16, #tpu.memory_space<vmem>>, vector<1x16x32xbf16>
    %6 = vector.shape_cast %5 : vector<1x16x32xbf16> to vector<16x32xbf16>
    %c0_6 = arith.constant 0 : index
    %c0_7 = arith.constant 0 : index
    %c0_8 = arith.constant 0 : index
    %7 = vector.load %arg4[%c0_6, %c0_7, %c0_8] : memref<1x16x32xbf16, #tpu.memory_space<vmem>>, vector<1x16x32xbf16>
    %8 = vector.shape_cast %7 : vector<1x16x32xbf16> to vector<16x32xbf16>
    %9 = vector.extract_strided_slice %4 {offsets = [0, 0], sizes = [8, 8], strides = [1, 1]} : vector<8x32xbf16> to vector<8x8xbf16>
    %10 = vector.extract_strided_slice %6 {offsets = [0, 0], sizes = [16, 8], strides = [1, 1]} : vector<16x32xbf16> to vector<16x8xbf16>
    %11 = vector.extract_strided_slice %8 {offsets = [0, 0], sizes = [16, 8], strides = [1, 1]} : vector<16x32xbf16> to vector<16x8xbf16>
    %cst = arith.constant dense<0.000000e+00> : vector<8x16xf32>
    %12 = tpu.matmul %9, %10, %cst {dimension_numbers = #tpu.dot_dimension_numbers<[1], [1], [0], [0], [0, 0, 1, 0], [], []>} : vector<8x8xbf16>, vector<16x8xbf16>, vector<8x16xf32> -> vector<8x16xf32>
    %cst_9 = arith.constant 0.353553385 : f32
    %13 = vector.broadcast %cst_9 : f32 to vector<8x16xf32>
    %14 = arith.mulf %12, %13 : vector<8x16xf32>
    %c0_10 = arith.constant 0 : index
    %c0_11 = arith.constant 0 : index
    %c0_12 = arith.constant 0 : index
    %15 = vector.load %arg6[%c0_10, %c0_11, %c0_12] : memref<4x8x1xf32, #tpu.memory_space<vmem>>, vector<1x8x1xf32>
    %16 = vector.shape_cast %15 : vector<1x8x1xf32> to vector<8x1xf32>
    %cst_13 = arith.constant dense<0xFF800000> : vector<8xf32>
    %17 = vector.multi_reduction <maximumf>, %14, %cst_13 [1] : vector<8x16xf32> to vector<8xf32>
    %18 = vector.shape_cast %17 : vector<8xf32> to vector<8x1xf32>
    %19 = arith.maximumf %16, %18 : vector<8x1xf32>
    %20 = arith.subf %16, %19 : vector<8x1xf32>
    %21 = math.exp %20 : vector<8x1xf32>
    %22 = vector.broadcast %19 : vector<8x1xf32> to vector<8x16xf32>
    %23 = arith.subf %14, %22 : vector<8x16xf32>
    %24 = math.exp %23 : vector<8x16xf32>
    %c0_14 = arith.constant 0 : index
    %c0_15 = arith.constant 0 : index
    %c0_16 = arith.constant 0 : index
    %25 = vector.load %arg7[%c0_14, %c0_15, %c0_16] : memref<4x8x1xf32, #tpu.memory_space<vmem>>, vector<1x8x1xf32>
    %26 = vector.shape_cast %25 : vector<1x8x1xf32> to vector<8x1xf32>
    %27 = arith.mulf %21, %26 : vector<8x1xf32>
    %cst_17 = arith.constant dense<0.000000e+00> : vector<8xf32>
    %28 = vector.multi_reduction <add>, %24, %cst_17 [1] : vector<8x16xf32> to vector<8xf32>
    %29 = vector.shape_cast %28 : vector<8xf32> to vector<8x1xf32>
    %30 = arith.addf %27, %29 : vector<8x1xf32>
    %c0_18 = arith.constant 0 : index
    %c0_19 = arith.constant 0 : index
    %c0_20 = arith.constant 0 : index
    %31 = vector.load %arg7[%c0_18, %c0_19, %c0_20] : memref<4x8x1xf32, #tpu.memory_space<vmem>>, vector<1x8x1xf32>
    %32 = vector.shape_cast %31 : vector<1x8x1xf32> to vector<8x1xf32>
    %33 = vector.shape_cast %30 : vector<8x1xf32> to vector<1x8x1xf32>
    tpu.vector_store %arg7[%c0_18, %c0_19, %c0_20], %33 {strides = array<i32>} : memref<4x8x1xf32, #tpu.memory_space<vmem>>, vector<1x8x1xf32>,
    %c0_21 = arith.constant 0 : index
    %c0_22 = arith.constant 0 : index
    %c0_23 = arith.constant 0 : index
    %34 = vector.load %arg8[%c0_21, %c0_22, %c0_23] : memref<4x8x8xf32, #tpu.memory_space<vmem>>, vector<1x8x8xf32>
    %35 = vector.shape_cast %34 : vector<1x8x8xf32> to vector<8x8xf32>
    %36 = vector.broadcast %21 : vector<8x1xf32> to vector<8x8xf32>
    %37 = arith.mulf %36, %35 : vector<8x8xf32>
    %38 = arith.truncf %24 : vector<8x16xf32> to vector<8x16xbf16>
    %cst_24 = arith.constant dense<0.000000e+00> : vector<8x8xf32>
    %39 = tpu.matmul %38, %11, %cst_24 {dimension_numbers = #tpu.dot_dimension_numbers<[1], [0], [0], [1], [0, 0, 1, 1], [], []>} : vector<8x16xbf16>, vector<16x8xbf16>, vector<8x8xf32> -> vector<8x8xf32>
    %40 = arith.addf %37, %39 : vector<8x8xf32>
    %c0_25 = arith.constant 0 : index
    %c0_26 = arith.constant 0 : index
    %c0_27 = arith.constant 0 : index
    %41 = vector.load %arg8[%c0_25, %c0_26, %c0_27] : memref<4x8x8xf32, #tpu.memory_space<vmem>>, vector<1x8x8xf32>
    %42 = vector.shape_cast %41 : vector<1x8x8xf32> to vector<8x8xf32>
    %43 = vector.shape_cast %40 : vector<8x8xf32> to vector<1x8x8xf32>
    tpu.vector_store %arg8[%c0_25, %c0_26, %c0_27], %43 {strides = array<i32>} : memref<4x8x8xf32, #tpu.memory_space<vmem>>, vector<1x8x8xf32>,
    %c0_28 = arith.constant 0 : index
    %c0_29 = arith.constant 0 : index
    %c0_30 = arith.constant 0 : index
    %44 = vector.load %arg6[%c0_28, %c0_29, %c0_30] : memref<4x8x1xf32, #tpu.memory_space<vmem>>, vector<1x8x1xf32>
    %45 = vector.shape_cast %44 : vector<1x8x1xf32> to vector<8x1xf32>
    %46 = vector.shape_cast %19 : vector<8x1xf32> to vector<1x8x1xf32>
    tpu.vector_store %arg6[%c0_28, %c0_29, %c0_30], %46 {strides = array<i32>} : memref<4x8x1xf32, #tpu.memory_space<vmem>>, vector<1x8x1xf32>,
    %47 = vector.extract_strided_slice %4 {offsets = [0, 8], sizes = [8, 8], strides = [1, 1]} : vector<8x32xbf16> to vector<8x8xbf16>
    %48 = vector.extract_strided_slice %6 {offsets = [0, 8], sizes = [16, 8], strides = [1, 1]} : vector<16x32xbf16> to vector<16x8xbf16>
    %49 = vector.extract_strided_slice %8 {offsets = [0, 8], sizes = [16, 8], strides = [1, 1]} : vector<16x32xbf16> to vector<16x8xbf16>
    %cst_31 = arith.constant dense<0.000000e+00> : vector<8x16xf32>
    %50 = tpu.matmul %47, %48, %cst_31 {dimension_numbers = #tpu.dot_dimension_numbers<[1], [1], [0], [0], [0, 0, 1, 0], [], []>} : vector<8x8xbf16>, vector<16x8xbf16>, vector<8x16xf32> -> vector<8x16xf32>
    %cst_32 = arith.constant 0.353553385 : f32
    %51 = vector.broadcast %cst_32 : f32 to vector<8x16xf32>
    %52 = arith.mulf %50, %51 : vector<8x16xf32>
    %c1 = arith.constant 1 : index
    %c0_33 = arith.constant 0 : index
    %c0_34 = arith.constant 0 : index
    %53 = vector.load %arg6[%c1, %c0_33, %c0_34] : memref<4x8x1xf32, #tpu.memory_space<vmem>>, vector<1x8x1xf32>
    %54 = vector.shape_cast %53 : vector<1x8x1xf32> to vector<8x1xf32>
    %cst_35 = arith.constant dense<0xFF800000> : vector<8xf32>
    %55 = vector.multi_reduction <maximumf>, %52, %cst_35 [1] : vector<8x16xf32> to vector<8xf32>
    %56 = vector.shape_cast %55 : vector<8xf32> to vector<8x1xf32>
    %57 = arith.maximumf %54, %56 : vector<8x1xf32>
    %58 = arith.subf %54, %57 : vector<8x1xf32>
    %59 = math.exp %58 : vector<8x1xf32>
    %60 = vector.broadcast %57 : vector<8x1xf32> to vector<8x16xf32>
    %61 = arith.subf %52, %60 : vector<8x16xf32>
    %62 = math.exp %61 : vector<8x16xf32>
    %c1_36 = arith.constant 1 : index
    %c0_37 = arith.constant 0 : index
    %c0_38 = arith.constant 0 : index
    %63 = vector.load %arg7[%c1_36, %c0_37, %c0_38] : memref<4x8x1xf32, #tpu.memory_space<vmem>>, vector<1x8x1xf32>
    %64 = vector.shape_cast %63 : vector<1x8x1xf32> to vector<8x1xf32>
    %65 = arith.mulf %59, %64 : vector<8x1xf32>
    %cst_39 = arith.constant dense<0.000000e+00> : vector<8xf32>
    %66 = vector.multi_reduction <add>, %62, %cst_39 [1] : vector<8x16xf32> to vector<8xf32>
    %67 = vector.shape_cast %66 : vector<8xf32> to vector<8x1xf32>
    %68 = arith.addf %65, %67 : vector<8x1xf32>
    %c1_40 = arith.constant 1 : index
    %c0_41 = arith.constant 0 : index
    %c0_42 = arith.constant 0 : index
    %69 = vector.load %arg7[%c1_40, %c0_41, %c0_42] : memref<4x8x1xf32, #tpu.memory_space<vmem>>, vector<1x8x1xf32>
    %70 = vector.shape_cast %69 : vector<1x8x1xf32> to vector<8x1xf32>
    %71 = vector.shape_cast %68 : vector<8x1xf32> to vector<1x8x1xf32>
    tpu.vector_store %arg7[%c1_40, %c0_41, %c0_42], %71 {strides = array<i32>} : memref<4x8x1xf32, #tpu.memory_space<vmem>>, vector<1x8x1xf32>,
    %c1_43 = arith.constant 1 : index
    %c0_44 = arith.constant 0 : index
    %c0_45 = arith.constant 0 : index
    %72 = vector.load %arg8[%c1_43, %c0_44, %c0_45] : memref<4x8x8xf32, #tpu.memory_space<vmem>>, vector<1x8x8xf32>
    %73 = vector.shape_cast %72 : vector<1x8x8xf32> to vector<8x8xf32>
    %74 = vector.broadcast %59 : vector<8x1xf32> to vector<8x8xf32>
    %75 = arith.mulf %74, %73 : vector<8x8xf32>
    %76 = arith.truncf %62 : vector<8x16xf32> to vector<8x16xbf16>
    %cst_46 = arith.constant dense<0.000000e+00> : vector<8x8xf32>
    %77 = tpu.matmul %76, %49, %cst_46 {dimension_numbers = #tpu.dot_dimension_numbers<[1], [0], [0], [1], [0, 0, 1, 1], [], []>} : vector<8x16xbf16>, vector<16x8xbf16>, vector<8x8xf32> -> vector<8x8xf32>
    %78 = arith.addf %75, %77 : vector<8x8xf32>
    %c1_47 = arith.constant 1 : index
    %c0_48 = arith.constant 0 : index
    %c0_49 = arith.constant 0 : index
    %79 = vector.load %arg8[%c1_47, %c0_48, %c0_49] : memref<4x8x8xf32, #tpu.memory_space<vmem>>, vector<1x8x8xf32>
    %80 = vector.shape_cast %79 : vector<1x8x8xf32> to vector<8x8xf32>
    %81 = vector.shape_cast %78 : vector<8x8xf32> to vector<1x8x8xf32>
    tpu.vector_store %arg8[%c1_47, %c0_48, %c0_49], %81 {strides = array<i32>} : memref<4x8x8xf32, #tpu.memory_space<vmem>>, vector<1x8x8xf32>,
    %c1_50 = arith.constant 1 : index
    %c0_51 = arith.constant 0 : index
    %c0_52 = arith.constant 0 : index
    %82 = vector.load %arg6[%c1_50, %c0_51, %c0_52] : memref<4x8x1xf32, #tpu.memory_space<vmem>>, vector<1x8x1xf32>
    %83 = vector.shape_cast %82 : vector<1x8x1xf32> to vector<8x1xf32>
    %84 = vector.shape_cast %57 : vector<8x1xf32> to vector<1x8x1xf32>
    tpu.vector_store %arg6[%c1_50, %c0_51, %c0_52], %84 {strides = array<i32>} : memref<4x8x1xf32, #tpu.memory_space<vmem>>, vector<1x8x1xf32>,
    %85 = vector.extract_strided_slice %4 {offsets = [0, 16], sizes = [8, 8], strides = [1, 1]} : vector<8x32xbf16> to vector<8x8xbf16>
    %86 = vector.extract_strided_slice %6 {offsets = [0, 16], sizes = [16, 8], strides = [1, 1]} : vector<16x32xbf16> to vector<16x8xbf16>
    %87 = vector.extract_strided_slice %8 {offsets = [0, 16], sizes = [16, 8], strides = [1, 1]} : vector<16x32xbf16> to vector<16x8xbf16>
    %cst_53 = arith.constant dense<0.000000e+00> : vector<8x16xf32>
    %88 = tpu.matmul %85, %86, %cst_53 {dimension_numbers = #tpu.dot_dimension_numbers<[1], [1], [0], [0], [0, 0, 1, 0], [], []>} : vector<8x8xbf16>, vector<16x8xbf16>, vector<8x16xf32> -> vector<8x16xf32>
    %cst_54 = arith.constant 0.353553385 : f32
    %89 = vector.broadcast %cst_54 : f32 to vector<8x16xf32>
    %90 = arith.mulf %88, %89 : vector<8x16xf32>
    %c2 = arith.constant 2 : index
    %c0_55 = arith.constant 0 : index
    %c0_56 = arith.constant 0 : index
    %91 = vector.load %arg6[%c2, %c0_55, %c0_56] : memref<4x8x1xf32, #tpu.memory_space<vmem>>, vector<1x8x1xf32>
    %92 = vector.shape_cast %91 : vector<1x8x1xf32> to vector<8x1xf32>
    %cst_57 = arith.constant dense<0xFF800000> : vector<8xf32>
    %93 = vector.multi_reduction <maximumf>, %90, %cst_57 [1] : vector<8x16xf32> to vector<8xf32>
    %94 = vector.shape_cast %93 : vector<8xf32> to vector<8x1xf32>
    %95 = arith.maximumf %92, %94 : vector<8x1xf32>
    %96 = arith.subf %92, %95 : vector<8x1xf32>
    %97 = math.exp %96 : vector<8x1xf32>
    %98 = vector.broadcast %95 : vector<8x1xf32> to vector<8x16xf32>
    %99 = arith.subf %90, %98 : vector<8x16xf32>
    %100 = math.exp %99 : vector<8x16xf32>
    %c2_58 = arith.constant 2 : index
    %c0_59 = arith.constant 0 : index
    %c0_60 = arith.constant 0 : index
    %101 = vector.load %arg7[%c2_58, %c0_59, %c0_60] : memref<4x8x1xf32, #tpu.memory_space<vmem>>, vector<1x8x1xf32>
    %102 = vector.shape_cast %101 : vector<1x8x1xf32> to vector<8x1xf32>
    %103 = arith.mulf %97, %102 : vector<8x1xf32>
    %cst_61 = arith.constant dense<0.000000e+00> : vector<8xf32>
    %104 = vector.multi_reduction <add>, %100, %cst_61 [1] : vector<8x16xf32> to vector<8xf32>
    %105 = vector.shape_cast %104 : vector<8xf32> to vector<8x1xf32>
    %106 = arith.addf %103, %105 : vector<8x1xf32>
    %c2_62 = arith.constant 2 : index
    %c0_63 = arith.constant 0 : index
    %c0_64 = arith.constant 0 : index
    %107 = vector.load %arg7[%c2_62, %c0_63, %c0_64] : memref<4x8x1xf32, #tpu.memory_space<vmem>>, vector<1x8x1xf32>
    %108 = vector.shape_cast %107 : vector<1x8x1xf32> to vector<8x1xf32>
    %109 = vector.shape_cast %106 : vector<8x1xf32> to vector<1x8x1xf32>
    tpu.vector_store %arg7[%c2_62, %c0_63, %c0_64], %109 {strides = array<i32>} : memref<4x8x1xf32, #tpu.memory_space<vmem>>, vector<1x8x1xf32>,
    %c2_65 = arith.constant 2 : index
    %c0_66 = arith.constant 0 : index
    %c0_67 = arith.constant 0 : index
    %110 = vector.load %arg8[%c2_65, %c0_66, %c0_67] : memref<4x8x8xf32, #tpu.memory_space<vmem>>, vector<1x8x8xf32>
    %111 = vector.shape_cast %110 : vector<1x8x8xf32> to vector<8x8xf32>
    %112 = vector.broadcast %97 : vector<8x1xf32> to vector<8x8xf32>
    %113 = arith.mulf %112, %111 : vector<8x8xf32>
    %114 = arith.truncf %100 : vector<8x16xf32> to vector<8x16xbf16>
    %cst_68 = arith.constant dense<0.000000e+00> : vector<8x8xf32>
    %115 = tpu.matmul %114, %87, %cst_68 {dimension_numbers = #tpu.dot_dimension_numbers<[1], [0], [0], [1], [0, 0, 1, 1], [], []>} : vector<8x16xbf16>, vector<16x8xbf16>, vector<8x8xf32> -> vector<8x8xf32>
    %116 = arith.addf %113, %115 : vector<8x8xf32>
    %c2_69 = arith.constant 2 : index
    %c0_70 = arith.constant 0 : index
    %c0_71 = arith.constant 0 : index
    %117 = vector.load %arg8[%c2_69, %c0_70, %c0_71] : memref<4x8x8xf32, #tpu.memory_space<vmem>>, vector<1x8x8xf32>
    %118 = vector.shape_cast %117 : vector<1x8x8xf32> to vector<8x8xf32>
    %119 = vector.shape_cast %116 : vector<8x8xf32> to vector<1x8x8xf32>
    tpu.vector_store %arg8[%c2_69, %c0_70, %c0_71], %119 {strides = array<i32>} : memref<4x8x8xf32, #tpu.memory_space<vmem>>, vector<1x8x8xf32>,
    %c2_72 = arith.constant 2 : index
    %c0_73 = arith.constant 0 : index
    %c0_74 = arith.constant 0 : index
    %120 = vector.load %arg6[%c2_72, %c0_73, %c0_74] : memref<4x8x1xf32, #tpu.memory_space<vmem>>, vector<1x8x1xf32>
    %121 = vector.shape_cast %120 : vector<1x8x1xf32> to vector<8x1xf32>
    %122 = vector.shape_cast %95 : vector<8x1xf32> to vector<1x8x1xf32>
    tpu.vector_store %arg6[%c2_72, %c0_73, %c0_74], %122 {strides = array<i32>} : memref<4x8x1xf32, #tpu.memory_space<vmem>>, vector<1x8x1xf32>,
    %123 = vector.extract_strided_slice %4 {offsets = [0, 24], sizes = [8, 8], strides = [1, 1]} : vector<8x32xbf16> to vector<8x8xbf16>
    %124 = vector.extract_strided_slice %6 {offsets = [0, 24], sizes = [16, 8], strides = [1, 1]} : vector<16x32xbf16> to vector<16x8xbf16>
    %125 = vector.extract_strided_slice %8 {offsets = [0, 24], sizes = [16, 8], strides = [1, 1]} : vector<16x32xbf16> to vector<16x8xbf16>
    %cst_75 = arith.constant dense<0.000000e+00> : vector<8x16xf32>
    %126 = tpu.matmul %123, %124, %cst_75 {dimension_numbers = #tpu.dot_dimension_numbers<[1], [1], [0], [0], [0, 0, 1, 0], [], []>} : vector<8x8xbf16>, vector<16x8xbf16>, vector<8x16xf32> -> vector<8x16xf32>
    %cst_76 = arith.constant 0.353553385 : f32
    %127 = vector.broadcast %cst_76 : f32 to vector<8x16xf32>
    %128 = arith.mulf %126, %127 : vector<8x16xf32>
    %c3 = arith.constant 3 : index
    %c0_77 = arith.constant 0 : index
    %c0_78 = arith.constant 0 : index
    %129 = vector.load %arg6[%c3, %c0_77, %c0_78] : memref<4x8x1xf32, #tpu.memory_space<vmem>>, vector<1x8x1xf32>
    %130 = vector.shape_cast %129 : vector<1x8x1xf32> to vector<8x1xf32>
    %cst_79 = arith.constant dense<0xFF800000> : vector<8xf32>
    %131 = vector.multi_reduction <maximumf>, %128, %cst_79 [1] : vector<8x16xf32> to vector<8xf32>
    %132 = vector.shape_cast %131 : vector<8xf32> to vector<8x1xf32>
    %133 = arith.maximumf %130, %132 : vector<8x1xf32>
    %134 = arith.subf %130, %133 : vector<8x1xf32>
    %135 = math.exp %134 : vector<8x1xf32>
    %136 = vector.broadcast %133 : vector<8x1xf32> to vector<8x16xf32>
    %137 = arith.subf %128, %136 : vector<8x16xf32>
    %138 = math.exp %137 : vector<8x16xf32>
    %c3_80 = arith.constant 3 : index
    %c0_81 = arith.constant 0 : index
    %c0_82 = arith.constant 0 : index
    %139 = vector.load %arg7[%c3_80, %c0_81, %c0_82] : memref<4x8x1xf32, #tpu.memory_space<vmem>>, vector<1x8x1xf32>
    %140 = vector.shape_cast %139 : vector<1x8x1xf32> to vector<8x1xf32>
    %141 = arith.mulf %135, %140 : vector<8x1xf32>
    %cst_83 = arith.constant dense<0.000000e+00> : vector<8xf32>
    %142 = vector.multi_reduction <add>, %138, %cst_83 [1] : vector<8x16xf32> to vector<8xf32>
    %143 = vector.shape_cast %142 : vector<8xf32> to vector<8x1xf32>
    %144 = arith.addf %141, %143 : vector<8x1xf32>
    %c3_84 = arith.constant 3 : index
    %c0_85 = arith.constant 0 : index
    %c0_86 = arith.constant 0 : index
    %145 = vector.load %arg7[%c3_84, %c0_85, %c0_86] : memref<4x8x1xf32, #tpu.memory_space<vmem>>, vector<1x8x1xf32>
    %146 = vector.shape_cast %145 : vector<1x8x1xf32> to vector<8x1xf32>
    %147 = vector.shape_cast %144 : vector<8x1xf32> to vector<1x8x1xf32>
    tpu.vector_store %arg7[%c3_84, %c0_85, %c0_86], %147 {strides = array<i32>} : memref<4x8x1xf32, #tpu.memory_space<vmem>>, vector<1x8x1xf32>,
    %c3_87 = arith.constant 3 : index
    %c0_88 = arith.constant 0 : index
    %c0_89 = arith.constant 0 : index
    %148 = vector.load %arg8[%c3_87, %c0_88, %c0_89] : memref<4x8x8xf32, #tpu.memory_space<vmem>>, vector<1x8x8xf32>
    %149 = vector.shape_cast %148 : vector<1x8x8xf32> to vector<8x8xf32>
    %150 = vector.broadcast %135 : vector<8x1xf32> to vector<8x8xf32>
    %151 = arith.mulf %150, %149 : vector<8x8xf32>
    %152 = arith.truncf %138 : vector<8x16xf32> to vector<8x16xbf16>
    %cst_90 = arith.constant dense<0.000000e+00> : vector<8x8xf32>
    %153 = tpu.matmul %152, %125, %cst_90 {dimension_numbers = #tpu.dot_dimension_numbers<[1], [0], [0], [1], [0, 0, 1, 1], [], []>} : vector<8x16xbf16>, vector<16x8xbf16>, vector<8x8xf32> -> vector<8x8xf32>
    %154 = arith.addf %151, %153 : vector<8x8xf32>
    %c3_91 = arith.constant 3 : index
    %c0_92 = arith.constant 0 : index
    %c0_93 = arith.constant 0 : index
    %155 = vector.load %arg8[%c3_91, %c0_92, %c0_93] : memref<4x8x8xf32, #tpu.memory_space<vmem>>, vector<1x8x8xf32>
    %156 = vector.shape_cast %155 : vector<1x8x8xf32> to vector<8x8xf32>
    %157 = vector.shape_cast %154 : vector<8x8xf32> to vector<1x8x8xf32>
    tpu.vector_store %arg8[%c3_91, %c0_92, %c0_93], %157 {strides = array<i32>} : memref<4x8x8xf32, #tpu.memory_space<vmem>>, vector<1x8x8xf32>,
    %c3_94 = arith.constant 3 : index
    %c0_95 = arith.constant 0 : index
    %c0_96 = arith.constant 0 : index
    %158 = vector.load %arg6[%c3_94, %c0_95, %c0_96] : memref<4x8x1xf32, #tpu.memory_space<vmem>>, vector<1x8x1xf32>
    %159 = vector.shape_cast %158 : vector<1x8x1xf32> to vector<8x1xf32>
    %160 = vector.shape_cast %133 : vector<8x1xf32> to vector<1x8x1xf32>
    tpu.vector_store %arg6[%c3_94, %c0_95, %c0_96], %160 {strides = array<i32>} : memref<4x8x1xf32, #tpu.memory_space<vmem>>, vector<1x8x1xf32>,
    %c0_i32_97 = arith.constant 0 : i32
    %161 = arith.cmpi eq, %arg1, %c0_i32_97 : i32
    %162 = arith.extui %161 : i1 to i32
    %c0_i32_98 = arith.constant 0 : i32
    %163 = arith.cmpi ne, %162, %c0_i32_98 : i32
    scf.if %163 {
      %c0_99 = arith.constant 0 : index
      %c0_100 = arith.constant 0 : index
      %c0_101 = arith.constant 0 : index
      %164 = vector.load %arg7[%c0_99, %c0_100, %c0_101] : memref<4x8x1xf32, #tpu.memory_space<vmem>>, vector<1x8x1xf32>
      %165 = vector.shape_cast %164 : vector<1x8x1xf32> to vector<8x1xf32>
      %166 = tpu.reciprocal %165 {approx = true} : vector<8x1xf32> -> vector<8x1xf32>
      %c0_102 = arith.constant 0 : index
      %c0_103 = arith.constant 0 : index
      %c0_104 = arith.constant 0 : index
      %167 = vector.load %arg8[%c0_102, %c0_103, %c0_104] : memref<4x8x8xf32, #tpu.memory_space<vmem>>, vector<1x8x8xf32>
      %168 = vector.shape_cast %167 : vector<1x8x8xf32> to vector<8x8xf32>
      %169 = vector.broadcast %166 : vector<8x1xf32> to vector<8x8xf32>
      %170 = arith.mulf %168, %169 : vector<8x8xf32>
      %c1_105 = arith.constant 1 : index
      %c0_106 = arith.constant 0 : index
      %c0_107 = arith.constant 0 : index
      %171 = vector.load %arg7[%c1_105, %c0_106, %c0_107] : memref<4x8x1xf32, #tpu.memory_space<vmem>>, vector<1x8x1xf32>
      %172 = vector.shape_cast %171 : vector<1x8x1xf32> to vector<8x1xf32>
      %173 = tpu.reciprocal %172 {approx = true} : vector<8x1xf32> -> vector<8x1xf32>
      %c1_108 = arith.constant 1 : index
      %c0_109 = arith.constant 0 : index
      %c0_110 = arith.constant 0 : index
      %174 = vector.load %arg8[%c1_108, %c0_109, %c0_110] : memref<4x8x8xf32, #tpu.memory_space<vmem>>, vector<1x8x8xf32>
      %175 = vector.shape_cast %174 : vector<1x8x8xf32> to vector<8x8xf32>
      %176 = vector.broadcast %173 : vector<8x1xf32> to vector<8x8xf32>
      %177 = arith.mulf %175, %176 : vector<8x8xf32>
      %c2_111 = arith.constant 2 : index
      %c0_112 = arith.constant 0 : index
      %c0_113 = arith.constant 0 : index
      %178 = vector.load %arg7[%c2_111, %c0_112, %c0_113] : memref<4x8x1xf32, #tpu.memory_space<vmem>>, vector<1x8x1xf32>
      %179 = vector.shape_cast %178 : vector<1x8x1xf32> to vector<8x1xf32>
      %180 = tpu.reciprocal %179 {approx = true} : vector<8x1xf32> -> vector<8x1xf32>
      %c2_114 = arith.constant 2 : index
      %c0_115 = arith.constant 0 : index
      %c0_116 = arith.constant 0 : index
      %181 = vector.load %arg8[%c2_114, %c0_115, %c0_116] : memref<4x8x8xf32, #tpu.memory_space<vmem>>, vector<1x8x8xf32>
      %182 = vector.shape_cast %181 : vector<1x8x8xf32> to vector<8x8xf32>
      %183 = vector.broadcast %180 : vector<8x1xf32> to vector<8x8xf32>
      %184 = arith.mulf %182, %183 : vector<8x8xf32>
      %c3_117 = arith.constant 3 : index
      %c0_118 = arith.constant 0 : index
      %c0_119 = arith.constant 0 : index
      %185 = vector.load %arg7[%c3_117, %c0_118, %c0_119] : memref<4x8x1xf32, #tpu.memory_space<vmem>>, vector<1x8x1xf32>
      %186 = vector.shape_cast %185 : vector<1x8x1xf32> to vector<8x1xf32>
      %187 = tpu.reciprocal %186 {approx = true} : vector<8x1xf32> -> vector<8x1xf32>
      %c3_120 = arith.constant 3 : index
      %c0_121 = arith.constant 0 : index
      %c0_122 = arith.constant 0 : index
      %188 = vector.load %arg8[%c3_120, %c0_121, %c0_122] : memref<4x8x8xf32, #tpu.memory_space<vmem>>, vector<1x8x8xf32>
      %189 = vector.shape_cast %188 : vector<1x8x8xf32> to vector<8x8xf32>
      %190 = vector.broadcast %187 : vector<8x1xf32> to vector<8x8xf32>
      %191 = arith.mulf %189, %190 : vector<8x8xf32>
      %192 = tpu.concatenate %170, %177, %184, %191 in 1 : vector<8x8xf32>, vector<8x8xf32>, vector<8x8xf32>, vector<8x8xf32> -> vector<8x32xf32>
      %193 = arith.truncf %192 : vector<8x32xf32> to vector<8x32xbf16>
      %c0_123 = arith.constant 0 : index
      %c0_124 = arith.constant 0 : index
      %c0_125 = arith.constant 0 : index
      %194 = vector.load %arg5[%c0_123, %c0_124, %c0_125] : memref<1x8x32xbf16, #tpu.memory_space<vmem>>, vector<1x8x32xbf16>
      %195 = vector.shape_cast %194 : vector<1x8x32xbf16> to vector<8x32xbf16>
      %196 = vector.shape_cast %193 : vector<8x32xbf16> to vector<1x8x32xbf16>
      tpu.vector_store %arg5[%c0_123, %c0_124, %c0_125], %196 {strides = array<i32>} : memref<1x8x32xbf16, #tpu.memory_space<vmem>>, vector<1x8x32xbf16>,
    } else {
    }
    return
  }
  func.func @transform_0(%arg0: i32, %arg1: i32) -> (i32, i32, i32) {
    %c0_i32 = arith.constant 0 : i32
    %c0_i32_0 = arith.constant 0 : i32
    %c0_i32_1 = arith.constant 0 : i32
    return %arg0, %c0_i32, %c0_i32_0 : i32, i32, i32
  }
  func.func @transform_1(%arg0: i32, %arg1: i32) -> (i32, i32, i32) {
    %c0_i32 = arith.constant 0 : i32
    %c0_i32_0 = arith.constant 0 : i32
    return %arg0, %arg1, %c0_i32 : i32, i32, i32
  }
  func.func @transform_2(%arg0: i32, %arg1: i32) -> (i32, i32, i32) {
    %c0_i32 = arith.constant 0 : i32
    %c0_i32_0 = arith.constant 0 : i32
    return %arg0, %arg1, %c0_i32 : i32, i32, i32
  }
  func.func @transform_3(%arg0: i32, %arg1: i32) -> (i32, i32, i32) {
    %c0_i32 = arith.constant 0 : i32
    %c0_i32_0 = arith.constant 0 : i32
    %c0_i32_1 = arith.constant 0 : i32
    return %arg0, %c0_i32, %c0_i32_0 : i32, i32, i32
  }
}

module attributes {stable_mosaic.version = 11 : i64} {
  func.func @_linear_kernel(%arg0: i32, %arg1: i32, %arg2: memref<16x32xbf16, #tpu.memory_space<vmem>>, %arg3: memref<32x4xbf16, #tpu.memory_space<vmem>>, %arg4: memref<1x4xf32, #tpu.memory_space<vmem>>, %arg5: memref<16x4xbf16, #tpu.memory_space<vmem>>) attributes {dimension_semantics = [#tpu.dimension_semantics<parallel>, #tpu.dimension_semantics<parallel>], iteration_bounds = array<i64: 1, 1>, scalar_prefetch = 0 : i64, scratch_operands = 0 : i64, tpu.core_type = #tpu.core_type<tc>, window_params = [{transform_indices = @transform_0, window_bounds = array<i64: 16, 32>}, {transform_indices = @transform_1, window_bounds = array<i64: 32, 4>}, {transform_indices = @transform_2, window_bounds = array<i64: 1, 4>}, {transform_indices = @transform_3, window_bounds = array<i64: 16, 4>}]} {
    %c0 = arith.constant 0 : index
    %c0_0 = arith.constant 0 : index
    %0 = vector.load %arg2[%c0, %c0_0] : memref<16x32xbf16, #tpu.memory_space<vmem>>, vector<16x32xbf16>
    %c0_1 = arith.constant 0 : index
    %c0_2 = arith.constant 0 : index
    %1 = vector.load %arg3[%c0_1, %c0_2] : memref<32x4xbf16, #tpu.memory_space<vmem>>, vector<32x4xbf16>
    %cst = arith.constant dense<0.000000e+00> : vector<16x4xf32>
    %2 = tpu.matmul %0, %1, %cst {dimension_numbers = #tpu.dot_dimension_numbers<[1], [0], [0], [1], [0, 0, 1, 1], [], []>} : vector<16x32xbf16>, vector<32x4xbf16>, vector<16x4xf32> -> vector<16x4xf32>
    %c0_3 = arith.constant 0 : index
    %c0_4 = arith.constant 0 : index
    %3 = vector.load %arg4[%c0_3, %c0_4] : memref<1x4xf32, #tpu.memory_space<vmem>>, vector<1x4xf32>
    %4 = vector.broadcast %3 : vector<1x4xf32> to vector<16x4xf32>
    %5 = arith.addf %2, %4 : vector<16x4xf32>
    %6 = arith.truncf %5 : vector<16x4xf32> to vector<16x4xbf16>
    %c0_5 = arith.constant 0 : index
    %c0_6 = arith.constant 0 : index
    %7 = vector.load %arg5[%c0_5, %c0_6] : memref<16x4xbf16, #tpu.memory_space<vmem>>, vector<16x4xbf16>
    tpu.vector_store %arg5[%c0_5, %c0_6], %6 {strides = array<i32>} : memref<16x4xbf16, #tpu.memory_space<vmem>>, vector<16x4xbf16>,
    return
  }
  func.func @transform_0(%arg0: i32, %arg1: i32) -> (i32, i32) {
    %c0_i32 = arith.constant 0 : i32
    %c0_i32_0 = arith.constant 0 : i32
    return %arg0, %c0_i32 : i32, i32
  }
  func.func @transform_1(%arg0: i32, %arg1: i32) -> (i32, i32) {
    %c0_i32 = arith.constant 0 : i32
    %c0_i32_0 = arith.constant 0 : i32
    return %c0_i32, %arg1 : i32, i32
  }
  func.func @transform_2(%arg0: i32, %arg1: i32) -> (i32, i32) {
    %c0_i32 = arith.constant 0 : i32
    %c0_i32_0 = arith.constant 0 : i32
    return %c0_i32, %arg1 : i32, i32
  }
  func.func @transform_3(%arg0: i32, %arg1: i32) -> (i32, i32) {
    %c0_i32 = arith.constant 0 : i32
    return %arg0, %arg1 : i32, i32
  }
}

module attributes {stable_mosaic.version = 11 : i64} {
  func.func @_ln_kernel(%arg0: i32, %arg1: memref<16x32xbf16, #tpu.memory_space<vmem>>, %arg2: memref<1x32xf32, #tpu.memory_space<vmem>>, %arg3: memref<1x32xf32, #tpu.memory_space<vmem>>, %arg4: memref<16x32xbf16, #tpu.memory_space<vmem>>) attributes {dimension_semantics = [#tpu.dimension_semantics<parallel>], iteration_bounds = array<i64: 1>, scalar_prefetch = 0 : i64, scratch_operands = 0 : i64, tpu.core_type = #tpu.core_type<tc>, window_params = [{transform_indices = @transform_0, window_bounds = array<i64: 16, 32>}, {pipeline_mode = #tpu.pipeline_mode<synchronous>, transform_indices = @transform_1, window_bounds = array<i64: 1, 32>}, {pipeline_mode = #tpu.pipeline_mode<synchronous>, transform_indices = @transform_2, window_bounds = array<i64: 1, 32>}, {transform_indices = @transform_3, window_bounds = array<i64: 16, 32>}]} {
    %c0 = arith.constant 0 : index
    %c0_0 = arith.constant 0 : index
    %0 = vector.load %arg1[%c0, %c0_0] : memref<16x32xbf16, #tpu.memory_space<vmem>>, vector<16x32xbf16>
    %1 = arith.extf %0 : vector<16x32xbf16> to vector<16x32xf32>
    %cst = arith.constant dense<0.000000e+00> : vector<16xf32>
    %2 = vector.multi_reduction <add>, %1, %cst [1] : vector<16x32xf32> to vector<16xf32>
    %3 = vector.shape_cast %2 : vector<16xf32> to vector<16x1xf32>
    %cst_1 = arith.constant 3.200000e+01 : f32
    %4 = vector.broadcast %cst_1 : f32 to vector<16x1xf32>
    %5 = arith.divf %3, %4 : vector<16x1xf32>
    %6 = vector.broadcast %5 : vector<16x1xf32> to vector<16x32xf32>
    %7 = arith.subf %1, %6 : vector<16x32xf32>
    %8 = arith.mulf %7, %7 : vector<16x32xf32>
    %cst_2 = arith.constant dense<0.000000e+00> : vector<16xf32>
    %9 = vector.multi_reduction <add>, %8, %cst_2 [1] : vector<16x32xf32> to vector<16xf32>
    %10 = vector.shape_cast %9 : vector<16xf32> to vector<16x1xf32>
    %cst_3 = arith.constant 3.200000e+01 : f32
    %11 = vector.broadcast %cst_3 : f32 to vector<16x1xf32>
    %12 = arith.divf %10, %11 : vector<16x1xf32>
    %13 = vector.broadcast %5 : vector<16x1xf32> to vector<16x32xf32>
    %14 = arith.subf %1, %13 : vector<16x32xf32>
    %cst_4 = arith.constant 9.99999974E-6 : f32
    %15 = vector.broadcast %cst_4 : f32 to vector<16x1xf32>
    %16 = arith.addf %12, %15 : vector<16x1xf32>
    %17 = math.rsqrt %16 : vector<16x1xf32>
    %18 = vector.broadcast %17 : vector<16x1xf32> to vector<16x32xf32>
    %19 = arith.mulf %14, %18 : vector<16x32xf32>
    %c0_5 = arith.constant 0 : index
    %c0_6 = arith.constant 0 : index
    %20 = vector.load %arg2[%c0_5, %c0_6] : memref<1x32xf32, #tpu.memory_space<vmem>>, vector<1x32xf32>
    %21 = vector.broadcast %20 : vector<1x32xf32> to vector<16x32xf32>
    %22 = arith.mulf %19, %21 : vector<16x32xf32>
    %c0_7 = arith.constant 0 : index
    %c0_8 = arith.constant 0 : index
    %23 = vector.load %arg3[%c0_7, %c0_8] : memref<1x32xf32, #tpu.memory_space<vmem>>, vector<1x32xf32>
    %24 = vector.broadcast %23 : vector<1x32xf32> to vector<16x32xf32>
    %25 = arith.addf %22, %24 : vector<16x32xf32>
    %26 = arith.truncf %25 : vector<16x32xf32> to vector<16x32xbf16>
    %c0_9 = arith.constant 0 : index
    %c0_10 = arith.constant 0 : index
    %27 = vector.load %arg4[%c0_9, %c0_10] : memref<16x32xbf16, #tpu.memory_space<vmem>>, vector<16x32xbf16>
    tpu.vector_store %arg4[%c0_9, %c0_10], %26 {strides = array<i32>} : memref<16x32xbf16, #tpu.memory_space<vmem>>, vector<16x32xbf16>,
    return
  }
  func.func @transform_0(%arg0: i32) -> (i32, i32) {
    %c0_i32 = arith.constant 0 : i32
    %c0_i32_0 = arith.constant 0 : i32
    return %arg0, %c0_i32 : i32, i32
  }
  func.func @transform_1(%arg0: i32) -> (i32, i32) {
    %c0_i32 = arith.constant 0 : i32
    %c0_i32_0 = arith.constant 0 : i32
    %c0_i32_1 = arith.constant 0 : i32
    return %c0_i32, %c0_i32_0 : i32, i32
  }
  func.func @transform_2(%arg0: i32) -> (i32, i32) {
    %c0_i32 = arith.constant 0 : i32
    %c0_i32_0 = arith.constant 0 : i32
    %c0_i32_1 = arith.constant 0 : i32
    return %c0_i32, %c0_i32_0 : i32, i32
  }
  func.func @transform_3(%arg0: i32) -> (i32, i32) {
    %c0_i32 = arith.constant 0 : i32
    %c0_i32_0 = arith.constant 0 : i32
    return %arg0, %c0_i32 : i32, i32
  }
}

</mosaic_0001>

<bundles_post_ra>
// kernel: transformer_decoder_forward.30
= control target key start
LH: loop header
LB: loop body
LE: loop exit
PB: predicated region body
PF: predicated region fallthrough
CT: control target
= control target key end

     0   :  { %v158_v0 = vmov 0.0   ;;  %vm159_vm0 = vmmov 0   ;;  %vm61_vm1 = vcmask 523264   ;;  %vm116_vm2 = vcmask 257024   ;;  %s204_s1 = inlined_call_operand.vmem [shape: bf16[64,32], index: 1, kind: input, shape index: {}]   ;;  %s205_s0 = inlined_call_operand.vmem [shape: bf16[16,64], index: 0, kind: input, shape index: {}]   ;;  %s206_s2 = inlined_call_operand.vmem [shape: f32[1,32], index: 2, kind: input, shape index: {}]   ;;  %s207_s3 = inlined_call_operand.vmem [shape: bf16[16,32], index: 3, kind: output, shape index: {}]  }
   0x1   :  { %139 = vmatprep.subr.bf16.mxu0 %v158_v0  ;;  %v153_v1 = vld [vmem:[%s204_s1] sm:$0xff]   ;;  %147 = vmatprep.mubr.msk.bf16.mxu0 %vm159_vm0, %v158_v0  ;;  %v154_v2 = vld [vmem:[%s204_s1 + $0x8] sm:$0xff]   ;;  %v155_v3 = vld [vmem:[%s204_s1 + $0x10] sm:$0xff]  }
   0x2   :  { %140 = vmatpush3.bf16.msra.mxu0 %v153_v1  ;;  %v156_v4 = vld [vmem:[%s204_s1 + $0x18] sm:$0xff]   ;;  %v157_v5 = vld [vmem:[%s205_s0] sm:$0xff]  }
   0x3   :  { %141 = vmatprep.subr.bf16.mxu0 %v158_v0  ;;  %v123_v6 = vld [vmem:[%s206_s2] ss:$0 sm:$0xff] }
   0x6   :  { %142 = vmatpush3.bf16.msra.mxu0 %v154_v2 }
   0x7   :  { %143 = vmatprep.subr.bf16.mxu0 %v158_v0 }
   0xa   :  { %144 = vmatpush3.bf16.msra.mxu0 %v155_v3 }
   0xb   :  { %145 = vmatprep.subr.bf16.mxu0 %v158_v0 }
   0xe   :  { %146 = vmatpush3.bf16.msra.mxu0 %v156_v4 }
  0x11   :  { %148 = vmatmul.mubr.msk.bf16.vlgmr.msra.gmra.mrb[0].mxu0 %vm61_vm1, %v157_v5 }
  0xe4   :  { %v99_v7 = vpop.f32.mrb[0].mxu0 }
  0xe5   :  { %v100_v8 = vadd.f32 %v123_v6, %v99_v7  ;;  %v149_v9 = vpop.f32.mrb[1].mxu0 }
  0xe6   :  { %v102_v10 = vpop.f32.mrb[2].mxu0 }
  0xe7   :  { %v106_v11 = vmax.f32 %v100_v8, 0.0  ;;  %v103_v12 = vadd.f32 %v123_v6, %v102_v10  ;;  %v150_v13 = vpop.f32.mrb[3].mxu0 }
  0xe9   :  { %v132_v14 = vpack.c.bf16 %v106_v11, %v106_v11  ;;  %v107_v15 = vmax.f32 %v103_v12, 0.0 }
  0xeb   :  { %117 = vst.msk [vmem:[%s207_s3] sm:$0xf] %vm116_vm2, %v132_v14  ;;  %v133_v16 = vpack.c.bf16 %v107_v15, %v107_v15 }
  0xed   :  { %118 = vst.msk [vmem:[%s207_s3 + $0x4] sm:$0xf] %vm116_vm2, %v133_v16 }

// kernel: transformer_decoder_forward.32
= control target key start
LH: loop header
LB: loop body
LE: loop exit
PB: predicated region body
PF: predicated region fallthrough
CT: control target
= control target key end

     0   :  { %v136_v0 = vmov 0.0   ;;  %vm137_vm0 = vmmov 0   ;;  %vm52_vm1 = vcmask 261120   ;;  %vm105_vm2 = vcmask 519168   ;;  %s190_s2 = inlined_call_operand.vmem [shape: bf16[32,64], index: 2, kind: input, shape index: {}]   ;;  %s191_s0 = inlined_call_operand.vmem [shape: bf16[16,32], index: 0, kind: input, shape index: {}]   ;;  %s192_s1 = inlined_call_operand.vmem [shape: bf16[16,32], index: 1, kind: input, shape index: {}]   ;;  %s193_s3 = inlined_call_operand.vmem [shape: f32[1,64], index: 3, kind: input, shape index: {}]   ;;  %s194_s4 = inlined_call_operand.vmem [shape: bf16[16,64], index: 4, kind: output, shape index: {}]  }
   0x1   :  { %124 = vmatprep.subr.bf16.mxu0 %v136_v0  ;;  %v134_v1 = vld [vmem:[%s190_s2] sm:$0xff]   ;;  %128 = vmatprep.mubr.msk.bf16.mxu0 %vm137_vm0, %v136_v0  ;;  %v135_v2 = vld [vmem:[%s190_s2 + $0x8] sm:$0xff]  }
   0x2   :  { %125 = vmatpush3.bf16.msra.mxu0 %v134_v1  ;;  %v18_v3 = vld [vmem:[%s191_s0] sm:$0xf]  ;;  %v19_v4 = vld [vmem:[%s191_s0 + $0x4] sm:$0xf] }
   0x3   :  { %v20_v5 = vld [vmem:[%s192_s1] sm:$0xf]  ;;  %126 = vmatprep.subr.bf16.mxu0 %v136_v0  ;;  %v21_v6 = vld [vmem:[%s192_s1 + $0x4] sm:$0xf] }
   0x4   :  { %v22_v7 = vadd.bf16 %v20_v5, %v18_v3  ;;  %v23_v8 = vadd.bf16 %v21_v6, %v19_v4  ;;  %v112_v10 = vld [vmem:[%s193_s3] ss:$0 sm:$0xff] }
   0x6   :  { %127 = vmatpush3.bf16.msra.mxu0 %v135_v2  ;;  %v113_v9 = vcombine.low %v22_v7, %v23_v8 }
   0x9   :  { %129 = vmatmul.mubr.msk.bf16.vlgmr.msra.gmra.mrb[0].mxu0 %vm52_vm1, %v113_v9 }
  0xdc   :  { %v90_v11 = vpop.f32.mrb[0].mxu0 }
  0xdd   :  { %v91_v12 = vadd.f32 %v112_v10, %v90_v11  ;;  %v130_v13 = vpop.f32.mrb[1].mxu0 }
  0xde   :  { %v93_v14 = vpop.f32.mrb[2].mxu0 }
  0xdf   :  { %v119_v15 = vpack.c.bf16 %v91_v12, %v91_v12  ;;  %v94_v16 = vadd.f32 %v112_v10, %v93_v14  ;;  %v131_v17 = vpop.f32.mrb[3].mxu0 }
  0xe1   :  { %106 = vst.msk [vmem:[%s194_s4] sm:$0xf] %vm105_vm2, %v119_v15  ;;  %v120_v18 = vpack.c.bf16 %v94_v16, %v94_v16 }
  0xe3   :  { %107 = vst.msk [vmem:[%s194_s4 + $0x4] sm:$0xf] %vm105_vm2, %v120_v18 }

// kernel: transformer_decoder_forward.31
= control target key start
LH: loop header
LB: loop body
LE: loop exit
PB: predicated region body
PF: predicated region fallthrough
CT: control target
= control target key end

     0   :  { %v130_v0 = vmov 0.0   ;;  %vm131_vm0 = vmmov 0   ;;  %vm45_vm1 = vcmask 261120   ;;  %vm98_vm2 = vcmask 257024   ;;  %s170_s1 = inlined_call_operand.vmem [shape: bf16[32,32], index: 1, kind: input, shape index: {}]   ;;  %s171_s0 = inlined_call_operand.vmem [shape: bf16[16,32], index: 0, kind: input, shape index: {}]   ;;  %s172_s2 = inlined_call_operand.vmem [shape: f32[1,32], index: 2, kind: input, shape index: {}]   ;;  %s173_s3 = inlined_call_operand.vmem [shape: bf16[16,32], index: 3, kind: output, shape index: {}]  }
   0x1   :  { %117 = vmatprep.subr.bf16.mxu0 %v130_v0  ;;  %v127_v1 = vld [vmem:[%s170_s1] sm:$0xff]   ;;  %121 = vmatprep.mubr.msk.bf16.mxu0 %vm131_vm0, %v130_v0  ;;  %v128_v2 = vld [vmem:[%s170_s1 + $0x8] sm:$0xff]  }
   0x2   :  { %118 = vmatpush3.bf16.msra.mxu0 %v127_v1  ;;  %v129_v3 = vld [vmem:[%s171_s0] sm:$0xff]  }
   0x3   :  { %119 = vmatprep.subr.bf16.mxu0 %v130_v0  ;;  %v105_v4 = vld [vmem:[%s172_s2] ss:$0 sm:$0xff] }
   0x6   :  { %120 = vmatpush3.bf16.msra.mxu0 %v128_v2 }
   0x9   :  { %122 = vmatmul.mubr.msk.bf16.vlgmr.msra.gmra.mrb[0].mxu0 %vm45_vm1, %v129_v3 }
  0xdc   :  { %v83_v5 = vpop.f32.mrb[0].mxu0 }
  0xdd   :  { %v84_v6 = vadd.f32 %v105_v4, %v83_v5  ;;  %v123_v7 = vpop.f32.mrb[1].mxu0 }
  0xde   :  { %v86_v8 = vpop.f32.mrb[2].mxu0 }
  0xdf   :  { %v112_v9 = vpack.c.bf16 %v84_v6, %v84_v6  ;;  %v87_v10 = vadd.f32 %v105_v4, %v86_v8  ;;  %v124_v11 = vpop.f32.mrb[3].mxu0 }
  0xe1   :  { %99 = vst.msk [vmem:[%s173_s3] sm:$0xf] %vm98_vm2, %v112_v9  ;;  %v113_v12 = vpack.c.bf16 %v87_v10, %v87_v10 }
  0xe3   :  { %100 = vst.msk [vmem:[%s173_s3 + $0x4] sm:$0xf] %vm98_vm2, %v113_v12 }

// kernel: transformer_decoder_forward.35
= control target key start
LH: loop header
LB: loop body
LE: loop exit
PB: predicated region body
PF: predicated region fallthrough
CT: control target
= control target key end

     0   :  { %v200_v0 = vmov 0.0   ;;  %vm201_vm0 = vmmov 0   ;;  %vm54_vm1 = vcmask 261120   ;;  %vm158_vm2 = vcmask 257024   ;;  %s269_s1 = inlined_call_operand.vmem [shape: bf16[32,32], index: 1, kind: input, shape index: {}]   ;;  %s270_s0 = inlined_call_operand.vmem [shape: bf16[16,32], index: 0, kind: input, shape index: {}]   ;;  %s271_s3 = inlined_call_operand.vmem [shape: bf16[16,32], index: 3, kind: input, shape index: {}]   ;;  %s272_s2 = inlined_call_operand.vmem [shape: f32[1,32], index: 2, kind: input, shape index: {}]   ;;  %s273_s4 = inlined_call_operand.vmem [shape: f32[1,32], index: 4, kind: input, shape index: {}]   ;;  %s274_s5 = inlined_call_operand.vmem [shape: f32[1,32], index: 5, kind: input, shape index: {}]   ;;  %s275_s6 = inlined_call_operand.vmem [shape: bf16[16,32], index: 6, kind: output, shape index: {}]  }
   0x1   :  { %183 = vmatprep.subr.bf16.mxu0 %v200_v0  ;;  %v193_v1 = vld [vmem:[%s269_s1] sm:$0xff]   ;;  %187 = vmatprep.mubr.msk.bf16.mxu0 %vm201_vm0, %v200_v0  ;;  %v194_v2 = vld [vmem:[%s269_s1 + $0x8] sm:$0xff]  }
   0x2   :  { %184 = vmatpush3.bf16.msra.mxu0 %v193_v1  ;;  %v195_v3 = vld [vmem:[%s270_s0] sm:$0xff]  }
   0x3   :  { %185 = vmatprep.subr.bf16.mxu0 %v200_v0  ;;  %v177_v4 = vld [vmem:[%s271_s3] sm:$0xff]  }
   0x4   :  { %v165_v5 = vld [vmem:[%s272_s2] ss:$0 sm:$0xff]  ;;  %v178_v6 = vunpack.c.l.bf16 %v177_v4  ;;  %v179_v10 = vunpack.c.h.bf16 %v177_v4 }
   0x5   :  { %v170_v35 = vld [vmem:[%s273_s4] ss:$0 sm:$0xff] }
   0x6   :  { %186 = vmatpush3.bf16.msra.mxu0 %v194_v2  ;;  %v171_v37 = vld [vmem:[%s274_s5] ss:$0 sm:$0xff] }
   0x9   :  { %188 = vmatmul.mubr.msk.bf16.vlgmr.msra.gmra.mrb[0].mxu0 %vm54_vm1, %v195_v3 }
  0xdc   :  { %v92_v7 = vpop.f32.mrb[0].mxu0 }
  0xdd   :  { %v93_v8 = vadd.f32 %v165_v5, %v92_v7  ;;  %v189_v9 = vpop.f32.mrb[1].mxu0 }
  0xde   :  { %v95_v11 = vpop.f32.mrb[2].mxu0 }
  0xdf   :  { %v96_v12 = vadd.f32 %v165_v5, %v95_v11  ;;  %v190_v13 = vpop.f32.mrb[3].mxu0  ;;  %v103_v14 = vadd.f32 %v178_v6, %v93_v8 }
  0xe1   :  { %v105_v15 = vsel %vm54_vm1, %v103_v14, 0.0  ;;  %v104_v16 = vadd.f32 %v179_v10, %v96_v12 }
  0xe2   :  { %106 = vadd.xlane.f32.xlu0 %v105_v15 }
  0xe3   :  { %v108_v17 = vsel %vm54_vm1, %v104_v16, 0.0 }
  0xe6   :  { %109 = vadd.xlane.f32.xlu0 %v108_v17 }
 0x16f   :  { %v107_v18 = vpop.xlane.xlu0 %106 }
 0x170   :  { %v112_v19 = vmul.f32 0.03125, %v107_v18 }
 0x172   :  { %v114_v20 = vsub.f32 %v103_v14, %v112_v19 }
 0x173   :  { %v110_v21 = vpop.xlane.xlu0 %109 }
 0x174   :  { %v113_v22 = vmul.f32 0.03125, %v110_v21  ;;  %v116_v23 = vmul.f32 %v114_v20, %v114_v20 }
 0x176   :  { %v115_v24 = vsub.f32 %v104_v16, %v113_v22  ;;  %v118_v25 = vsel %vm54_vm1, %v116_v23, 0.0 }
 0x177   :  { %119 = vadd.xlane.f32.xlu1 %v118_v25 }
 0x178   :  { %v117_v26 = vmul.f32 %v115_v24, %v115_v24 }
 0x17a   :  { %v121_v27 = vsel %vm54_vm1, %v117_v26, 0.0 }
 0x17b   :  { %122 = vadd.xlane.f32.xlu1 %v121_v27 }
 0x204   :  { %v120_v28 = vpop.xlane.xlu1 %119 }
 0x205   :  { %v124_v29 = vmul.f32 0.03125, %v120_v28 }
 0x207   :  { %v126_v30 = vadd.f32 1e-05, %v124_v29 }
 0x208   :  { %v123_v31 = vpop.xlane.xlu1 %122 }
 0x209   :  { %196 = vrsqrt.f32 %v126_v30  ;;  %v125_v32 = vmul.f32 0.03125, %v123_v31 }
 0x20b   :  { %v127_v33 = vadd.f32 1e-05, %v125_v32 }
 0x20d   :  { %198 = vrsqrt.f32 %v127_v33 }
 0x213   :  { %v197_v34 = vpop.eup %196 }
 0x214   :  { %v130_v36 = vmul.f32 %v197_v34, %v114_v20 }
 0x216   :  { %v139_v38 = vmul.f32 %v170_v35, %v130_v36 }
 0x217   :  { %v199_v39 = vpop.eup %198 }
 0x218   :  { %v148_v40 = vadd.f32 %v171_v37, %v139_v38  ;;  %v131_v41 = vmul.f32 %v199_v39, %v115_v24 }
 0x21a   :  { %v174_v42 = vpack.c.bf16 %v148_v40, %v148_v40  ;;  %v140_v43 = vmul.f32 %v170_v35, %v131_v41 }
 0x21c   :  { %159 = vst.msk [vmem:[%s275_s6] sm:$0xf] %vm158_vm2, %v174_v42  ;;  %v149_v44 = vadd.f32 %v171_v37, %v140_v43 }
 0x21e   :  { %v175_v45 = vpack.c.bf16 %v149_v44, %v149_v44 }
 0x220   :  { %160 = vst.msk [vmem:[%s275_s6 + $0x4] sm:$0xf] %vm158_vm2, %v175_v45 }

// kernel: transformer_decoder_forward.34
= control target key start
LH: loop header
LB: loop body
LE: loop exit
PB: predicated region body
PF: predicated region fallthrough
CT: control target
= control target key end

     0   :  { %s1155_s12 = smov 0   ;;  %s1157_s13 = smov 0   ;;  %s1319_s0 = inlined_call_operand.vmem [shape: bf16[2,8,32], index: 0, kind: input, shape index: {}]   ;;  %s1320_s1 = inlined_call_operand.vmem [shape: bf16[2,8,32], index: 1, kind: input, shape index: {}]   ;;  %s1321_s2 = inlined_call_operand.vmem [shape: bf16[2,8,32], index: 2, kind: input, shape index: {}]   ;;  %s1322_s3 = inlined_call_operand.vmem [shape: bf16[2,8,32], index: 3, kind: output, shape index: {}]  }
   0x1   :  { %s1159_s14 = smov 0  }
   0x2 LB: > { %s25_s15 = sadd.s32 1, %s1119_s13  ;;  %p957_p0 = scmp.ge.s32.totalorder %s1123_s14, 1  ;;  %s1123_s14 = sphi %s1159_s14, %s13_s14   ;;  %s1119_s13 = sphi %s1157_s13, %s1324_s13   ;;  %s1115_s12 = sphi %s1155_s12, %s1323_s12  }
   0x3   : > { %p27_p1 = scmp.ge.s32.totalorder %s25_s15, 2  ;;  %p176_p2 = scmp.lt.s32.totalorder %s1123_s14, 3 }
   0x5   : > { %s1326_s15 = smov (%p27_p1, %s25_s15), 0  ;;  %p177_p3 = pnand %p957_p0, %p176_p2 }
   0x6   : > { %p212_p4 = scmp.lt.s32.totalorder (!%p177_p3), %s1115_s12, 1  ;;  %vm248_vm0 = vcmask (!%p177_p3), 64512   ;;  %v1125_v0 = vmov (!%p177_p3), 0.0   ;;  %vm1126_vm1 = vmmov (!%p177_p3), 0   ;;  %vm239_vm2 = vcmask (!%p177_p3), 7168   ;;  %s1129_s23 = smov (!%p177_p3), 120  }
   0x7   : > { %180 = sbr.rel (%p177_p3) target bundleno = 1469 (0x5bd), region = 32  ;;  %991 = vmatprep.subr.bf16.mxu0 (!%p177_p3), %v1125_v0  ;;  %249 = vst.msk [vmem:[#allocation4] sm:$0xff] (!%p177_p3), %vm248_vm0, %v1125_v0  ;;  %250 = vst.msk [vmem:[#allocation4 + $0x8] sm:$0xff] (!%p177_p3), %vm248_vm0, %v1125_v0  ;;  %993 = vmatprep.mubr.msk.bf16.mxu0 (!%p177_p3), %vm1126_vm1, %v1125_v0  ;;  %v1127_v4 = vmov (!%p177_p3), -1e+30   ;;  %v1128_v11 = vmov (!%p177_p3), 0  }
   0x8   : > { %251 = vst.msk [vmem:[#allocation4 + $0x10] sm:$0xff] (!%p177_p3), %vm248_vm0, %v1125_v0  ;;  %252 = vst.msk [vmem:[#allocation4 + $0x18] sm:$0xff] (!%p177_p3), %vm248_vm0, %v1125_v0  ;;  %997 = vmatprep.subr.bf16.mxu1 (!%p177_p3), %v1125_v0  ;;  %999 = vmatprep.mubr.msk.bf16.mxu1 (!%p177_p3), %vm1126_vm1, %v1125_v0  ;;  %s1130_s24 = smov (!%p177_p3), 112   ;;  %s1131_s25 = smov (!%p177_p3), 104   ;;  %vm339_vm3 = vcmask (!%p177_p3), 1043456   ;;  %vm855_vm4 = vcmask (!%p177_p3), 130048  }
   0x9   : > { %240 = vst.msk [vmem:[#allocation2] sm:$0xff] (!%p177_p3), %vm239_vm2, %v1127_v4  ;;  %241 = vst.msk [vmem:[#allocation2 + $0x8] sm:$0xff] (!%p177_p3), %vm239_vm2, %v1127_v4  ;;  %1073 = vset.pattern.permute.xlu0 (!%p177_p3), %v1128_v11  ;;  %1074 = vset.pattern.permute.xlu1 (!%p177_p3), %v1128_v11  ;;  %s1132_s29 = smov (!%p177_p3), 8   ;;  %s1133_s30 = smov (!%p177_p3), 16   ;;  %vm857_vm5 = vcmask (!%p177_p3), 195584   ;;  %vm860_vm6 = vcmask (!%p177_p3), 257024  }
   0xa   : > { %242 = vst.msk [vmem:[#allocation2 + $0x10] sm:$0xff] (!%p177_p3), %vm239_vm2, %v1127_v4  ;;  %243 = vst.msk [vmem:[#allocation2 + $0x18] sm:$0xff] (!%p177_p3), %vm239_vm2, %v1127_v4  ;;  %s1134_s4 = smov (!%p177_p3), 24  }
   0xb   : > { %244 = vst.msk [vmem:[#allocation3] sm:$0xff] (!%p177_p3), %vm239_vm2, %v1125_v0  ;;  %245 = vst.msk [vmem:[#allocation3 + $0x8] sm:$0xff] (!%p177_p3), %vm239_vm2, %v1125_v0 }
   0xc   : > { %246 = vst.msk [vmem:[#allocation3 + $0x10] sm:$0xff] (!%p177_p3), %vm239_vm2, %v1125_v0  ;;  %247 = vst.msk [vmem:[#allocation3 + $0x18] sm:$0xff] (!%p177_p3), %vm239_vm2, %v1125_v0 }
   0xe   : > { %s1328_s12 = smov (!%p212_p4, %s1115_s12), 1 }
   0xf   : > { %s1187_s16 = sshll.u32 %s1328_s12, 2 }
  0x10   : > { %s222_s19 = scalar_lea.vmem %s1320_s1, %s1187_s16  ;;  %s215_s22 = scalar_lea.vmem %s1319_s0, %s1187_s16  ;;  %v1221_v14 = vld [vmem:[#allocation2] sm:$0xff]  ;;  %v1264_v56 = vld [vmem:[#allocation2 + $0x8] sm:$0xff] }
  0x11   : > { %v254_v1 = vld [vmem:[%s222_s19] sm:$0xf]  ;;  %s229_s28 = scalar_lea.vmem %s1321_s2, %s1187_s16  ;;  %v583_v60 = vld [vmem:[#allocation2 + $0x10] sm:$0xff]  ;;  %s233_s7 = scalar_lea.vmem %s1322_s3, %s1187_s16 }
  0x12   : > { %v261_v2 = vsel %vm248_vm0, %v254_v1, 0  ;;  %v253_v3 = vld [vmem:[%s215_s22] sm:$0xf]  ;;  %v965_v12 = vcombine.low %v254_v1, %v254_v1  ;;  %v719_v1 = vld [vmem:[#allocation2 + $0x18] sm:$0xff] }
  0x13   : > { %992 = vmatpush3.bf16.xpose.msra.mxu0 %v261_v2  ;;  %v964_v13 = vcombine.low %v253_v3, %v253_v3  ;;  %v1235_v18 = vld [vmem:[%s229_s28] sm:$0xf] }
  0x14   : > { %1009 = vmatprep.subr.bf16.mxu0 %v1125_v0  ;;  %394 = vrot.lane.b32.xlu1 %v965_v12, %s1129_s23  ;;  %v341_v19 = vsel %vm339_vm3, %v1235_v18, 0  ;;  %v967_v4 = vcombine.low %v1235_v18, %v1235_v18 }
  0x15   : > { %998 = vmatpush3.bf16.msra.mxu1 %v341_v19 }
  0x16   : > { %1003 = vmatprep.subr.bf16.mxu1 %v1125_v0 }
  0x18   : > { %389 = vrot.lane.b32.xlu1 %v964_v13, %s1129_s23 }
  0x1a   : > { %994 = vmatmul.mubr.msk.bf16.vlgmr.msra.gmra.mrb[0].mxu0 %vm248_vm0, %v253_v3 }
  0x1b   : > { %1011 = vmatprep.mubr.msk.bf16.mxu0 %vm1126_vm1, %v1125_v0 }
  0x1c   : > { %533 = vrot.lane.b32.xlu1 %v965_v12, %s1130_s24 }
  0x20   : > { %531 = vrot.lane.b32.xlu1 %v964_v13, %s1130_s24 }
  0x24   : > { %669 = vrot.lane.b32.xlu1 %v965_v12, %s1131_s25 }
  0x28   : > { %667 = vrot.lane.b32.xlu1 %v964_v13, %s1131_s25 }
  0x86   : > { %v395_v23 = vpop.permute.xlu1 %394 }
  0x87   : > { %v400_v26 = vsel %vm248_vm0, %v395_v23, 0 }
  0x8a   : > { %v390_v24 = vpop.permute.xlu1 %389 }
  0x8e   : > { %v534_v28 = vpop.permute.xlu1 %533 }
  0x8f   : > { %v539_v30 = vsel %vm248_vm0, %v534_v28, 0 }
  0x92   : > { %v532_v29 = vpop.permute.xlu1 %531 }
  0x96   : > { %v670_v31 = vpop.permute.xlu1 %669 }
  0x97   : > { %v675_v32 = vsel %vm248_vm0, %v670_v31, 0 }
  0x9a   : > { %v668_v33 = vpop.permute.xlu1 %667 }
  0xed   : > { %v297_v5 = vpop.f32.mrb[0].mxu0 }
  0xee   : > { %v303_v6 = vmul.f32 0.35355338, %v297_v5  ;;  %v995_v7 = vpop.f32.mrb[1].mxu0 }
  0xef   : > { %v300_v8 = vpop.f32.mrb[2].mxu0 }
  0xf0   : > { %v996_v9 = vpop.f32.mrb[3].mxu0  ;;  %v305_v10 = vsel %vm248_vm0, %v303_v6, -inf }
  0xf1   : > { %306 = vmax.xlane.f32.xlu0 %v305_v10 }
 0x17e   : > { %v307_v15 = vpop.xlane.xlu0 %306 }
 0x17f   : > { %v1224_v16 = vmax.f32 %v1221_v14, %v307_v15 }
 0x181   : > { %v309_v17 = vsub.f32 %v1221_v14, %v1224_v16  ;;  %385 = vst.msk [vmem:[#allocation2] sm:$0xff] %vm239_vm2, %v1224_v16  ;;  %314 = vperm.xlu0 %1073, %v1224_v16  }
 0x200   : > { %v315_v20 = vpop.permute.xlu0 %314 }
 0x201   : > { %v317_v21 = vsub.f32 %v303_v6, %v315_v20 }
 0x203   : > { %v318_v22 = vmul.f32 1.442695, %v317_v21 }
 0x205   : > { %1077 = vpow2.f32 %v318_v22 }
 0x20f   : > { %v1240_v25 = vpop.eup %1077 }
 0x210   : > { %v335_v27 = vpack.c.bf16 %v1240_v25, %v1240_v25  ;;  %v322_v6 = vsel %vm248_vm0, %v1240_v25, 0.0 }
 0x212   : > { %1000 = vmatmul.mubr.msk.bf16.vlgmr.msra.gmra.mrb[0].mxu1 %vm248_vm0, %v335_v27 }
 0x213   : > { %1004 = vmatpush3.bf16.xpose.msra.mxu1 %v400_v26  ;;  %1005 = vmatprep.mubr.msk.bf16.mxu1 %vm1126_vm1, %v1125_v0 }
 0x214   : > { %1015 = vmatprep.subr.bf16.mxu1 %v1125_v0 }
 0x21a   : > { %1006 = vmatmul.mubr.msk.bf16.vlgmr.msra.gmra.mrb[4].mxu1 %vm248_vm0, %v390_v24 }
 0x21b   : > { %1016 = vmatpush3.bf16.xpose.msra.mxu1 %v539_v30  ;;  %1017 = vmatprep.mubr.msk.bf16.mxu1 %vm1126_vm1, %v1125_v0 }
 0x21c   : > { %1027 = vmatprep.subr.bf16.mxu1 %v1125_v0 }
 0x222   : > { %1018 = vmatmul.mubr.msk.bf16.vlgmr.msra.gmra.mrb[8].mxu1 %vm248_vm0, %v532_v29 }
 0x223   : > { %1028 = vmatpush3.bf16.xpose.msra.mxu1 %v675_v32  ;;  %1029 = vmatprep.mubr.msk.bf16.mxu1 %vm1126_vm1, %v1125_v0  ;;  %v310_v32 = vmul.f32 1.442695, %v309_v17 }
 0x22a   : > { %1030 = vmatmul.mubr.msk.bf16.vlgmr.msra.gmra.mrb[12].mxu1 %vm248_vm0, %v668_v33 }
 0x2e5   : > { %v1259_v34 = vpop.f32.mrb[0].mxu1 }
 0x2e6   : > { %v1001_v35 = vpop.f32.mrb[1].mxu1 }
 0x2e7   : > { %v380_v36 = vpop.f32.mrb[2].mxu1 }
 0x2e8   : > { %v1002_v37 = vpop.f32.mrb[3].mxu1 }
 0x2ed   : > { %v436_v38 = vpop.f32.mrb[4].mxu1 }
 0x2ee   : > { %v442_v39 = vmul.f32 0.35355338, %v436_v38  ;;  %v1007_v40 = vpop.f32.mrb[5].mxu1 }
 0x2ef   : > { %v439_v41 = vpop.f32.mrb[6].mxu1  ;;  %v320_v40 = vld [vmem:[#allocation3] sm:$0xff] }
 0x2f0   : > { %v1008_v42 = vpop.f32.mrb[7].mxu1  ;;  %v445_v43 = vsel %vm248_vm0, %v442_v39, -inf }
 0x2f1   : > { %446 = vmax.xlane.f32.xlu1 %v445_v43 }
 0x2f5   : > { %v575_v44 = vpop.f32.mrb[8].mxu1 }
 0x2f6   : > { %v581_v45 = vmul.f32 0.35355338, %v575_v44  ;;  %v1019_v46 = vpop.f32.mrb[9].mxu1 }
 0x2f7   : > { %v578_v47 = vpop.f32.mrb[10].mxu1 }
 0x2f8   : > { %v1020_v48 = vpop.f32.mrb[11].mxu1  ;;  %v584_v49 = vsel %vm248_vm0, %v581_v45, -inf }
 0x2f9   : > { %585 = vmax.xlane.f32.xlu0 %v584_v49  ;;  %v600_v49 = vld [vmem:[#allocation3 + $0x10] sm:$0xff] }
 0x2fd   : > { %v711_v50 = vpop.f32.mrb[12].mxu1 }
 0x2fe   : > { %v717_v51 = vmul.f32 0.35355338, %v711_v50  ;;  %v1031_v52 = vpop.f32.mrb[13].mxu1 }
 0x2ff   : > { %v714_v53 = vpop.f32.mrb[14].mxu1 }
 0x300   : > { %v1032_v54 = vpop.f32.mrb[15].mxu1  ;;  %v720_v55 = vsel %vm248_vm0, %v717_v51, -inf }
 0x301   : > { %721 = vmax.xlane.f32.xlu1 %v720_v55  ;;  %v736_v54 = vld [vmem:[#allocation3 + $0x18] sm:$0xff]  ;;  %v328_v55 = vld [vmem:[#allocation4] sm:$0xff] }
 0x37e   : > { %v447_v57 = vpop.xlane.xlu1 %446 }
 0x37f   : > { %v448_v58 = vmax.f32 %v1264_v56, %v447_v57 }
 0x381   : > { %v449_v59 = vsub.f32 %v1264_v56, %v448_v58  ;;  %530 = vst.msk [vmem:[#allocation2 + $0x8] sm:$0xff] %vm239_vm2, %v448_v58  ;;  %454 = vperm.xlu1 %1074, %v448_v58  }
 0x383   : > { %v450_v35 = vmul.f32 1.442695, %v449_v59 }
 0x386   : > { %v586_v61 = vpop.xlane.xlu0 %585 }
 0x387   : > { %v587_v62 = vmax.f32 %v583_v60, %v586_v61 }
 0x389   : > { %v588_v63 = vsub.f32 %v583_v60, %v587_v62  ;;  %666 = vst.msk [vmem:[#allocation2 + $0x10] sm:$0xff] %vm239_vm2, %v587_v62  ;;  %593 = vperm.xlu0 %1073, %v587_v62  }
 0x38b   : > { %v589_v37 = vmul.f32 1.442695, %v588_v63 }
 0x38e   : > { %v722_v2 = vpop.xlane.xlu1 %721 }
 0x38f   : > { %v723_v3 = vmax.f32 %v719_v1, %v722_v2 }
 0x391   : > { %v724_v5 = vsub.f32 %v719_v1, %v723_v3  ;;  %802 = vst.msk [vmem:[#allocation2 + $0x18] sm:$0xff] %vm239_vm2, %v723_v3  ;;  %729 = vperm.xlu1 %1074, %v723_v3  }
 0x393   : > { %v725_v36 = vmul.f32 1.442695, %v724_v5 }
 0x395   : > { %480 = vrot.lane.b32.xlu1 %v967_v4, %s1129_s23 }
 0x399   : > { %616 = vrot.lane.b32.xlu1 %v967_v4, %s1130_s24 }
 0x39d   : > { %752 = vrot.lane.b32.xlu1 %v967_v4, %s1131_s25  ;;  %v469_v4 = vld [vmem:[#allocation4 + $0x8] sm:$0xff] }
 0x3c1   : > { %323 = vadd.xlane.f32.xlu1 %v322_v6 }
 0x400   : > { %v455_v7 = vpop.permute.xlu1 %454 }
 0x401   : > { %v457_v8 = vsub.f32 %v442_v39, %v455_v7 }
 0x403   : > { %v458_v9 = vmul.f32 1.442695, %v457_v8 }
 0x405   : > { %1079 = vpow2.f32 %v458_v9 }
 0x408   : > { %v594_v10 = vpop.permute.xlu0 %593 }
 0x409   : > { %v596_v11 = vsub.f32 %v581_v45, %v594_v10  ;;  %v461_v45 = vld [vmem:[#allocation3 + $0x8] sm:$0xff] }
 0x40b   : > { %v597_v12 = vmul.f32 1.442695, %v596_v11  ;;  %v608_v11 = vld [vmem:[#allocation4 + $0x10] sm:$0xff] }
 0x40d   : > { %1081 = vpow2.f32 %v597_v12 }
 0x40f   : > { %v1080_v13 = vpop.eup %1079 }
 0x410   : > { %v730_v15 = vpop.permute.xlu1 %729  ;;  %v463_v18 = vsel %vm248_vm0, %v1080_v13, 0.0  ;;  %v476_v24 = vpack.c.bf16 %v1080_v13, %v1080_v13 }
 0x411   : > { %v732_v19 = vsub.f32 %v717_v51, %v730_v15  ;;  %464 = vadd.xlane.f32.xlu0 %v463_v18 }
 0x413   : > { %v733_v20 = vmul.f32 1.442695, %v732_v19 }
 0x414   : > { %v481_v21 = vpop.permute.xlu1 %480 }
 0x415   : > { %1083 = vpow2.f32 %v733_v20  ;;  %v486_v22 = vsel %vm339_vm3, %v481_v21, 0 }
 0x416   : > { %1010 = vmatpush3.bf16.msra.mxu0 %v486_v22  ;;  %1085 = vpow2.f32 %v310_v32  ;;  %v744_v22 = vld [vmem:[#allocation4 + $0x18] sm:$0xff] }
 0x417   : > { %v1082_v23 = vpop.eup %1081  ;;  %1021 = vmatprep.subr.bf16.mxu0 %v1125_v0  ;;  %1087 = vpow2.f32 %v450_v35 }
 0x418   : > { %v602_v25 = vsel %vm248_vm0, %v1082_v23, 0.0  ;;  %v617_v26 = vpop.permute.xlu1 %616  ;;  %v615_v30 = vpack.c.bf16 %v1082_v23, %v1082_v23  ;;  %1089 = vpow2.f32 %v725_v36 }
 0x419   : > { %603 = vadd.xlane.f32.xlu0 %v602_v25  ;;  %1012 = vmatmul.mubr.msk.bf16.vlgmr.msra.gmra.mrb[4].mxu0 %vm248_vm0, %v476_v24  ;;  %v622_v27 = vsel %vm339_vm3, %v617_v26, 0  ;;  %1091 = vpow2.f32 %v589_v37 }
 0x41a   : > { %1022 = vmatpush3.bf16.msra.mxu0 %v622_v27  ;;  %1023 = vmatprep.mubr.msk.bf16.mxu0 %vm1126_vm1, %v1125_v0 }
 0x41b   : > { %1033 = vmatprep.subr.bf16.mxu0 %v1125_v0 }
 0x41c   : > { %v753_v28 = vpop.permute.xlu1 %752 }
 0x41d   : > { %v758_v31 = vsel %vm339_vm3, %v753_v28, 0 }
 0x41f   : > { %v1084_v29 = vpop.eup %1083 }
 0x420   : > { %v738_v33 = vsel %vm248_vm0, %v1084_v29, 0.0  ;;  %v751_v38 = vpack.c.bf16 %v1084_v29, %v1084_v29  ;;  %v1086_v14 = vpop.eup %1085 }
 0x421   : > { %1024 = vmatmul.mubr.msk.bf16.vlgmr.msra.gmra.mrb[8].mxu0 %vm248_vm0, %v615_v30  ;;  %739 = vadd.xlane.f32.xlu1 %v738_v33  ;;  %v1088_v16 = vpop.eup %1087 }
 0x422   : > { %1034 = vmatpush3.bf16.msra.mxu0 %v758_v31  ;;  %1035 = vmatprep.mubr.msk.bf16.mxu0 %vm1126_vm1, %v1125_v0  ;;  %v1090_v17 = vpop.eup %1089  ;;  %v321_v0 = vmul.f32 %v1086_v14, %v320_v40  ;;  %v462_v46 = vmul.f32 %v1088_v16, %v461_v45 }
 0x423   : > { %v1092_v39 = vpop.eup %1091  ;;  %v737_v56 = vmul.f32 %v1090_v17, %v736_v54 }
 0x424   : > { %v601_v50 = vmul.f32 %v1092_v39, %v600_v49 }
 0x429   : > { %1036 = vmatmul.mubr.msk.bf16.vlgmr.msra.gmra.mrb[12].mxu0 %vm248_vm0, %v751_v38 }
 0x42f   : > { %331 = vperm.xlu0 %1073, %v1086_v14  }
 0x432   : > { %472 = vperm.xlu1 %1074, %v1088_v16  }
 0x433   : > { %747 = vperm.xlu0 %1073, %v1090_v17  }
 0x436   : > { %611 = vperm.xlu1 %1074, %v1092_v39  }
 0x44e   : > { %v324_v41 = vpop.xlane.xlu1 %323 }
 0x44f   : > { %v325_v42 = vadd.f32 %v324_v41, %v321_v0 }
 0x451   : > { %327 = vst.msk [vmem:[#allocation3] sm:$0xff] %vm239_vm2, %v325_v42 }
 0x458   : > { %v806_v43 = vld [vmem:[#allocation3] sm:$0xff] }
 0x459   : > { %1093 = vrcp.f32 %v806_v43 }
 0x463   : > { %v1094_v44 = vpop.eup %1093 }
 0x464   : > { %811 = vperm.xlu1 %1074, %v1094_v44  }
 0x49e   : > { %v465_v47 = vpop.xlane.xlu0 %464 }
 0x49f   : > { %v466_v48 = vadd.f32 %v465_v47, %v462_v46 }
 0x4a1   : > { %467 = vst.msk [vmem:[#allocation3 + $0x8] sm:$0xff] %vm239_vm2, %v466_v48 }
 0x4a6   : > { %v604_v51 = vpop.xlane.xlu0 %603 }
 0x4a7   : > { %v605_v52 = vadd.f32 %v604_v51, %v601_v50 }
 0x4a8   : > { %v815_v53 = vld [vmem:[#allocation3 + $0x8] sm:$0xff] }
 0x4a9   : > { %606 = vst.msk [vmem:[#allocation3 + $0x10] sm:$0xff] %vm239_vm2, %v605_v52  ;;  %1095 = vrcp.f32 %v815_v53 }
 0x4ae   : > { %v740_v57 = vpop.xlane.xlu1 %739  ;;  %v332_v58 = vpop.permute.xlu0 %331 }
 0x4af   : > { %v741_v59 = vadd.f32 %v740_v57, %v737_v56  ;;  %v334_v60 = vmul.f32 %v332_v58, %v328_v55 }
 0x4b0   : > { %v824_v61 = vld [vmem:[#allocation3 + $0x10] sm:$0xff] }
 0x4b1   : > { %742 = vst.msk [vmem:[#allocation3 + $0x18] sm:$0xff] %vm239_vm2, %v741_v59  ;;  %v383_v62 = vadd.f32 %v1259_v34, %v334_v60  ;;  %1097 = vrcp.f32 %v824_v61 }
 0x4b2   : > { %v473_v5 = vpop.permute.xlu1 %472  ;;  %v748_v23 = vpop.permute.xlu0 %747 }
 0x4b3   : > { %v1096_v63 = vpop.eup %1095  ;;  %384 = vst.msk [vmem:[#allocation4] sm:$0xff] %vm248_vm0, %v383_v62  ;;  %v475_v6 = vmul.f32 %v473_v5, %v469_v4  ;;  %v750_v24 = vmul.f32 %v748_v23, %v744_v22 }
 0x4b4   : > { %820 = vperm.xlu0 %1073, %v1096_v63  }
 0x4b6   : > { %v612_v12 = vpop.permute.xlu1 %611 }
 0x4b7   : > { %v614_v13 = vmul.f32 %v612_v12, %v608_v11 }
 0x4b8   : > { %v833_v1 = vld [vmem:[#allocation3 + $0x18] sm:$0xff] }
 0x4b9   : > { %1099 = vrcp.f32 %v833_v1 }
 0x4ba   : > { %v808_v17 = vld [vmem:[#allocation4] sm:$0xff] }
 0x4bb   : > { %v1098_v2 = vpop.eup %1097 }
 0x4bc   : > { %829 = vperm.xlu1 %1074, %v1098_v2  }
 0x4c3   : > { %v1100_v3 = vpop.eup %1099 }
 0x4c4   : > { %838 = vperm.xlu0 %1073, %v1100_v3  }
 0x4e3   : > { %v812_v33 = vpop.permute.xlu1 %811 }
 0x4e4   : > { %v814_v40 = vmul.f32 %v812_v33, %v808_v17 }
 0x4ec   : > { %v522_v7 = vpop.f32.mrb[4].mxu0 }
 0x4ed   : > { %v528_v8 = vadd.f32 %v522_v7, %v475_v6  ;;  %v1013_v9 = vpop.f32.mrb[5].mxu0 }
 0x4ee   : > { %v525_v10 = vpop.f32.mrb[6].mxu0 }
 0x4ef   : > { %529 = vst.msk [vmem:[#allocation4 + $0x8] sm:$0xff] %vm248_vm0, %v528_v8  ;;  %v1014_v34 = vpop.f32.mrb[7].mxu0 }
 0x4f4   : > { %v658_v15 = vpop.f32.mrb[8].mxu0 }
 0x4f5   : > { %v664_v18 = vadd.f32 %v658_v15, %v614_v13  ;;  %v1025_v19 = vpop.f32.mrb[9].mxu0 }
 0x4f6   : > { %v661_v20 = vpop.f32.mrb[10].mxu0  ;;  %v817_v31 = vld [vmem:[#allocation4 + $0x8] sm:$0xff] }
 0x4f7   : > { %665 = vst.msk [vmem:[#allocation4 + $0x10] sm:$0xff] %vm248_vm0, %v664_v18  ;;  %v1026_v21 = vpop.f32.mrb[11].mxu0 }
 0x4fc   : > { %v794_v25 = vpop.f32.mrb[12].mxu0 }
 0x4fd   : > { %v800_v26 = vadd.f32 %v794_v25, %v750_v24  ;;  %v1037_v27 = vpop.f32.mrb[13].mxu0 }
 0x4fe   : > { %v797_v28 = vpop.f32.mrb[14].mxu0  ;;  %v826_v36 = vld [vmem:[#allocation4 + $0x10] sm:$0xff] }
 0x4ff   : > { %801 = vst.msk [vmem:[#allocation4 + $0x18] sm:$0xff] %vm248_vm0, %v800_v26  ;;  %v1038_v29 = vpop.f32.mrb[15].mxu0 }
 0x506   : > { %v835_v14 = vld [vmem:[#allocation4 + $0x18] sm:$0xff] }
 0x533   : > { %v821_v30 = vpop.permute.xlu0 %820 }
 0x534   : > { %v823_v32 = vmul.f32 %v821_v30, %v817_v31 }
 0x536   : > { %843 = vrot.lane.b32.xlu1 %v823_v32, %s1132_s29 }
 0x53b   : > { %v830_v35 = vpop.permute.xlu1 %829 }
 0x53c   : > { %v832_v37 = vmul.f32 %v830_v35, %v826_v36 }
 0x53e   : > { %847 = vrot.lane.b32.xlu0 %v832_v37, %s1133_s30 }
 0x543   : > { %v839_v38 = vpop.permute.xlu0 %838 }
 0x544   : > { %v841_v16 = vmul.f32 %v839_v38, %v835_v14 }
 0x546   : > { %851 = vrot.lane.b32.xlu1 %v841_v16, %s1134_s4 }
 0x5a8   : > { %v844_v39 = vpop.permute.xlu1 %843 }
 0x5a9   : > { %v854_v41 = vsel %vm248_vm0, %v814_v40, %v844_v39 }
 0x5b0   : > { %v848_v0 = vpop.permute.xlu0 %847 }
 0x5b1   : > { %v856_v42 = vsel %vm855_vm4, %v854_v41, %v848_v0 }
 0x5b8   : > { %v852_v43 = vpop.permute.xlu1 %851 }
 0x5b9   : > { %v858_v44 = vsel %vm857_vm5, %v856_v42, %v852_v43 }
 0x5ba   : > { %v859_v45 = vpack.c.bf16 %v858_v44, %v858_v44 }
 0x5bc   : > { %861 = vst.msk [vmem:[%s233_s7] sm:$0xf] %vm860_vm6, %v859_v45 }
 0x5bd PF: > { %s13_s14 = sadd.s32 1, %s1123_s14   ;;  %s1323_s12 = smov %s1119_s13 }
 0x5be   : > { %p10_p5 = scmp.ge.s32.totalorder %s13_s14, 4   ;;  %s1324_s13 = smov %s1326_s15 }
 0x5c0   :  { %12 = sbr.rel (!%p10_p5) target bundleno = 2 (0x2), region = 85 }

// kernel: transformer_decoder_forward.37
= control target key start
LH: loop header
LB: loop body
LE: loop exit
PB: predicated region body
PF: predicated region fallthrough
CT: control target
= control target key end

     0   :  { %vm52_vm0 = vcmask 261120   ;;  %vm124_vm1 = vcmask 519168   ;;  %s211_s1 = inlined_call_operand.vmem [shape: bf16[32,64], index: 1, kind: input, shape index: {}]   ;;  %s212_s0 = inlined_call_operand.vmem [shape: bf16[32,32], index: 0, kind: input, shape index: {}]   ;;  %s213_s2 = inlined_call_operand.vmem [shape: f32[1,64], index: 2, kind: input, shape index: {}]   ;;  %s214_s3 = inlined_call_operand.vmem [shape: bf16[32,64], index: 3, kind: output, shape index: {}]  }
   0x1   :  { %v160_v0 = vld [vmem:[%s211_s1] sm:$0xff]   ;;  %v161_v1 = vld [vmem:[%s211_s1 + $0x8] sm:$0xff]  }
   0x2   :  { %152 = vmatprep.subr.bf16.mxu0 %v160_v0  ;;  %v162_v2 = vld [vmem:[%s212_s0] sm:$0xff]   ;;  %v163_v3 = vld [vmem:[%s212_s0 + $0x8] sm:$0xff]  }
   0x3   :  { %153 = vmatpush3.bf16.msra.mxu0 %v160_v0  ;;  %156 = vmatprep.mubr.msk.bf16.mxu0 %vm52_vm0, %v162_v2  ;;  %v133_v4 = vld [vmem:[%s213_s2] ss:$0 sm:$0xff] }
   0x4   :  { %154 = vmatprep.subr.bf16.mxu0 %v161_v1 }
   0x7   :  { %155 = vmatpush3.bf16.msra.mxu0 %v161_v1 }
   0xa   :  { %157 = vmatmul.mubr.msk.bf16.vlgmr.msra.gmra.mrb[0].mxu0 %vm52_vm0, %v163_v3 }
  0xdd   :  { %v158_v5 = vpop.f32.mrb[0].mxu0 }
  0xde   :  { %v102_v6 = vadd.f32 %v158_v5, %v133_v4  ;;  %v93_v7 = vpop.f32.mrb[1].mxu0 }
  0xdf   :  { %v94_v8 = vadd.f32 %v133_v4, %v93_v7  ;;  %v159_v9 = vpop.f32.mrb[2].mxu0 }
  0xe0   :  { %v146_v10 = vpack.c.bf16 %v102_v6, %v102_v6  ;;  %v105_v11 = vadd.f32 %v159_v9, %v133_v4  ;;  %v96_v12 = vpop.f32.mrb[3].mxu0 }
  0xe1   :  { %v144_v13 = vpack.c.bf16 %v94_v8, %v94_v8  ;;  %v97_v14 = vadd.f32 %v133_v4, %v96_v12 }
  0xe2   :  { %127 = vst.msk [vmem:[%s214_s3 + $0x8] sm:$0xf] %vm124_vm1, %v146_v10  ;;  %v147_v15 = vpack.c.bf16 %v105_v11, %v105_v11 }
  0xe3   :  { %125 = vst.msk [vmem:[%s214_s3] sm:$0xf] %vm124_vm1, %v144_v13  ;;  %v145_v16 = vpack.c.bf16 %v97_v14, %v97_v14 }
  0xe4   :  { %128 = vst.msk [vmem:[%s214_s3 + $0xc] sm:$0xf] %vm124_vm1, %v147_v15 }
  0xe5   :  { %126 = vst.msk [vmem:[%s214_s3 + $0x4] sm:$0xf] %vm124_vm1, %v145_v16 }

// kernel: transformer_decoder_forward.36
= control target key start
LH: loop header
LB: loop body
LE: loop exit
PB: predicated region body
PF: predicated region fallthrough
CT: control target
= control target key end

     0   :  { %v136_v0 = vmov 0.0   ;;  %vm137_vm0 = vmmov 0   ;;  %vm52_vm1 = vcmask 261120   ;;  %vm105_vm2 = vcmask 257024   ;;  %s190_s2 = inlined_call_operand.vmem [shape: bf16[32,32], index: 2, kind: input, shape index: {}]   ;;  %s191_s0 = inlined_call_operand.vmem [shape: bf16[16,32], index: 0, kind: input, shape index: {}]   ;;  %s192_s1 = inlined_call_operand.vmem [shape: bf16[16,32], index: 1, kind: input, shape index: {}]   ;;  %s193_s3 = inlined_call_operand.vmem [shape: f32[1,32], index: 3, kind: input, shape index: {}]   ;;  %s194_s4 = inlined_call_operand.vmem [shape: bf16[16,32], index: 4, kind: output, shape index: {}]  }
   0x1   :  { %124 = vmatprep.subr.bf16.mxu0 %v136_v0  ;;  %v134_v1 = vld [vmem:[%s190_s2] sm:$0xff]   ;;  %128 = vmatprep.mubr.msk.bf16.mxu0 %vm137_vm0, %v136_v0  ;;  %v135_v2 = vld [vmem:[%s190_s2 + $0x8] sm:$0xff]  }
   0x2   :  { %125 = vmatpush3.bf16.msra.mxu0 %v134_v1  ;;  %v18_v3 = vld [vmem:[%s191_s0] sm:$0xf]  ;;  %v19_v4 = vld [vmem:[%s191_s0 + $0x4] sm:$0xf] }
   0x3   :  { %v20_v5 = vld [vmem:[%s192_s1] sm:$0xf]  ;;  %126 = vmatprep.subr.bf16.mxu0 %v136_v0  ;;  %v21_v6 = vld [vmem:[%s192_s1 + $0x4] sm:$0xf] }
   0x4   :  { %v22_v7 = vadd.bf16 %v20_v5, %v18_v3  ;;  %v23_v8 = vadd.bf16 %v21_v6, %v19_v4  ;;  %v112_v10 = vld [vmem:[%s193_s3] ss:$0 sm:$0xff] }
   0x6   :  { %127 = vmatpush3.bf16.msra.mxu0 %v135_v2  ;;  %v113_v9 = vcombine.low %v22_v7, %v23_v8 }
   0x9   :  { %129 = vmatmul.mubr.msk.bf16.vlgmr.msra.gmra.mrb[0].mxu0 %vm52_vm1, %v113_v9 }
  0xdc   :  { %v90_v11 = vpop.f32.mrb[0].mxu0 }
  0xdd   :  { %v91_v12 = vadd.f32 %v112_v10, %v90_v11  ;;  %v130_v13 = vpop.f32.mrb[1].mxu0 }
  0xde   :  { %v93_v14 = vpop.f32.mrb[2].mxu0 }
  0xdf   :  { %v119_v15 = vpack.c.bf16 %v91_v12, %v91_v12  ;;  %v94_v16 = vadd.f32 %v112_v10, %v93_v14  ;;  %v131_v17 = vpop.f32.mrb[3].mxu0 }
  0xe1   :  { %106 = vst.msk [vmem:[%s194_s4] sm:$0xf] %vm105_vm2, %v119_v15  ;;  %v120_v18 = vpack.c.bf16 %v94_v16, %v94_v16 }
  0xe3   :  { %107 = vst.msk [vmem:[%s194_s4 + $0x4] sm:$0xf] %vm105_vm2, %v120_v18 }

// kernel: transformer_decoder_forward.41
= control target key start
LH: loop header
LB: loop body
LE: loop exit
PB: predicated region body
PF: predicated region fallthrough
CT: control target
= control target key end

     0   :  { %v132_v0 = vmov 0.0   ;;  %vm133_vm0 = vmmov 0   ;;  %vm45_vm1 = vcmask 261120   ;;  %vm100_vm2 = vcmask 257024   ;;  %s172_s1 = inlined_call_operand.vmem [shape: bf16[32,32], index: 1, kind: input, shape index: {}]   ;;  %s173_s0 = inlined_call_operand.vmem [shape: bf16[16,32], index: 0, kind: input, shape index: {}]   ;;  %s174_s2 = inlined_call_operand.vmem [shape: f32[1,32], index: 2, kind: input, shape index: {}]   ;;  %s175_s3 = inlined_call_operand.vmem [shape: bf16[16,32], index: 3, kind: output, shape index: {}]  }
   0x1   :  { %119 = vmatprep.subr.bf16.mxu0 %v132_v0  ;;  %v129_v1 = vld [vmem:[%s172_s1] sm:$0xff]   ;;  %123 = vmatprep.mubr.msk.bf16.mxu0 %vm133_vm0, %v132_v0  ;;  %v130_v2 = vld [vmem:[%s172_s1 + $0x8] sm:$0xff]  }
   0x2   :  { %120 = vmatpush3.bf16.msra.mxu0 %v129_v1  ;;  %v131_v3 = vld [vmem:[%s173_s0] sm:$0xff]  }
   0x3   :  { %121 = vmatprep.subr.bf16.mxu0 %v132_v0  ;;  %v107_v4 = vld [vmem:[%s174_s2] ss:$0 sm:$0xff] }
   0x6   :  { %122 = vmatpush3.bf16.msra.mxu0 %v130_v2 }
   0x9   :  { %124 = vmatmul.mubr.msk.bf16.vlgmr.msra.gmra.mrb[0].mxu0 %vm45_vm1, %v131_v3 }
  0xdc   :  { %v83_v5 = vpop.f32.mrb[0].mxu0 }
  0xdd   :  { %v84_v6 = vadd.f32 %v107_v4, %v83_v5  ;;  %v125_v7 = vpop.f32.mrb[1].mxu0 }
  0xde   :  { %v86_v8 = vpop.f32.mrb[2].mxu0 }
  0xdf   :  { %v90_v9 = vmax.f32 %v84_v6, 0.0  ;;  %v87_v10 = vadd.f32 %v107_v4, %v86_v8  ;;  %v126_v11 = vpop.f32.mrb[3].mxu0 }
  0xe1   :  { %v114_v12 = vpack.c.bf16 %v90_v9, %v90_v9  ;;  %v91_v13 = vmax.f32 %v87_v10, 0.0 }
  0xe3   :  { %101 = vst.msk [vmem:[%s175_s3] sm:$0xf] %vm100_vm2, %v114_v12  ;;  %v115_v14 = vpack.c.bf16 %v91_v13, %v91_v13 }
  0xe5   :  { %102 = vst.msk [vmem:[%s175_s3 + $0x4] sm:$0xf] %vm100_vm2, %v115_v14 }

// kernel: transformer_decoder_forward.40
= control target key start
LH: loop header
LB: loop body
LE: loop exit
PB: predicated region body
PF: predicated region fallthrough
CT: control target
= control target key end

     0   :  { %v312_v0 = vmov 0.0   ;;  %vm313_vm0 = vmmov 0   ;;  %vm57_vm1 = vcmask 261120   ;;  %vm144_vm2 = vcmask 523264   ;;  %s398_s1 = inlined_call_operand.vmem [shape: bf16[32,64], index: 1, kind: input, shape index: {}]   ;;  %s399_s0 = inlined_call_operand.vmem [shape: bf16[16,32], index: 0, kind: input, shape index: {}]   ;;  %s400_s3 = inlined_call_operand.vmem [shape: bf16[64,32], index: 3, kind: input, shape index: {}]   ;;  %s401_s2 = inlined_call_operand.vmem [shape: f32[1,64], index: 2, kind: input, shape index: {}]   ;;  %s402_s4 = inlined_call_operand.vmem [shape: f32[1,32], index: 4, kind: input, shape index: {}]   ;;  %s403_s5 = inlined_call_operand.vmem [shape: f32[1,32], index: 5, kind: input, shape index: {}]   ;;  %s404_s6 = inlined_call_operand.vmem [shape: f32[1,32], index: 6, kind: input, shape index: {}]   ;;  %s405_s7 = inlined_call_operand.vmem [shape: bf16[16,32], index: 7, kind: output, shape index: {}]  }
   0x1   :  { %278 = vmatprep.subr.bf16.mxu0 %v312_v0  ;;  %v300_v1 = vld [vmem:[%s398_s1] sm:$0xff]   ;;  %282 = vmatprep.mubr.msk.bf16.mxu0 %vm313_vm0, %v312_v0  ;;  %v301_v2 = vld [vmem:[%s398_s1 + $0x8] sm:$0xff]   ;;  %v305_v6 = vld [vmem:[%s400_s3 + $0x10] sm:$0xff]   ;;  %vm246_vm3 = vcmask 257024  }
   0x2   :  { %286 = vmatprep.subr.bf16.mxu1 %v312_v0  ;;  %294 = vmatprep.mubr.msk.bf16.mxu1 %vm313_vm0, %v312_v0  ;;  %v27_v3 = vld [vmem:[%s399_s0] sm:$0xff]   ;;  %v304_v5 = vld [vmem:[%s400_s3 + $0x8] sm:$0xff]   ;;  %v306_v7 = vld [vmem:[%s400_s3 + $0x18] sm:$0xff]  }
   0x3   :  { %279 = vmatpush3.bf16.msra.mxu0 %v300_v1  ;;  %v303_v4 = vld [vmem:[%s400_s3] sm:$0xff]   ;;  %v189_v19 = vunpack.c.l.bf16 %v27_v3  ;;  %v190_v23 = vunpack.c.h.bf16 %v27_v3 }
   0x4   :  { %280 = vmatprep.subr.bf16.mxu0 %v312_v0  ;;  %287 = vmatpush3.bf16.msra.mxu1 %v303_v4  ;;  %v253_v8 = vld [vmem:[%s401_s2] ss:$0 sm:$0xff] }
   0x5   :  { %288 = vmatprep.subr.bf16.mxu1 %v312_v0  ;;  %v258_v18 = vld [vmem:[%s402_s4] ss:$0 sm:$0xff] }
   0x6   :  { %v264_v48 = vld [vmem:[%s403_s5] ss:$0 sm:$0xff] }
   0x7   :  { %281 = vmatpush3.bf16.msra.mxu0 %v301_v2  ;;  %v265_v50 = vld [vmem:[%s404_s6] ss:$0 sm:$0xff] }
   0x8   :  { %289 = vmatpush3.bf16.msra.mxu1 %v304_v5 }
   0x9   :  { %290 = vmatprep.subr.bf16.mxu1 %v312_v0 }
   0xa   :  { %283 = vmatmul.mubr.msk.bf16.vlgmr.msra.gmra.mrb[0].mxu0 %vm57_vm1, %v27_v3 }
   0xc   :  { %291 = vmatpush3.bf16.msra.mxu1 %v305_v6 }
   0xd   :  { %292 = vmatprep.subr.bf16.mxu1 %v312_v0 }
  0x10   :  { %293 = vmatpush3.bf16.msra.mxu1 %v306_v7 }
  0xdd   :  { %v95_v9 = vpop.f32.mrb[0].mxu0 }
  0xde   :  { %v96_v10 = vadd.f32 %v253_v8, %v95_v9  ;;  %v284_v11 = vpop.f32.mrb[1].mxu0 }
  0xdf   :  { %v98_v12 = vpop.f32.mrb[2].mxu0 }
  0xe0   :  { %v99_v13 = vadd.f32 %v253_v8, %v98_v12  ;;  %v285_v14 = vpop.f32.mrb[3].mxu0  ;;  %v102_v15 = vmax.f32 %v96_v10, 0.0 }
  0xe2   :  { %v103_v16 = vmax.f32 %v99_v13, 0.0 }
  0xe4   :  { %v104_v17 = vpack.c.bf16 %v103_v16, %v102_v15 }
  0xe6   :  { %295 = vmatmul.mubr.msk.bf16.vlgmr.msra.gmra.mrb[0].mxu1 %vm144_vm2, %v104_v17 }
 0x1b9   :  { %v182_v20 = vpop.f32.mrb[0].mxu1 }
 0x1ba   :  { %v183_v21 = vadd.f32 %v258_v18, %v182_v20  ;;  %v296_v22 = vpop.f32.mrb[1].mxu1 }
 0x1bb   :  { %v185_v24 = vpop.f32.mrb[2].mxu1 }
 0x1bc   :  { %v186_v25 = vadd.f32 %v258_v18, %v185_v24  ;;  %v297_v26 = vpop.f32.mrb[3].mxu1  ;;  %v191_v27 = vadd.f32 %v189_v19, %v183_v21 }
 0x1be   :  { %v193_v28 = vsel %vm57_vm1, %v191_v27, 0.0  ;;  %v192_v29 = vadd.f32 %v190_v23, %v186_v25 }
 0x1bf   :  { %194 = vadd.xlane.f32.xlu0 %v193_v28 }
 0x1c0   :  { %v196_v30 = vsel %vm57_vm1, %v192_v29, 0.0 }
 0x1c3   :  { %197 = vadd.xlane.f32.xlu0 %v196_v30 }
 0x24c   :  { %v195_v31 = vpop.xlane.xlu0 %194 }
 0x24d   :  { %v200_v32 = vmul.f32 0.03125, %v195_v31 }
 0x24f   :  { %v202_v33 = vsub.f32 %v191_v27, %v200_v32 }
 0x250   :  { %v198_v34 = vpop.xlane.xlu0 %197 }
 0x251   :  { %v201_v35 = vmul.f32 0.03125, %v198_v34  ;;  %v204_v36 = vmul.f32 %v202_v33, %v202_v33 }
 0x253   :  { %v203_v37 = vsub.f32 %v192_v29, %v201_v35  ;;  %v206_v38 = vsel %vm57_vm1, %v204_v36, 0.0 }
 0x254   :  { %207 = vadd.xlane.f32.xlu1 %v206_v38 }
 0x255   :  { %v205_v39 = vmul.f32 %v203_v37, %v203_v37 }
 0x257   :  { %v209_v40 = vsel %vm57_vm1, %v205_v39, 0.0 }
 0x258   :  { %210 = vadd.xlane.f32.xlu1 %v209_v40 }
 0x2e1   :  { %v208_v41 = vpop.xlane.xlu1 %207 }
 0x2e2   :  { %v212_v42 = vmul.f32 0.03125, %v208_v41 }
 0x2e4   :  { %v214_v43 = vadd.f32 1e-05, %v212_v42 }
 0x2e5   :  { %v211_v44 = vpop.xlane.xlu1 %210 }
 0x2e6   :  { %308 = vrsqrt.f32 %v214_v43  ;;  %v213_v45 = vmul.f32 0.03125, %v211_v44 }
 0x2e8   :  { %v215_v46 = vadd.f32 1e-05, %v213_v45 }
 0x2ea   :  { %310 = vrsqrt.f32 %v215_v46 }
 0x2f0   :  { %v309_v47 = vpop.eup %308 }
 0x2f1   :  { %v218_v49 = vmul.f32 %v309_v47, %v202_v33 }
 0x2f3   :  { %v227_v51 = vmul.f32 %v264_v48, %v218_v49 }
 0x2f4   :  { %v311_v52 = vpop.eup %310 }
 0x2f5   :  { %v236_v53 = vadd.f32 %v265_v50, %v227_v51  ;;  %v219_v54 = vmul.f32 %v311_v52, %v203_v37 }
 0x2f7   :  { %v268_v55 = vpack.c.bf16 %v236_v53, %v236_v53  ;;  %v228_v56 = vmul.f32 %v264_v48, %v219_v54 }
 0x2f9   :  { %247 = vst.msk [vmem:[%s405_s7] sm:$0xf] %vm246_vm3, %v268_v55  ;;  %v237_v57 = vadd.f32 %v265_v50, %v228_v56 }
 0x2fb   :  { %v269_v58 = vpack.c.bf16 %v237_v57, %v237_v57 }
 0x2fd   :  { %248 = vst.msk [vmem:[%s405_s7 + $0x4] sm:$0xf] %vm246_vm3, %v269_v58 }

// kernel: transformer_decoder_forward.43
= control target key start
LH: loop header
LB: loop body
LE: loop exit
PB: predicated region body
PF: predicated region fallthrough
CT: control target
= control target key end

     0   :  { %v130_v0 = vmov 0.0   ;;  %vm131_vm0 = vmmov 0   ;;  %vm45_vm1 = vcmask 261120   ;;  %vm98_vm2 = vcmask 27648   ;;  %s170_s1 = inlined_call_operand.vmem [shape: bf16[32,4], index: 1, kind: input, shape index: {}]   ;;  %s171_s0 = inlined_call_operand.vmem [shape: bf16[16,32], index: 0, kind: input, shape index: {}]   ;;  %s172_s2 = inlined_call_operand.vmem [shape: f32[1,4], index: 2, kind: input, shape index: {}]   ;;  %s173_s3 = inlined_call_operand.vmem [shape: bf16[16,4], index: 3, kind: output, shape index: {}]  }
   0x1   :  { %117 = vmatprep.subr.bf16.mxu0 %v130_v0  ;;  %v127_v1 = vld [vmem:[%s170_s1] sm:$0xff]   ;;  %121 = vmatprep.mubr.msk.bf16.mxu0 %vm131_vm0, %v130_v0  ;;  %v128_v2 = vld [vmem:[%s170_s1 + $0x8] sm:$0xff]  }
   0x2   :  { %118 = vmatpush3.bf16.msra.mxu0 %v127_v1  ;;  %v129_v3 = vld [vmem:[%s171_s0] sm:$0xff]  }
   0x3   :  { %119 = vmatprep.subr.bf16.mxu0 %v130_v0  ;;  %v105_v4 = vld [vmem:[%s172_s2] ss:$0 sm:$0xff] }
   0x6   :  { %120 = vmatpush3.bf16.msra.mxu0 %v128_v2 }
   0x9   :  { %122 = vmatmul.mubr.msk.bf16.vlgmr.msra.gmra.mrb[0].mxu0 %vm45_vm1, %v129_v3 }
  0xdc   :  { %v83_v5 = vpop.f32.mrb[0].mxu0 }
  0xdd   :  { %v84_v6 = vadd.f32 %v105_v4, %v83_v5  ;;  %v123_v7 = vpop.f32.mrb[1].mxu0 }
  0xde   :  { %v86_v8 = vpop.f32.mrb[2].mxu0 }
  0xdf   :  { %v112_v9 = vpack.c.bf16 %v84_v6, %v84_v6  ;;  %v87_v10 = vadd.f32 %v105_v4, %v86_v8  ;;  %v124_v11 = vpop.f32.mrb[3].mxu0 }
  0xe1   :  { %99 = vst.msk [vmem:[%s173_s3] sm:$0xf] %vm98_vm2, %v112_v9  ;;  %v113_v12 = vpack.c.bf16 %v87_v10, %v87_v10 }
  0xe3   :  { %100 = vst.msk [vmem:[%s173_s3 + $0x4] sm:$0xf] %vm98_vm2, %v113_v12 }

// kernel: transformer_decoder_forward.38
= control target key start
LH: loop header
LB: loop body
LE: loop exit
PB: predicated region body
PF: predicated region fallthrough
CT: control target
= control target key end

     0   :  { %s1178_s12 = smov 0   ;;  %s1180_s13 = smov 0   ;;  %s1342_s0 = inlined_call_operand.vmem [shape: bf16[2,8,32], index: 0, kind: input, shape index: {}]   ;;  %s1343_s1 = inlined_call_operand.vmem [shape: bf16[2,16,32], index: 1, kind: input, shape index: {}]   ;;  %s1344_s2 = inlined_call_operand.vmem [shape: bf16[2,16,32], index: 2, kind: input, shape index: {}]   ;;  %s1345_s3 = inlined_call_operand.vmem [shape: bf16[2,8,32], index: 3, kind: output, shape index: {}]  }
   0x1   :  { %s1182_s14 = smov 0  }
   0x2 LB: > { %s25_s15 = sadd.s32 1, %s1142_s13  ;;  %p976_p0 = scmp.ge.s32.totalorder %s1146_s14, 1  ;;  %s1146_s14 = sphi %s1182_s14, %s13_s14   ;;  %s1142_s13 = sphi %s1180_s13, %s1347_s13   ;;  %s1138_s12 = sphi %s1178_s12, %s1346_s12  }
   0x3   : > { %p27_p1 = scmp.ge.s32.totalorder %s25_s15, 2  ;;  %p182_p2 = scmp.lt.s32.totalorder %s1146_s14, 3 }
   0x5   : > { %s1349_s15 = smov (%p27_p1, %s25_s15), 0  ;;  %p183_p3 = pnand %p976_p0, %p182_p2 }
   0x6   : > { %p222_p4 = scmp.lt.s32.totalorder (!%p183_p3), %s1138_s12, 1  ;;  %vm264_vm0 = vcmask (!%p183_p3), 64512   ;;  %v1148_v0 = vmov (!%p183_p3), 0.0   ;;  %vm1149_vm1 = vmmov (!%p183_p3), 0   ;;  %vm255_vm2 = vcmask (!%p183_p3), 7168   ;;  %s1152_s24 = smov (!%p183_p3), 120  }
   0x7   : > { %186 = sbr.rel (%p183_p3) target bundleno = 1469 (0x5bd), region = 32  ;;  %1014 = vmatprep.subr.bf16.mxu0 (!%p183_p3), %v1148_v0  ;;  %265 = vst.msk [vmem:[#allocation4] sm:$0xff] (!%p183_p3), %vm264_vm0, %v1148_v0  ;;  %266 = vst.msk [vmem:[#allocation4 + $0x8] sm:$0xff] (!%p183_p3), %vm264_vm0, %v1148_v0  ;;  %1016 = vmatprep.mubr.msk.bf16.mxu0 (!%p183_p3), %vm1149_vm1, %v1148_v0  ;;  %v1150_v4 = vmov (!%p183_p3), -1e+30   ;;  %vm328_vm3 = vcmask (!%p183_p3), 130048  }
   0x8   : > { %267 = vst.msk [vmem:[#allocation4 + $0x10] sm:$0xff] (!%p183_p3), %vm264_vm0, %v1148_v0  ;;  %268 = vst.msk [vmem:[#allocation4 + $0x18] sm:$0xff] (!%p183_p3), %vm264_vm0, %v1148_v0  ;;  %1020 = vmatprep.subr.bf16.mxu1 (!%p183_p3), %v1148_v0  ;;  %1022 = vmatprep.mubr.msk.bf16.mxu1 (!%p183_p3), %vm1149_vm1, %v1148_v0  ;;  %v1151_v11 = vmov (!%p183_p3), 0   ;;  %s1153_s25 = smov (!%p183_p3), 112   ;;  %s1154_s26 = smov (!%p183_p3), 104   ;;  %vm870_vm4 = vcmask (!%p183_p3), 195584  }
   0x9   : > { %256 = vst.msk [vmem:[#allocation2] sm:$0xff] (!%p183_p3), %vm255_vm2, %v1150_v4  ;;  %257 = vst.msk [vmem:[#allocation2 + $0x8] sm:$0xff] (!%p183_p3), %vm255_vm2, %v1150_v4  ;;  %1096 = vset.pattern.permute.xlu0 (!%p183_p3), %v1151_v11  ;;  %1097 = vset.pattern.permute.xlu1 (!%p183_p3), %v1151_v11  ;;  %s1155_s30 = smov (!%p183_p3), 8   ;;  %s1156_s4 = smov (!%p183_p3), 16   ;;  %vm873_vm5 = vcmask (!%p183_p3), 257024  }
   0xa   : > { %258 = vst.msk [vmem:[#allocation2 + $0x10] sm:$0xff] (!%p183_p3), %vm255_vm2, %v1150_v4  ;;  %259 = vst.msk [vmem:[#allocation2 + $0x18] sm:$0xff] (!%p183_p3), %vm255_vm2, %v1150_v4  ;;  %s1157_s5 = smov (!%p183_p3), 24  }
   0xb   : > { %260 = vst.msk [vmem:[#allocation3] sm:$0xff] (!%p183_p3), %vm255_vm2, %v1148_v0  ;;  %261 = vst.msk [vmem:[#allocation3 + $0x8] sm:$0xff] (!%p183_p3), %vm255_vm2, %v1148_v0 }
   0xc   : > { %262 = vst.msk [vmem:[#allocation3 + $0x10] sm:$0xff] (!%p183_p3), %vm255_vm2, %v1148_v0  ;;  %263 = vst.msk [vmem:[#allocation3 + $0x18] sm:$0xff] (!%p183_p3), %vm255_vm2, %v1148_v0 }
   0xe   : > { %s1351_s12 = smov (!%p222_p4, %s1138_s12), 1 }
   0xf   : > { %s996_s16 = sshll.u32 %s1351_s12, 3  ;;  %s977_s20 = sshll.u32 %s1351_s12, 2 }
  0x10   : > { %s234_s19 = scalar_lea.vmem %s1343_s1, %s996_s16  ;;  %s225_s23 = scalar_lea.vmem %s1342_s0, %s977_s20  ;;  %v1248_v13 = vld [vmem:[#allocation2] sm:$0xff]  ;;  %v467_v54 = vld [vmem:[#allocation2 + $0x8] sm:$0xff] }
  0x11   : > { %v1098_v1 = vld [vmem:[%s234_s19] sm:$0xff]   ;;  %s244_s29 = scalar_lea.vmem %s1344_s2, %s996_s16  ;;  %v601_v58 = vld [vmem:[#allocation2 + $0x10] sm:$0xff]  ;;  %v735_v62 = vld [vmem:[#allocation2 + $0x18] sm:$0xff]  ;;  %s249_s8 = scalar_lea.vmem %s1345_s3, %s977_s20 }
  0x12   : > { %v284_v2 = vsel %vm264_vm0, %v1098_v1, 0  ;;  %v269_v3 = vld [vmem:[%s225_s23] sm:$0xf]  ;;  %417 = vrot.lane.b32.xlu1 %v1098_v1, %s1152_s24 }
  0x13   : > { %1015 = vmatpush3.bf16.xpose.msra.mxu0 %v284_v2  ;;  %v987_v12 = vcombine.low %v269_v3, %v269_v3  ;;  %v1263_v17 = vld [vmem:[%s244_s29] sm:$0xff]  }
  0x14   : > { %1032 = vmatprep.subr.bf16.mxu0 %v1148_v0  ;;  %1021 = vmatpush3.bf16.msra.mxu1 %v1263_v17 }
  0x15   : > { %1026 = vmatprep.subr.bf16.mxu1 %v1148_v0 }
  0x16   : > { %415 = vrot.lane.b32.xlu1 %v987_v12, %s1152_s24 }
  0x1a   : > { %1017 = vmatmul.mubr.msk.bf16.vlgmr.msra.gmra.mrb[0].mxu0 %vm264_vm0, %v269_v3  ;;  %551 = vrot.lane.b32.xlu1 %v1098_v1, %s1153_s25 }
  0x1b   : > { %1034 = vmatprep.mubr.msk.bf16.mxu0 %vm1149_vm1, %v1148_v0 }
  0x1e   : > { %549 = vrot.lane.b32.xlu1 %v987_v12, %s1153_s25 }
  0x22   : > { %685 = vrot.lane.b32.xlu1 %v1098_v1, %s1154_s26 }
  0x26   : > { %683 = vrot.lane.b32.xlu1 %v987_v12, %s1154_s26 }
  0x84   : > { %v418_v21 = vpop.permute.xlu1 %417 }
  0x85   : > { %v423_v24 = vsel %vm264_vm0, %v418_v21, 0 }
  0x88   : > { %v416_v22 = vpop.permute.xlu1 %415 }
  0x8c   : > { %v552_v26 = vpop.permute.xlu1 %551 }
  0x8d   : > { %v557_v28 = vsel %vm264_vm0, %v552_v26, 0 }
  0x90   : > { %v550_v27 = vpop.permute.xlu1 %549 }
  0x94   : > { %v686_v29 = vpop.permute.xlu1 %685 }
  0x95   : > { %v691_v30 = vsel %vm264_vm0, %v686_v29, 0 }
  0x98   : > { %v684_v31 = vpop.permute.xlu1 %683 }
  0xed   : > { %v320_v5 = vpop.f32.mrb[0].mxu0 }
  0xee   : > { %v326_v6 = vmul.f32 0.35355338, %v320_v5  ;;  %v1018_v7 = vpop.f32.mrb[1].mxu0 }
  0xef   : > { %v323_v8 = vpop.f32.mrb[2].mxu0 }
  0xf0   : > { %v1019_v9 = vpop.f32.mrb[3].mxu0  ;;  %v329_v10 = vsel %vm328_vm3, %v326_v6, -inf }
  0xf1   : > { %330 = vmax.xlane.f32.xlu0 %v329_v10 }
 0x17e   : > { %v331_v14 = vpop.xlane.xlu0 %330 }
 0x17f   : > { %v1251_v15 = vmax.f32 %v1248_v13, %v331_v14 }
 0x181   : > { %v333_v16 = vsub.f32 %v1248_v13, %v1251_v15  ;;  %411 = vst.msk [vmem:[#allocation2] sm:$0xff] %vm255_vm2, %v1251_v15  ;;  %338 = vperm.xlu0 %1096, %v1251_v15  }
 0x183   : > { %v334_v26 = vmul.f32 1.442695, %v333_v16 }
 0x200   : > { %v339_v18 = vpop.permute.xlu0 %338 }
 0x201   : > { %v341_v19 = vsub.f32 %v326_v6, %v339_v18 }
 0x203   : > { %v342_v20 = vmul.f32 1.442695, %v341_v19 }
 0x205   : > { %1100 = vpow2.f32 %v342_v20 }
 0x20f   : > { %v1267_v23 = vpop.eup %1100 }
 0x210   : > { %v359_v25 = vpack.c.bf16 %v1267_v23, %v1267_v23  ;;  %v346_v3 = vsel %vm328_vm3, %v1267_v23, 0.0 }
 0x212   : > { %1023 = vmatmul.mubr.msk.bf16.vlgmr.msra.gmra.mrb[0].mxu1 %vm328_vm3, %v359_v25 }
 0x213   : > { %1027 = vmatpush3.bf16.xpose.msra.mxu1 %v423_v24  ;;  %1028 = vmatprep.mubr.msk.bf16.mxu1 %vm1149_vm1, %v1148_v0 }
 0x214   : > { %1038 = vmatprep.subr.bf16.mxu1 %v1148_v0 }
 0x21a   : > { %1029 = vmatmul.mubr.msk.bf16.vlgmr.msra.gmra.mrb[4].mxu1 %vm264_vm0, %v416_v22 }
 0x21b   : > { %1039 = vmatpush3.bf16.xpose.msra.mxu1 %v557_v28  ;;  %1040 = vmatprep.mubr.msk.bf16.mxu1 %vm1149_vm1, %v1148_v0 }
 0x21c   : > { %1050 = vmatprep.subr.bf16.mxu1 %v1148_v0 }
 0x222   : > { %1041 = vmatmul.mubr.msk.bf16.vlgmr.msra.gmra.mrb[8].mxu1 %vm264_vm0, %v550_v27 }
 0x223   : > { %1051 = vmatpush3.bf16.xpose.msra.mxu1 %v691_v30  ;;  %1052 = vmatprep.mubr.msk.bf16.mxu1 %vm1149_vm1, %v1148_v0 }
 0x22a   : > { %1053 = vmatmul.mubr.msk.bf16.vlgmr.msra.gmra.mrb[12].mxu1 %vm264_vm0, %v684_v31 }
 0x2e5   : > { %v1286_v32 = vpop.f32.mrb[0].mxu1 }
 0x2e6   : > { %v1024_v33 = vpop.f32.mrb[1].mxu1 }
 0x2e7   : > { %v406_v34 = vpop.f32.mrb[2].mxu1 }
 0x2e8   : > { %v1025_v35 = vpop.f32.mrb[3].mxu1  ;;  %v344_v34 = vld [vmem:[#allocation3] sm:$0xff] }
 0x2ed   : > { %v459_v36 = vpop.f32.mrb[4].mxu1 }
 0x2ee   : > { %v465_v37 = vmul.f32 0.35355338, %v459_v36  ;;  %v1030_v38 = vpop.f32.mrb[5].mxu1 }
 0x2ef   : > { %v462_v39 = vpop.f32.mrb[6].mxu1 }
 0x2f0   : > { %v1031_v40 = vpop.f32.mrb[7].mxu1  ;;  %v468_v41 = vsel %vm328_vm3, %v465_v37, -inf  ;;  %v484_v39 = vld [vmem:[#allocation3 + $0x8] sm:$0xff] }
 0x2f1   : > { %469 = vmax.xlane.f32.xlu1 %v468_v41 }
 0x2f5   : > { %v593_v42 = vpop.f32.mrb[8].mxu1 }
 0x2f6   : > { %v599_v43 = vmul.f32 0.35355338, %v593_v42  ;;  %v1042_v44 = vpop.f32.mrb[9].mxu1 }
 0x2f7   : > { %v596_v45 = vpop.f32.mrb[10].mxu1 }
 0x2f8   : > { %v1043_v46 = vpop.f32.mrb[11].mxu1  ;;  %v602_v47 = vsel %vm328_vm3, %v599_v43, -inf }
 0x2f9   : > { %603 = vmax.xlane.f32.xlu0 %v602_v47 }
 0x2fd   : > { %v727_v48 = vpop.f32.mrb[12].mxu1 }
 0x2fe   : > { %v733_v49 = vmul.f32 0.35355338, %v727_v48  ;;  %v1054_v50 = vpop.f32.mrb[13].mxu1  ;;  %v752_v48 = vld [vmem:[#allocation3 + $0x18] sm:$0xff] }
 0x2ff   : > { %v730_v51 = vpop.f32.mrb[14].mxu1 }
 0x300   : > { %v1055_v52 = vpop.f32.mrb[15].mxu1  ;;  %v736_v53 = vsel %vm328_vm3, %v733_v49, -inf }
 0x301   : > { %737 = vmax.xlane.f32.xlu1 %v736_v53 }
 0x37e   : > { %v470_v55 = vpop.xlane.xlu1 %469 }
 0x37f   : > { %v471_v56 = vmax.f32 %v467_v54, %v470_v55 }
 0x381   : > { %v472_v57 = vsub.f32 %v467_v54, %v471_v56  ;;  %548 = vst.msk [vmem:[#allocation2 + $0x8] sm:$0xff] %vm255_vm2, %v471_v56  ;;  %477 = vperm.xlu1 %1097, %v471_v56  }
 0x383   : > { %v473_v28 = vmul.f32 1.442695, %v472_v57 }
 0x386   : > { %v604_v59 = vpop.xlane.xlu0 %603 }
 0x387   : > { %v605_v60 = vmax.f32 %v601_v58, %v604_v59 }
 0x389   : > { %v606_v61 = vsub.f32 %v601_v58, %v605_v60  ;;  %682 = vst.msk [vmem:[#allocation2 + $0x10] sm:$0xff] %vm255_vm2, %v605_v60  ;;  %611 = vperm.xlu0 %1096, %v605_v60  }
 0x38b   : > { %v607_v31 = vmul.f32 1.442695, %v606_v61  ;;  %v492_v61 = vld [vmem:[#allocation4 + $0x8] sm:$0xff] }
 0x38e   : > { %v738_v63 = vpop.xlane.xlu1 %737 }
 0x38f   : > { %v739_v1 = vmax.f32 %v735_v62, %v738_v63 }
 0x391   : > { %v740_v2 = vsub.f32 %v735_v62, %v739_v1  ;;  %816 = vst.msk [vmem:[#allocation2 + $0x18] sm:$0xff] %vm255_vm2, %v739_v1  ;;  %745 = vperm.xlu1 %1097, %v739_v1  }
 0x393   : > { %v741_v29 = vmul.f32 1.442695, %v740_v2 }
 0x395   : > { %500 = vrot.lane.b32.xlu1 %v1263_v17, %s1152_s24 }
 0x399   : > { %634 = vrot.lane.b32.xlu1 %v1263_v17, %s1153_s25 }
 0x39d   : > { %768 = vrot.lane.b32.xlu1 %v1263_v17, %s1154_s26 }
 0x3c1   : > { %347 = vadd.xlane.f32.xlu1 %v346_v3 }
 0x400   : > { %v478_v4 = vpop.permute.xlu1 %477 }
 0x401   : > { %v480_v5 = vsub.f32 %v465_v37, %v478_v4 }
 0x403   : > { %v481_v6 = vmul.f32 1.442695, %v480_v5  ;;  %v626_v5 = vld [vmem:[#allocation4 + $0x10] sm:$0xff] }
 0x405   : > { %1102 = vpow2.f32 %v481_v6 }
 0x408   : > { %v612_v7 = vpop.permute.xlu0 %611 }
 0x409   : > { %v614_v8 = vsub.f32 %v599_v43, %v612_v7  ;;  %v618_v43 = vld [vmem:[#allocation3 + $0x10] sm:$0xff] }
 0x40b   : > { %v615_v9 = vmul.f32 1.442695, %v614_v8 }
 0x40d   : > { %1104 = vpow2.f32 %v615_v9 }
 0x40f   : > { %v1103_v10 = vpop.eup %1102 }
 0x410   : > { %v746_v11 = vpop.permute.xlu1 %745  ;;  %v486_v12 = vsel %vm328_vm3, %v1103_v10, 0.0  ;;  %v499_v19 = vpack.c.bf16 %v1103_v10, %v1103_v10 }
 0x411   : > { %v748_v14 = vsub.f32 %v733_v49, %v746_v11  ;;  %487 = vadd.xlane.f32.xlu0 %v486_v12  ;;  %v352_v49 = vld [vmem:[#allocation4] sm:$0xff] }
 0x413   : > { %v749_v18 = vmul.f32 1.442695, %v748_v14  ;;  %v760_v14 = vld [vmem:[#allocation4 + $0x18] sm:$0xff] }
 0x414   : > { %v501_v17 = vpop.permute.xlu1 %500 }
 0x415   : > { %1106 = vpow2.f32 %v749_v18  ;;  %1033 = vmatpush3.bf16.msra.mxu0 %v501_v17 }
 0x416   : > { %1044 = vmatprep.subr.bf16.mxu0 %v1148_v0  ;;  %1108 = vpow2.f32 %v334_v26 }
 0x417   : > { %v1105_v20 = vpop.eup %1104  ;;  %1110 = vpow2.f32 %v473_v28 }
 0x418   : > { %1035 = vmatmul.mubr.msk.bf16.vlgmr.msra.gmra.mrb[4].mxu0 %vm328_vm3, %v499_v19  ;;  %v620_v21 = vsel %vm328_vm3, %v1105_v20, 0.0  ;;  %v635_v22 = vpop.permute.xlu1 %634  ;;  %v633_v23 = vpack.c.bf16 %v1105_v20, %v1105_v20  ;;  %1112 = vpow2.f32 %v741_v29 }
 0x419   : > { %621 = vadd.xlane.f32.xlu0 %v620_v21  ;;  %1045 = vmatpush3.bf16.msra.mxu0 %v635_v22  ;;  %1114 = vpow2.f32 %v607_v31 }
 0x41a   : > { %1046 = vmatprep.mubr.msk.bf16.mxu0 %vm1149_vm1, %v1148_v0  ;;  %1056 = vmatprep.subr.bf16.mxu0 %v1148_v0 }
 0x41c   : > { %v769_v24 = vpop.permute.xlu1 %768 }
 0x41f   : > { %v1107_v25 = vpop.eup %1106 }
 0x420   : > { %1047 = vmatmul.mubr.msk.bf16.vlgmr.msra.gmra.mrb[8].mxu0 %vm328_vm3, %v633_v23  ;;  %v754_v27 = vsel %vm328_vm3, %v1107_v25, 0.0  ;;  %v767_v30 = vpack.c.bf16 %v1107_v25, %v1107_v25  ;;  %v1109_v13 = vpop.eup %1108 }
 0x421   : > { %755 = vadd.xlane.f32.xlu1 %v754_v27  ;;  %1057 = vmatpush3.bf16.msra.mxu0 %v769_v24  ;;  %v1111_v15 = vpop.eup %1110 }
 0x422   : > { %1058 = vmatprep.mubr.msk.bf16.mxu0 %vm1149_vm1, %v1148_v0  ;;  %v1113_v16 = vpop.eup %1112  ;;  %v345_v0 = vmul.f32 %v1109_v13, %v344_v34  ;;  %v485_v40 = vmul.f32 %v1111_v15, %v484_v39 }
 0x423   : > { %v1115_v33 = vpop.eup %1114  ;;  %v753_v50 = vmul.f32 %v1113_v16, %v752_v48 }
 0x424   : > { %v619_v44 = vmul.f32 %v1115_v33, %v618_v43 }
 0x428   : > { %1059 = vmatmul.mubr.msk.bf16.vlgmr.msra.gmra.mrb[12].mxu0 %vm328_vm3, %v767_v30 }
 0x42f   : > { %355 = vperm.xlu0 %1096, %v1109_v13  }
 0x432   : > { %495 = vperm.xlu1 %1097, %v1111_v15  }
 0x433   : > { %763 = vperm.xlu0 %1096, %v1113_v16  }
 0x436   : > { %629 = vperm.xlu1 %1097, %v1115_v33  }
 0x44e   : > { %v348_v35 = vpop.xlane.xlu1 %347 }
 0x44f   : > { %v349_v36 = vadd.f32 %v348_v35, %v345_v0 }
 0x451   : > { %351 = vst.msk [vmem:[#allocation3] sm:$0xff] %vm255_vm2, %v349_v36 }
 0x458   : > { %v820_v37 = vld [vmem:[#allocation3] sm:$0xff] }
 0x459   : > { %1116 = vrcp.f32 %v820_v37 }
 0x463   : > { %v1117_v38 = vpop.eup %1116 }
 0x464   : > { %825 = vperm.xlu1 %1097, %v1117_v38  }
 0x49e   : > { %v488_v41 = vpop.xlane.xlu0 %487 }
 0x49f   : > { %v489_v42 = vadd.f32 %v488_v41, %v485_v40 }
 0x4a1   : > { %490 = vst.msk [vmem:[#allocation3 + $0x8] sm:$0xff] %vm255_vm2, %v489_v42 }
 0x4a6   : > { %v622_v45 = vpop.xlane.xlu0 %621 }
 0x4a7   : > { %v623_v46 = vadd.f32 %v622_v45, %v619_v44 }
 0x4a8   : > { %v829_v47 = vld [vmem:[#allocation3 + $0x8] sm:$0xff] }
 0x4a9   : > { %624 = vst.msk [vmem:[#allocation3 + $0x10] sm:$0xff] %vm255_vm2, %v623_v46  ;;  %1118 = vrcp.f32 %v829_v47 }
 0x4ae   : > { %v756_v51 = vpop.xlane.xlu1 %755  ;;  %v356_v52 = vpop.permute.xlu0 %355 }
 0x4af   : > { %v757_v53 = vadd.f32 %v756_v51, %v753_v50  ;;  %v358_v54 = vmul.f32 %v356_v52, %v352_v49 }
 0x4b0   : > { %v838_v55 = vld [vmem:[#allocation3 + $0x10] sm:$0xff] }
 0x4b1   : > { %758 = vst.msk [vmem:[#allocation3 + $0x18] sm:$0xff] %vm255_vm2, %v757_v53  ;;  %v409_v56 = vadd.f32 %v1286_v32, %v358_v54  ;;  %1120 = vrcp.f32 %v838_v55 }
 0x4b2   : > { %v496_v62 = vpop.permute.xlu1 %495  ;;  %v764_v18 = vpop.permute.xlu0 %763 }
 0x4b3   : > { %v1119_v57 = vpop.eup %1118  ;;  %410 = vst.msk [vmem:[#allocation4] sm:$0xff] %vm264_vm0, %v409_v56  ;;  %v498_v63 = vmul.f32 %v496_v62, %v492_v61  ;;  %v766_v17 = vmul.f32 %v764_v18, %v760_v14 }
 0x4b4   : > { %834 = vperm.xlu0 %1096, %v1119_v57  }
 0x4b6   : > { %v630_v6 = vpop.permute.xlu1 %629 }
 0x4b7   : > { %v632_v7 = vmul.f32 %v630_v6, %v626_v5 }
 0x4b8   : > { %v847_v58 = vld [vmem:[#allocation3 + $0x18] sm:$0xff] }
 0x4b9   : > { %1122 = vrcp.f32 %v847_v58 }
 0x4ba   : > { %v822_v16 = vld [vmem:[#allocation4] sm:$0xff] }
 0x4bb   : > { %v1121_v59 = vpop.eup %1120 }
 0x4bc   : > { %843 = vperm.xlu1 %1097, %v1121_v59  }
 0x4c3   : > { %v1123_v60 = vpop.eup %1122 }
 0x4c4   : > { %852 = vperm.xlu0 %1096, %v1123_v60  }
 0x4e3   : > { %v826_v27 = vpop.permute.xlu1 %825 }
 0x4e4   : > { %v828_v34 = vmul.f32 %v826_v27, %v822_v16 }
 0x4eb   : > { %v540_v1 = vpop.f32.mrb[4].mxu0 }
 0x4ec   : > { %v546_v2 = vadd.f32 %v540_v1, %v498_v63  ;;  %v1036_v3 = vpop.f32.mrb[5].mxu0 }
 0x4ed   : > { %v543_v4 = vpop.f32.mrb[6].mxu0 }
 0x4ee   : > { %547 = vst.msk [vmem:[#allocation4 + $0x8] sm:$0xff] %vm264_vm0, %v546_v2  ;;  %v1037_v32 = vpop.f32.mrb[7].mxu0 }
 0x4f3   : > { %v674_v8 = vpop.f32.mrb[8].mxu0 }
 0x4f4   : > { %v680_v9 = vadd.f32 %v674_v8, %v632_v7  ;;  %v1048_v10 = vpop.f32.mrb[9].mxu0 }
 0x4f5   : > { %v677_v11 = vpop.f32.mrb[10].mxu0  ;;  %v831_v25 = vld [vmem:[#allocation4 + $0x8] sm:$0xff] }
 0x4f6   : > { %681 = vst.msk [vmem:[#allocation4 + $0x10] sm:$0xff] %vm264_vm0, %v680_v9  ;;  %v1049_v12 = vpop.f32.mrb[11].mxu0 }
 0x4fb   : > { %v808_v19 = vpop.f32.mrb[12].mxu0 }
 0x4fc   : > { %v814_v20 = vadd.f32 %v808_v19, %v766_v17  ;;  %v1060_v21 = vpop.f32.mrb[13].mxu0 }
 0x4fd   : > { %v811_v22 = vpop.f32.mrb[14].mxu0  ;;  %v840_v29 = vld [vmem:[#allocation4 + $0x10] sm:$0xff] }
 0x4fe   : > { %815 = vst.msk [vmem:[#allocation4 + $0x18] sm:$0xff] %vm264_vm0, %v814_v20  ;;  %v1061_v23 = vpop.f32.mrb[15].mxu0 }
 0x505   : > { %v849_v13 = vld [vmem:[#allocation4 + $0x18] sm:$0xff] }
 0x533   : > { %v835_v24 = vpop.permute.xlu0 %834 }
 0x534   : > { %v837_v26 = vmul.f32 %v835_v24, %v831_v25 }
 0x536   : > { %857 = vrot.lane.b32.xlu1 %v837_v26, %s1155_s30 }
 0x53b   : > { %v844_v28 = vpop.permute.xlu1 %843 }
 0x53c   : > { %v846_v30 = vmul.f32 %v844_v28, %v840_v29 }
 0x53e   : > { %861 = vrot.lane.b32.xlu0 %v846_v30, %s1156_s4 }
 0x543   : > { %v853_v31 = vpop.permute.xlu0 %852 }
 0x544   : > { %v855_v15 = vmul.f32 %v853_v31, %v849_v13 }
 0x546   : > { %865 = vrot.lane.b32.xlu1 %v855_v15, %s1157_s5 }
 0x5a8   : > { %v858_v33 = vpop.permute.xlu1 %857 }
 0x5a9   : > { %v868_v35 = vsel %vm264_vm0, %v828_v34, %v858_v33 }
 0x5b0   : > { %v862_v0 = vpop.permute.xlu0 %861 }
 0x5b1   : > { %v869_v36 = vsel %vm328_vm3, %v868_v35, %v862_v0 }
 0x5b8   : > { %v866_v37 = vpop.permute.xlu1 %865 }
 0x5b9   : > { %v871_v38 = vsel %vm870_vm4, %v869_v36, %v866_v37 }
 0x5ba   : > { %v872_v39 = vpack.c.bf16 %v871_v38, %v871_v38 }
 0x5bc   : > { %874 = vst.msk [vmem:[%s249_s8] sm:$0xf] %vm873_vm5, %v872_v39 }
 0x5bd PF: > { %s13_s14 = sadd.s32 1, %s1146_s14   ;;  %s1346_s12 = smov %s1142_s13 }
 0x5be   : > { %p10_p5 = scmp.ge.s32.totalorder %s13_s14, 4   ;;  %s1347_s13 = smov %s1349_s15 }
 0x5c0   :  { %12 = sbr.rel (!%p10_p5) target bundleno = 2 (0x2), region = 85 }

// kernel: transformer_decoder_forward.59
= control target key start
LH: loop header
LB: loop body
LE: loop exit
PB: predicated region body
PF: predicated region fallthrough
CT: control target
= control target key end

     0   :  { %vm18_vm0 = vcmask 261120   ;;  %vm72_vm1 = vcmask 257024   ;;  %s132_s0 = inlined_call_operand.vmem [shape: bf16[16,32], index: 0, kind: input, shape index: {}]   ;;  %s133_s1 = inlined_call_operand.vmem [shape: f32[1,32], index: 1, kind: input, shape index: {}]   ;;  %s134_s2 = inlined_call_operand.vmem [shape: f32[1,32], index: 2, kind: input, shape index: {}]   ;;  %s135_s3 = inlined_call_operand.vmem [shape: bf16[16,32], index: 3, kind: output, shape index: {}]  }
   0x1   :  { %v86_v0 = vld [vmem:[%s132_s0] sm:$0xff]  }
   0x2   :  { %v87_v1 = vunpack.c.l.bf16 %v86_v0  ;;  %v88_v2 = vunpack.c.h.bf16 %v86_v0  ;;  %v79_v22 = vld [vmem:[%s133_s1] ss:$0 sm:$0xff] }
   0x3   :  { %v80_v24 = vld [vmem:[%s134_s2] ss:$0 sm:$0xff] }
   0x4   :  { %v19_v3 = vsel %vm18_vm0, %v87_v1, 0.0  ;;  %v22_v4 = vsel %vm18_vm0, %v88_v2, 0.0 }
   0x5   :  { %20 = vadd.xlane.f32.xlu0 %v19_v3 }
   0x9   :  { %23 = vadd.xlane.f32.xlu0 %v22_v4 }
  0x92   :  { %v21_v5 = vpop.xlane.xlu0 %20 }
  0x93   :  { %v26_v6 = vmul.f32 0.03125, %v21_v5 }
  0x95   :  { %v28_v7 = vsub.f32 %v87_v1, %v26_v6 }
  0x96   :  { %v24_v8 = vpop.xlane.xlu0 %23 }
  0x97   :  { %v27_v9 = vmul.f32 0.03125, %v24_v8  ;;  %v30_v10 = vmul.f32 %v28_v7, %v28_v7 }
  0x99   :  { %v29_v11 = vsub.f32 %v88_v2, %v27_v9  ;;  %v32_v12 = vsel %vm18_vm0, %v30_v10, 0.0 }
  0x9a   :  { %33 = vadd.xlane.f32.xlu1 %v32_v12 }
  0x9b   :  { %v31_v13 = vmul.f32 %v29_v11, %v29_v11 }
  0x9d   :  { %v35_v14 = vsel %vm18_vm0, %v31_v13, 0.0 }
  0x9e   :  { %36 = vadd.xlane.f32.xlu1 %v35_v14 }
 0x127   :  { %v34_v15 = vpop.xlane.xlu1 %33 }
 0x128   :  { %v38_v16 = vmul.f32 0.03125, %v34_v15 }
 0x12a   :  { %v40_v17 = vadd.f32 1e-05, %v38_v16 }
 0x12b   :  { %v37_v18 = vpop.xlane.xlu1 %36 }
 0x12c   :  { %89 = vrsqrt.f32 %v40_v17  ;;  %v39_v19 = vmul.f32 0.03125, %v37_v18 }
 0x12e   :  { %v41_v20 = vadd.f32 1e-05, %v39_v19 }
 0x130   :  { %91 = vrsqrt.f32 %v41_v20 }
 0x136   :  { %v90_v21 = vpop.eup %89 }
 0x137   :  { %v44_v23 = vmul.f32 %v90_v21, %v28_v7 }
 0x139   :  { %v53_v25 = vmul.f32 %v79_v22, %v44_v23 }
 0x13a   :  { %v92_v26 = vpop.eup %91 }
 0x13b   :  { %v62_v27 = vadd.f32 %v80_v24, %v53_v25  ;;  %v45_v28 = vmul.f32 %v92_v26, %v29_v11 }
 0x13d   :  { %v83_v29 = vpack.c.bf16 %v62_v27, %v62_v27  ;;  %v54_v30 = vmul.f32 %v79_v22, %v45_v28 }
 0x13f   :  { %73 = vst.msk [vmem:[%s135_s3] sm:$0xf] %vm72_vm1, %v83_v29  ;;  %v63_v31 = vadd.f32 %v80_v24, %v54_v30 }
 0x141   :  { %v84_v32 = vpack.c.bf16 %v63_v31, %v63_v31 }
 0x143   :  { %74 = vst.msk [vmem:[%s135_s3 + $0x4] sm:$0xf] %vm72_vm1, %v84_v32 }

</bundles_post_ra>
